<compile_context>
chip_gen: v7x
topology: tpu7x:2x2x1
jax: 0.10.0
libtpu: 0.0.40
codegen_flags: <defaults>
</compile_context>

<pallas_src>
import functools
import math

import jax
import jax.numpy as jnp
from jax import lax
from jax.experimental import pallas as pl
from jax.experimental.pallas import tpu as pltpu

EPS = 1e-6          # LayerNormalization eps (10 ** -6)
NEG_INF = -1e9      # masked_fill value used by the torch module


# ------------------------- in-kernel helpers -------------------------------

def _layernorm(x, alpha, bias):
    """torch-style: alpha * (x - mean) / (std + eps) + bias, std unbiased."""
    d = x.shape[-1]
    mean = jnp.mean(x, axis=-1, keepdims=True)
    var = jnp.sum((x - mean) ** 2, axis=-1, keepdims=True) / (d - 1)
    return alpha * (x - mean) / (jnp.sqrt(var) + EPS) + bias


def _mha_into_scratch(q_full, k_full, v_full, keep_masks, ctx_ref,
                      *, bb, sq, sk, h, d_k, cd):
    """Multi-head attention core for a block of `bb` batch elements.

    q_full: (bb*sq, D) f32, already projected (1/sqrt(d_k) folded into Wq).
    k_full / v_full: (bb*sk, D) f32, already projected.
    keep_masks: list of bb boolean (sq, sk) arrays, True = keep.
    Head contexts are written into ctx_ref (VMEM scratch, (bb*sq, D) f32) so
    the caller can hit W_o with a single full-width matmul.
    """
    for i in range(bb):
        qrow = q_full[i * sq:(i + 1) * sq, :]
        krow = k_full[i * sk:(i + 1) * sk, :]
        vrow = v_full[i * sk:(i + 1) * sk, :]
        keep = keep_masks[i]
        for head in range(h):
            lo = head * d_k
            qh = qrow[:, lo:lo + d_k].astype(cd)
            kh = krow[:, lo:lo + d_k].astype(cd)
            vh = vrow[:, lo:lo + d_k].astype(cd)
            # contract last (lane) axis of both operands -> no kh.T materialized
            s = lax.dot_general(qh, kh, (((1,), (1,)), ((), ())),
                                preferred_element_type=jnp.float32)
            s = jnp.where(keep, s, jnp.float32(NEG_INF))    # torch masked_fill_
            s = s - jnp.max(s, axis=-1, keepdims=True)
            p = jnp.exp(s)
            p = p * pl.reciprocal(jnp.sum(p, axis=-1, keepdims=True), approx=True)
            ctx_ref[pl.ds(i * sq, sq), pl.ds(lo, d_k)] = jnp.dot(
                p.astype(cd), vh, preferred_element_type=jnp.float32)


# ------------------------------- kernel -------------------------------------

def decoder_block_kernel(
        src_len_ref,                      # SMEM (B,) int32 (scalar prefetch)
        x_ref, enc_ref,
        sa_wqkv, sa_wo, ca_wq, ca_wkv, ca_wo,
        ff_w1, ff_b1, ff_w2, ff_b2,
        ln0_a, ln0_b, ln1_a, ln1_b, ln2_a, ln2_b,
        out_ref, ctx_ref, *, h, d_k):
    bb, s_t, d = x_ref.shape
    s_s = enc_ref.shape[1]
    n_t = bb * s_t
    cd = sa_wqkv.dtype                    # matmul-operand compute dtype

    # Flatten the batch block into one row slab so every projection / FFN
    # matmul sees M = bb * s_t rows (the big MXU-utilization lever).
    x = x_ref[...].astype(jnp.float32).reshape(n_t, d)
    enc = enc_ref[...].astype(jnp.float32).reshape(bb * s_s, d)

    # Masks built in-kernel (no HBM mask traffic):
    #   - causal target mask (row >= col), shared by every batch element
    #   - per-batch source valid-length mask from the prefetched lengths
    b0 = pl.program_id(0)
    causal_keep = (lax.broadcasted_iota(jnp.int32, (s_t, s_t), 0) >=
                   lax.broadcasted_iota(jnp.int32, (s_t, s_t), 1))
    causal_masks = [causal_keep] * bb
    src_col = lax.broadcasted_iota(jnp.int32, (s_t, s_s), 1)
    src_masks = [src_col < src_len_ref[b0 * bb + i] for i in range(bb)]

    # Residual 1: masked self-attention on LayerNorm(x); fused QKV projection
    # (1/sqrt(d_k) already folded into the Q columns at wrapper time).
    xn = _layernorm(x, ln0_a[...], ln0_b[...])
    qkv = jnp.dot(xn.astype(cd), sa_wqkv[...],
                  preferred_element_type=jnp.float32)               # (n_t, 3D)
    _mha_into_scratch(qkv[:, :d], qkv[:, d:2 * d], qkv[:, 2 * d:],
                      causal_masks, ctx_ref,
                      bb=bb, sq=s_t, sk=s_t, h=h, d_k=d_k, cd=cd)
    x = x + jnp.dot(ctx_ref[...].astype(cd), sa_wo[...],
                    preferred_element_type=jnp.float32)

    # Residual 2: cross-attention (Q from x, K/V from encoder, fused KV proj).
    xn = _layernorm(x, ln1_a[...], ln1_b[...])
    q = jnp.dot(xn.astype(cd), ca_wq[...],
                preferred_element_type=jnp.float32)                 # (n_t, D)
    kv = jnp.dot(enc.astype(cd), ca_wkv[...],
                 preferred_element_type=jnp.float32)                # (bb*Ss, 2D)
    _mha_into_scratch(q, kv[:, :d], kv[:, d:], src_masks, ctx_ref,
                      bb=bb, sq=s_t, sk=s_s, h=h, d_k=d_k, cd=cd)
    x = x + jnp.dot(ctx_ref[...].astype(cd), ca_wo[...],
                    preferred_element_type=jnp.float32)

    # Residual 3: feed-forward (Linear -> ReLU -> Linear).
    xn = _layernorm(x, ln2_a[...], ln2_b[...])
    hid = jnp.maximum(
        jnp.dot(xn.astype(cd), ff_w1[...],
                preferred_element_type=jnp.float32) + ff_b1[...], 0.0)
    x = x + jnp.dot(hid.astype(cd), ff_w2[...],
                    preferred_element_type=jnp.float32) + ff_b2[...]

    out_ref[...] = x.reshape(bb, s_t, d).astype(out_ref.dtype)


# ------------------------------ wrapper --------------------------------------

def _pick_batch_block(batch, seq):
    """Smallest divisor of `batch` giving >= 256 rows per grid step."""
    target = min(batch, max(1, -(-256 // seq)))
    for bb in range(target, batch + 1):
        if batch % bb == 0:
            return bb
    return batch


def _pick_vmem_limit():
    """~48 MiB on v7x (64 MiB phys); up to 96 MiB on v5e/v6e (128 MiB phys)."""
    try:
        phys = getattr(pltpu.get_tpu_info(), "vmem_capacity_bytes", None)
    except Exception:
        phys = None
    if not phys:
        return 48 * 1024 * 1024
    return min(100 * 1024 * 1024, int(phys) * 3 // 4)


def _const_index_map(ndim):
    return lambda b, sl: (0,) * ndim


def decoder_block(x, enc, src_len, params, *, h,
                  compute_dtype=jnp.bfloat16, batch_block=None,
                  single_buffer_weights=True):
    """x: (B, St, D); enc: (B, Ss, D); src_len: (B,) int32 valid source lengths.

    Weights in `params` are (in, out) layout (already transposed from the
    torch (out, in) storage, so the forward is x @ W).  Matmul weights are
    cast to `compute_dtype`; biases / LayerNorm params stay f32.
    """
    B, St, D = x.shape
    Ss = enc.shape[1]
    d_k = D // h
    d_ff = params["ff_w1"].shape[1]
    scale = 1.0 / math.sqrt(d_k)

    if batch_block is None:
        batch_block = _pick_batch_block(B, St)
    assert B % batch_block == 0
    Bb = batch_block
    cd = compute_dtype

    param_arrays = [
        # fused self-attn QKV (D, 3D) with 1/sqrt(d_k) folded into Q columns
        jnp.concatenate([params["sa_wq"] * scale, params["sa_wk"],
                         params["sa_wv"]], axis=1).astype(cd),
        params["sa_wo"].astype(cd),
        # cross-attn Q (scaled), fused cross-attn KV (D, 2D), output (D, D)
        (params["ca_wq"] * scale).astype(cd),
        jnp.concatenate([params["ca_wk"], params["ca_wv"]], axis=1).astype(cd),
        params["ca_wo"].astype(cd),
        # feed-forward (weights in compute dtype, biases in f32)
        params["ff_w1"].astype(cd), params["ff_b1"].reshape(1, d_ff).astype(jnp.float32),
        params["ff_w2"].astype(cd), params["ff_b2"].reshape(1, D).astype(jnp.float32),
        # layer norms (f32 elementwise path)
        params["ln0_a"].reshape(1, D).astype(jnp.float32),
        params["ln0_b"].reshape(1, D).astype(jnp.float32),
        params["ln1_a"].reshape(1, D).astype(jnp.float32),
        params["ln1_b"].reshape(1, D).astype(jnp.float32),
        params["ln2_a"].reshape(1, D).astype(jnp.float32),
        params["ln2_b"].reshape(1, D).astype(jnp.float32),
    ]

    kernel = functools.partial(decoder_block_kernel, h=h, d_k=d_k)

    def _build_and_call(buffer_weights_once):
        # Constant-index weight blocks: single-buffer them when supported
        # (double-buffering a block that never changes only wastes VMEM).
        wkw = dict(pipeline_mode=pl.Buffered(1)) if buffer_weights_once else {}
        in_specs = [
            pl.BlockSpec((Bb, St, D), lambda b, sl: (b, 0, 0)),
            pl.BlockSpec((Bb, Ss, D), lambda b, sl: (b, 0, 0)),
        ]
        for p in param_arrays:
            in_specs.append(pl.BlockSpec(p.shape, _const_index_map(p.ndim), **wkw))
        return pl.pallas_call(
            kernel,
            out_shape=jax.ShapeDtypeStruct((B, St, D), x.dtype),
            grid_spec=pltpu.PrefetchScalarGridSpec(
                num_scalar_prefetch=1,
                grid=(B // Bb,),
                in_specs=in_specs,
                out_specs=pl.BlockSpec((Bb, St, D), lambda b, sl: (b, 0, 0)),
                scratch_shapes=[pltpu.VMEM((Bb * St, D), jnp.float32)],
            ),
            compiler_params=pltpu.CompilerParams(
                dimension_semantics=("parallel",),
                vmem_limit_bytes=_pick_vmem_limit(),
            ),
        )(src_len.astype(jnp.int32), x, enc, *param_arrays)

    if single_buffer_weights:
        try:
            return _build_and_call(True)
        except Exception:
            pass  # installed Pallas rejects Buffered(1) on pallas_call specs
    return _build_and_call(False)


# ------------------------- pure-JAX reference --------------------------------

def decoder_block_ref(x, enc, tgt_mask, src_mask, params, *, h):
    D = x.shape[-1]
    d_k = D // h

    def ln(y, a, b):
        d = y.shape[-1]
        mean = jnp.mean(y, -1, keepdims=True)
        var = jnp.sum((y - mean) ** 2, -1, keepdims=True) / (d - 1)
        return a * (y - mean) / (jnp.sqrt(var) + EPS) + b

    def mha(q_in, kv_in, mask, wq, wk, wv, wo):
        B, Sq, _ = q_in.shape
        Sk = kv_in.shape[1]
        q = (q_in @ wq).reshape(B, Sq, h, d_k).transpose(0, 2, 1, 3)
        k = (kv_in @ wk).reshape(B, Sk, h, d_k).transpose(0, 2, 1, 3)
        v = (kv_in @ wv).reshape(B, Sk, h, d_k).transpose(0, 2, 1, 3)
        s = q @ k.transpose(0, 1, 3, 2) / jnp.sqrt(jnp.float32(d_k))
        s = jnp.where(mask[:, None, :, :] == 0.0, NEG_INF, s)
        a = jax.nn.softmax(s, axis=-1)
        ctx = (a @ v).transpose(0, 2, 1, 3).reshape(B, Sq, D)
        return ctx @ wo

    xn = ln(x, params["ln0_a"], params["ln0_b"])
    x = x + mha(xn, xn, tgt_mask,
                params["sa_wq"], params["sa_wk"], params["sa_wv"], params["sa_wo"])
    xn = ln(x, params["ln1_a"], params["ln1_b"])
    x = x + mha(xn, enc, src_mask,
                params["ca_wq"], params["ca_wk"], params["ca_wv"], params["ca_wo"])
    xn = ln(x, params["ln2_a"], params["ln2_b"])
    hid = jax.nn.relu(xn @ params["ff_w1"] + params["ff_b1"])
    x = x + hid @ params["ff_w2"] + params["ff_b2"]
    return x


# --------------------------------- main ---------------------------------------

if __name__ == "__main__":
    B, St, Ss, D, H, Dff = 2, 8, 16, 32, 4, 64

    key = jax.random.PRNGKey(0)
    keys = jax.random.split(key, 20)

    x = jax.random.normal(keys[0], (B, St, D), jnp.float32)
    enc = jax.random.normal(keys[1], (B, Ss, D), jnp.float32)

    # per-batch valid source lengths (kernel input); dense masks only for the
    # pure-JAX reference (same semantics as the torch masks).
    src_len = jnp.array([Ss, Ss - 5], jnp.int32)
    causal = (jnp.arange(St)[:, None] >= jnp.arange(St)[None, :]).astype(jnp.float32)
    tgt_mask = jnp.broadcast_to(causal, (B, St, St))
    src_valid = (jnp.arange(Ss)[None, :] < src_len[:, None]).astype(jnp.float32)
    src_mask = jnp.broadcast_to(src_valid[:, None, :], (B, St, Ss))

    def w(k, shape, scale=0.08):
        return scale * jax.random.normal(k, shape, jnp.float32)

    params = {
        "sa_wq": w(keys[2], (D, D)), "sa_wk": w(keys[3], (D, D)),
        "sa_wv": w(keys[4], (D, D)), "sa_wo": w(keys[5], (D, D)),
        "ca_wq": w(keys[6], (D, D)), "ca_wk": w(keys[7], (D, D)),
        "ca_wv": w(keys[8], (D, D)), "ca_wo": w(keys[9], (D, D)),
        "ff_w1": w(keys[10], (D, Dff)), "ff_b1": w(keys[11], (Dff,)),
        "ff_w2": w(keys[12], (Dff, D)), "ff_b2": w(keys[13], (D,)),
        "ln0_a": jnp.ones((D,), jnp.float32) + w(keys[14], (D,)),
        "ln0_b": w(keys[15], (D,)),
        "ln1_a": jnp.ones((D,), jnp.float32) + w(keys[16], (D,)),
        "ln1_b": w(keys[17], (D,)),
        "ln2_a": jnp.ones((D,), jnp.float32) + w(keys[18], (D,)),
        "ln2_b": w(keys[19], (D,)),
    }

    ref = decoder_block_ref(x, enc, tgt_mask, src_mask, params, h=H)

    # Exact-math path (f32 matmul operands): tight semantic check.
    out_f32 = decoder_block(x, enc, src_len, params, h=H,
                            compute_dtype=jnp.float32)
    out_f32 = jax.block_until_ready(out_f32)
    assert out_f32.shape == (B, St, D)
    if not jnp.allclose(out_f32, ref, rtol=5e-3, atol=5e-3):
        raise AssertionError(
            f"f32 mismatch, max abs err = {float(jnp.max(jnp.abs(out_f32 - ref)))}")

    # Default fast path: bf16 matmul operands, f32 accumulation / elementwise.
    out_bf16 = decoder_block(x, enc, src_len, params, h=H)
    out_bf16 = jax.block_until_ready(out_bf16)
    assert out_bf16.shape == (B, St, D)
    if not jnp.allclose(out_bf16, ref, rtol=6e-2, atol=6e-2):
        raise AssertionError(
            f"bf16 mismatch, max abs err = {float(jnp.max(jnp.abs(out_bf16 - ref)))}")

    print("KERNEL_OK")
</pallas_src>

<mosaic_0001>
module attributes {stable_mosaic.version = 11 : i64} {
  func.func @decoder_block_kernel(%arg0: i32, %arg1: memref<2xi32, #tpu.memory_space<smem>>, %arg2: memref<2x8x32xf32, #tpu.memory_space<vmem>>, %arg3: memref<2x16x32xf32, #tpu.memory_space<vmem>>, %arg4: memref<32x96xf32, #tpu.memory_space<vmem>>, %arg5: memref<32x32xf32, #tpu.memory_space<vmem>>, %arg6: memref<32x32xf32, #tpu.memory_space<vmem>>, %arg7: memref<32x64xf32, #tpu.memory_space<vmem>>, %arg8: memref<32x32xf32, #tpu.memory_space<vmem>>, %arg9: memref<32x64xf32, #tpu.memory_space<vmem>>, %arg10: memref<1x64xf32, #tpu.memory_space<vmem>>, %arg11: memref<64x32xf32, #tpu.memory_space<vmem>>, %arg12: memref<1x32xf32, #tpu.memory_space<vmem>>, %arg13: memref<1x32xf32, #tpu.memory_space<vmem>>, %arg14: memref<1x32xf32, #tpu.memory_space<vmem>>, %arg15: memref<1x32xf32, #tpu.memory_space<vmem>>, %arg16: memref<1x32xf32, #tpu.memory_space<vmem>>, %arg17: memref<1x32xf32, #tpu.memory_space<vmem>>, %arg18: memref<1x32xf32, #tpu.memory_space<vmem>>, %arg19: memref<2x8x32xf32, #tpu.memory_space<vmem>>, %arg20: memref<16x32xf32, #tpu.memory_space<vmem>>) attributes {dimension_semantics = [#tpu.dimension_semantics<parallel>], iteration_bounds = array<i64: 1>, scalar_prefetch = 1 : i64, scratch_operands = 1 : i64, tpu.core_type = #tpu.core_type<tc>, window_params = [{transform_indices = @transform_0, window_bounds = array<i64: 2, 8, 32>}, {transform_indices = @transform_1, window_bounds = array<i64: 2, 16, 32>}, {pipeline_mode = #tpu.pipeline_mode<synchronous>, transform_indices = @transform_2, window_bounds = array<i64: 32, 96>}, {pipeline_mode = #tpu.pipeline_mode<synchronous>, transform_indices = @transform_3, window_bounds = array<i64: 32, 32>}, {pipeline_mode = #tpu.pipeline_mode<synchronous>, transform_indices = @transform_4, window_bounds = array<i64: 32, 32>}, {pipeline_mode = #tpu.pipeline_mode<synchronous>, transform_indices = @transform_5, window_bounds = array<i64: 32, 64>}, {pipeline_mode = #tpu.pipeline_mode<synchronous>, transform_indices = @transform_6, window_bounds = array<i64: 32, 32>}, {pipeline_mode = #tpu.pipeline_mode<synchronous>, transform_indices = @transform_7, window_bounds = array<i64: 32, 64>}, {pipeline_mode = #tpu.pipeline_mode<synchronous>, transform_indices = @transform_8, window_bounds = array<i64: 1, 64>}, {pipeline_mode = #tpu.pipeline_mode<synchronous>, transform_indices = @transform_9, window_bounds = array<i64: 64, 32>}, {pipeline_mode = #tpu.pipeline_mode<synchronous>, transform_indices = @transform_10, window_bounds = array<i64: 1, 32>}, {pipeline_mode = #tpu.pipeline_mode<synchronous>, transform_indices = @transform_11, window_bounds = array<i64: 1, 32>}, {pipeline_mode = #tpu.pipeline_mode<synchronous>, transform_indices = @transform_12, window_bounds = array<i64: 1, 32>}, {pipeline_mode = #tpu.pipeline_mode<synchronous>, transform_indices = @transform_13, window_bounds = array<i64: 1, 32>}, {pipeline_mode = #tpu.pipeline_mode<synchronous>, transform_indices = @transform_14, window_bounds = array<i64: 1, 32>}, {pipeline_mode = #tpu.pipeline_mode<synchronous>, transform_indices = @transform_15, window_bounds = array<i64: 1, 32>}, {pipeline_mode = #tpu.pipeline_mode<synchronous>, transform_indices = @transform_16, window_bounds = array<i64: 1, 32>}, {transform_indices = @transform_17, window_bounds = array<i64: 2, 8, 32>}]} {
    %c0 = arith.constant 0 : index
    %c0_0 = arith.constant 0 : index
    %c0_1 = arith.constant 0 : index
    %0 = vector.load %arg2[%c0, %c0_0, %c0_1] : memref<2x8x32xf32, #tpu.memory_space<vmem>>, vector<2x8x32xf32>
    %1 = vector.shape_cast %0 : vector<2x8x32xf32> to vector<16x32xf32>
    %c0_2 = arith.constant 0 : index
    %c0_3 = arith.constant 0 : index
    %c0_4 = arith.constant 0 : index
    %2 = vector.load %arg3[%c0_2, %c0_3, %c0_4] : memref<2x16x32xf32, #tpu.memory_space<vmem>>, vector<2x16x32xf32>
    %3 = vector.shape_cast %2 : vector<2x16x32xf32> to vector<32x32xf32>
    %4 = tpu.iota {dimensions = array<i32: 0>} : vector<8x8xi32>
    %5 = tpu.iota {dimensions = array<i32: 1>} : vector<8x8xi32>
    %6 = arith.cmpi sge, %4, %5 : vector<8x8xi32>
    %7 = tpu.iota {dimensions = array<i32: 1>} : vector<8x16xi32>
    %c2_i32 = arith.constant 2 : i32
    %8 = arith.muli %arg0, %c2_i32 : i32
    %c0_i32 = arith.constant 0 : i32
    %9 = arith.addi %8, %c0_i32 : i32
    %10 = arith.index_cast %9 : i32 to index
    %11 = memref.load %arg1[%10] : memref<2xi32, #tpu.memory_space<smem>>
    %12 = vector.broadcast %11 : i32 to vector<8x16xi32>
    %13 = arith.cmpi slt, %7, %12 : vector<8x16xi32>
    %c2_i32_5 = arith.constant 2 : i32
    %14 = arith.muli %arg0, %c2_i32_5 : i32
    %c1_i32 = arith.constant 1 : i32
    %15 = arith.addi %14, %c1_i32 : i32
    %16 = arith.index_cast %15 : i32 to index
    %17 = memref.load %arg1[%16] : memref<2xi32, #tpu.memory_space<smem>>
    %18 = vector.broadcast %17 : i32 to vector<8x16xi32>
    %19 = arith.cmpi slt, %7, %18 : vector<8x16xi32>
    %c0_6 = arith.constant 0 : index
    %c0_7 = arith.constant 0 : index
    %20 = vector.load %arg13[%c0_6, %c0_7] : memref<1x32xf32, #tpu.memory_space<vmem>>, vector<1x32xf32>
    %c0_8 = arith.constant 0 : index
    %c0_9 = arith.constant 0 : index
    %21 = vector.load %arg14[%c0_8, %c0_9] : memref<1x32xf32, #tpu.memory_space<vmem>>, vector<1x32xf32>
    %cst = arith.constant dense<0.000000e+00> : vector<16xf32>
    %22 = vector.multi_reduction <add>, %1, %cst [1] : vector<16x32xf32> to vector<16xf32>
    %23 = vector.shape_cast %22 : vector<16xf32> to vector<16x1xf32>
    %cst_10 = arith.constant 3.200000e+01 : f32
    %24 = vector.broadcast %cst_10 : f32 to vector<16x1xf32>
    %25 = arith.divf %23, %24 : vector<16x1xf32>
    %26 = vector.broadcast %25 : vector<16x1xf32> to vector<16x32xf32>
    %27 = arith.subf %1, %26 : vector<16x32xf32>
    %28 = arith.mulf %27, %27 : vector<16x32xf32>
    %cst_11 = arith.constant dense<0.000000e+00> : vector<16xf32>
    %29 = vector.multi_reduction <add>, %28, %cst_11 [1] : vector<16x32xf32> to vector<16xf32>
    %30 = vector.shape_cast %29 : vector<16xf32> to vector<16x1xf32>
    %cst_12 = arith.constant 3.100000e+01 : f32
    %31 = vector.broadcast %cst_12 : f32 to vector<16x1xf32>
    %32 = arith.divf %30, %31 : vector<16x1xf32>
    %33 = vector.broadcast %25 : vector<16x1xf32> to vector<16x32xf32>
    %34 = arith.subf %1, %33 : vector<16x32xf32>
    %35 = vector.broadcast %20 : vector<1x32xf32> to vector<16x32xf32>
    %36 = arith.mulf %35, %34 : vector<16x32xf32>
    %37 = math.sqrt %32 : vector<16x1xf32>
    %cst_13 = arith.constant 9.99999997E-7 : f32
    %38 = vector.broadcast %cst_13 : f32 to vector<16x1xf32>
    %39 = arith.addf %37, %38 : vector<16x1xf32>
    %40 = vector.broadcast %39 : vector<16x1xf32> to vector<16x32xf32>
    %41 = arith.divf %36, %40 : vector<16x32xf32>
    %42 = vector.broadcast %21 : vector<1x32xf32> to vector<16x32xf32>
    %43 = arith.addf %41, %42 : vector<16x32xf32>
    %c0_14 = arith.constant 0 : index
    %c0_15 = arith.constant 0 : index
    %44 = vector.load %arg4[%c0_14, %c0_15] : memref<32x96xf32, #tpu.memory_space<vmem>>, vector<32x96xf32>
    %cst_16 = arith.constant dense<0.000000e+00> : vector<16x96xf32>
    %45 = tpu.matmul %43, %44, %cst_16 {dimension_numbers = #tpu.dot_dimension_numbers<[1], [0], [0], [1], [0, 0, 1, 1], [], []>} : vector<16x32xf32>, vector<32x96xf32>, vector<16x96xf32> -> vector<16x96xf32>
    %46 = vector.extract_strided_slice %45 {offsets = [0, 0], sizes = [16, 32], strides = [1, 1]} : vector<16x96xf32> to vector<16x32xf32>
    %47 = vector.extract_strided_slice %45 {offsets = [0, 32], sizes = [16, 32], strides = [1, 1]} : vector<16x96xf32> to vector<16x32xf32>
    %48 = vector.extract_strided_slice %45 {offsets = [0, 64], sizes = [16, 32], strides = [1, 1]} : vector<16x96xf32> to vector<16x32xf32>
    %49 = vector.extract_strided_slice %46 {offsets = [0, 0], sizes = [8, 32], strides = [1, 1]} : vector<16x32xf32> to vector<8x32xf32>
    %50 = vector.extract_strided_slice %47 {offsets = [0, 0], sizes = [8, 32], strides = [1, 1]} : vector<16x32xf32> to vector<8x32xf32>
    %51 = vector.extract_strided_slice %48 {offsets = [0, 0], sizes = [8, 32], strides = [1, 1]} : vector<16x32xf32> to vector<8x32xf32>
    %52 = vector.extract_strided_slice %49 {offsets = [0, 0], sizes = [8, 8], strides = [1, 1]} : vector<8x32xf32> to vector<8x8xf32>
    %53 = vector.extract_strided_slice %50 {offsets = [0, 0], sizes = [8, 8], strides = [1, 1]} : vector<8x32xf32> to vector<8x8xf32>
    %54 = vector.extract_strided_slice %51 {offsets = [0, 0], sizes = [8, 8], strides = [1, 1]} : vector<8x32xf32> to vector<8x8xf32>
    %cst_17 = arith.constant dense<0.000000e+00> : vector<8x8xf32>
    %55 = tpu.matmul %52, %53, %cst_17 {dimension_numbers = #tpu.dot_dimension_numbers<[1], [1], [0], [0], [0, 0, 1, 0], [], []>} : vector<8x8xf32>, vector<8x8xf32>, vector<8x8xf32> -> vector<8x8xf32>
    %cst_18 = arith.constant -1.000000e+09 : f32
    %56 = vector.broadcast %cst_18 : f32 to vector<8x8xf32>
    %57 = arith.select %6, %55, %56 : vector<8x8xi1>, vector<8x8xf32>
    %cst_19 = arith.constant dense<0xFF800000> : vector<8xf32>
    %58 = vector.multi_reduction <maximumf>, %57, %cst_19 [1] : vector<8x8xf32> to vector<8xf32>
    %59 = vector.shape_cast %58 : vector<8xf32> to vector<8x1xf32>
    %60 = vector.broadcast %59 : vector<8x1xf32> to vector<8x8xf32>
    %61 = arith.subf %57, %60 : vector<8x8xf32>
    %62 = math.exp %61 : vector<8x8xf32>
    %cst_20 = arith.constant dense<0.000000e+00> : vector<8xf32>
    %63 = vector.multi_reduction <add>, %62, %cst_20 [1] : vector<8x8xf32> to vector<8xf32>
    %64 = vector.shape_cast %63 : vector<8xf32> to vector<8x1xf32>
    %65 = tpu.reciprocal %64 {approx = true} : vector<8x1xf32> -> vector<8x1xf32>
    %66 = vector.broadcast %65 : vector<8x1xf32> to vector<8x8xf32>
    %67 = arith.mulf %62, %66 : vector<8x8xf32>
    %cst_21 = arith.constant dense<0.000000e+00> : vector<8x8xf32>
    %68 = tpu.matmul %67, %54, %cst_21 {dimension_numbers = #tpu.dot_dimension_numbers<[1], [0], [0], [1], [0, 0, 1, 1], [], []>} : vector<8x8xf32>, vector<8x8xf32>, vector<8x8xf32> -> vector<8x8xf32>
    %c0_22 = arith.constant 0 : index
    %c0_23 = arith.constant 0 : index
    %69 = vector.load %arg20[%c0_22, %c0_23] : memref<16x32xf32, #tpu.memory_space<vmem>>, vector<8x8xf32>
    tpu.vector_store %arg20[%c0_22, %c0_23], %68 {strides = array<i32>} : memref<16x32xf32, #tpu.memory_space<vmem>>, vector<8x8xf32>,
    %70 = vector.extract_strided_slice %49 {offsets = [0, 8], sizes = [8, 8], strides = [1, 1]} : vector<8x32xf32> to vector<8x8xf32>
    %71 = vector.extract_strided_slice %50 {offsets = [0, 8], sizes = [8, 8], strides = [1, 1]} : vector<8x32xf32> to vector<8x8xf32>
    %72 = vector.extract_strided_slice %51 {offsets = [0, 8], sizes = [8, 8], strides = [1, 1]} : vector<8x32xf32> to vector<8x8xf32>
    %cst_24 = arith.constant dense<0.000000e+00> : vector<8x8xf32>
    %73 = tpu.matmul %70, %71, %cst_24 {dimension_numbers = #tpu.dot_dimension_numbers<[1], [1], [0], [0], [0, 0, 1, 0], [], []>} : vector<8x8xf32>, vector<8x8xf32>, vector<8x8xf32> -> vector<8x8xf32>
    %cst_25 = arith.constant -1.000000e+09 : f32
    %74 = vector.broadcast %cst_25 : f32 to vector<8x8xf32>
    %75 = arith.select %6, %73, %74 : vector<8x8xi1>, vector<8x8xf32>
    %cst_26 = arith.constant dense<0xFF800000> : vector<8xf32>
    %76 = vector.multi_reduction <maximumf>, %75, %cst_26 [1] : vector<8x8xf32> to vector<8xf32>
    %77 = vector.shape_cast %76 : vector<8xf32> to vector<8x1xf32>
    %78 = vector.broadcast %77 : vector<8x1xf32> to vector<8x8xf32>
    %79 = arith.subf %75, %78 : vector<8x8xf32>
    %80 = math.exp %79 : vector<8x8xf32>
    %cst_27 = arith.constant dense<0.000000e+00> : vector<8xf32>
    %81 = vector.multi_reduction <add>, %80, %cst_27 [1] : vector<8x8xf32> to vector<8xf32>
    %82 = vector.shape_cast %81 : vector<8xf32> to vector<8x1xf32>
    %83 = tpu.reciprocal %82 {approx = true} : vector<8x1xf32> -> vector<8x1xf32>
    %84 = vector.broadcast %83 : vector<8x1xf32> to vector<8x8xf32>
    %85 = arith.mulf %80, %84 : vector<8x8xf32>
    %cst_28 = arith.constant dense<0.000000e+00> : vector<8x8xf32>
    %86 = tpu.matmul %85, %72, %cst_28 {dimension_numbers = #tpu.dot_dimension_numbers<[1], [0], [0], [1], [0, 0, 1, 1], [], []>} : vector<8x8xf32>, vector<8x8xf32>, vector<8x8xf32> -> vector<8x8xf32>
    %c0_29 = arith.constant 0 : index
    %c8 = arith.constant 8 : index
    %87 = vector.load %arg20[%c0_29, %c8] : memref<16x32xf32, #tpu.memory_space<vmem>>, vector<8x8xf32>
    tpu.vector_store %arg20[%c0_29, %c8], %86 {strides = array<i32>} : memref<16x32xf32, #tpu.memory_space<vmem>>, vector<8x8xf32>,
    %88 = vector.extract_strided_slice %49 {offsets = [0, 16], sizes = [8, 8], strides = [1, 1]} : vector<8x32xf32> to vector<8x8xf32>
    %89 = vector.extract_strided_slice %50 {offsets = [0, 16], sizes = [8, 8], strides = [1, 1]} : vector<8x32xf32> to vector<8x8xf32>
    %90 = vector.extract_strided_slice %51 {offsets = [0, 16], sizes = [8, 8], strides = [1, 1]} : vector<8x32xf32> to vector<8x8xf32>
    %cst_30 = arith.constant dense<0.000000e+00> : vector<8x8xf32>
    %91 = tpu.matmul %88, %89, %cst_30 {dimension_numbers = #tpu.dot_dimension_numbers<[1], [1], [0], [0], [0, 0, 1, 0], [], []>} : vector<8x8xf32>, vector<8x8xf32>, vector<8x8xf32> -> vector<8x8xf32>
    %cst_31 = arith.constant -1.000000e+09 : f32
    %92 = vector.broadcast %cst_31 : f32 to vector<8x8xf32>
    %93 = arith.select %6, %91, %92 : vector<8x8xi1>, vector<8x8xf32>
    %cst_32 = arith.constant dense<0xFF800000> : vector<8xf32>
    %94 = vector.multi_reduction <maximumf>, %93, %cst_32 [1] : vector<8x8xf32> to vector<8xf32>
    %95 = vector.shape_cast %94 : vector<8xf32> to vector<8x1xf32>
    %96 = vector.broadcast %95 : vector<8x1xf32> to vector<8x8xf32>
    %97 = arith.subf %93, %96 : vector<8x8xf32>
    %98 = math.exp %97 : vector<8x8xf32>
    %cst_33 = arith.constant dense<0.000000e+00> : vector<8xf32>
    %99 = vector.multi_reduction <add>, %98, %cst_33 [1] : vector<8x8xf32> to vector<8xf32>
    %100 = vector.shape_cast %99 : vector<8xf32> to vector<8x1xf32>
    %101 = tpu.reciprocal %100 {approx = true} : vector<8x1xf32> -> vector<8x1xf32>
    %102 = vector.broadcast %101 : vector<8x1xf32> to vector<8x8xf32>
    %103 = arith.mulf %98, %102 : vector<8x8xf32>
    %cst_34 = arith.constant dense<0.000000e+00> : vector<8x8xf32>
    %104 = tpu.matmul %103, %90, %cst_34 {dimension_numbers = #tpu.dot_dimension_numbers<[1], [0], [0], [1], [0, 0, 1, 1], [], []>} : vector<8x8xf32>, vector<8x8xf32>, vector<8x8xf32> -> vector<8x8xf32>
    %c0_35 = arith.constant 0 : index
    %c16 = arith.constant 16 : index
    %105 = vector.load %arg20[%c0_35, %c16] : memref<16x32xf32, #tpu.memory_space<vmem>>, vector<8x8xf32>
    tpu.vector_store %arg20[%c0_35, %c16], %104 {strides = array<i32>} : memref<16x32xf32, #tpu.memory_space<vmem>>, vector<8x8xf32>,
    %106 = vector.extract_strided_slice %49 {offsets = [0, 24], sizes = [8, 8], strides = [1, 1]} : vector<8x32xf32> to vector<8x8xf32>
    %107 = vector.extract_strided_slice %50 {offsets = [0, 24], sizes = [8, 8], strides = [1, 1]} : vector<8x32xf32> to vector<8x8xf32>
    %108 = vector.extract_strided_slice %51 {offsets = [0, 24], sizes = [8, 8], strides = [1, 1]} : vector<8x32xf32> to vector<8x8xf32>
    %cst_36 = arith.constant dense<0.000000e+00> : vector<8x8xf32>
    %109 = tpu.matmul %106, %107, %cst_36 {dimension_numbers = #tpu.dot_dimension_numbers<[1], [1], [0], [0], [0, 0, 1, 0], [], []>} : vector<8x8xf32>, vector<8x8xf32>, vector<8x8xf32> -> vector<8x8xf32>
    %cst_37 = arith.constant -1.000000e+09 : f32
    %110 = vector.broadcast %cst_37 : f32 to vector<8x8xf32>
    %111 = arith.select %6, %109, %110 : vector<8x8xi1>, vector<8x8xf32>
    %cst_38 = arith.constant dense<0xFF800000> : vector<8xf32>
    %112 = vector.multi_reduction <maximumf>, %111, %cst_38 [1] : vector<8x8xf32> to vector<8xf32>
    %113 = vector.shape_cast %112 : vector<8xf32> to vector<8x1xf32>
    %114 = vector.broadcast %113 : vector<8x1xf32> to vector<8x8xf32>
    %115 = arith.subf %111, %114 : vector<8x8xf32>
    %116 = math.exp %115 : vector<8x8xf32>
    %cst_39 = arith.constant dense<0.000000e+00> : vector<8xf32>
    %117 = vector.multi_reduction <add>, %116, %cst_39 [1] : vector<8x8xf32> to vector<8xf32>
    %118 = vector.shape_cast %117 : vector<8xf32> to vector<8x1xf32>
    %119 = tpu.reciprocal %118 {approx = true} : vector<8x1xf32> -> vector<8x1xf32>
    %120 = vector.broadcast %119 : vector<8x1xf32> to vector<8x8xf32>
    %121 = arith.mulf %116, %120 : vector<8x8xf32>
    %cst_40 = arith.constant dense<0.000000e+00> : vector<8x8xf32>
    %122 = tpu.matmul %121, %108, %cst_40 {dimension_numbers = #tpu.dot_dimension_numbers<[1], [0], [0], [1], [0, 0, 1, 1], [], []>} : vector<8x8xf32>, vector<8x8xf32>, vector<8x8xf32> -> vector<8x8xf32>
    %c0_41 = arith.constant 0 : index
    %c24 = arith.constant 24 : index
    %123 = vector.load %arg20[%c0_41, %c24] : memref<16x32xf32, #tpu.memory_space<vmem>>, vector<8x8xf32>
    tpu.vector_store %arg20[%c0_41, %c24], %122 {strides = array<i32>} : memref<16x32xf32, #tpu.memory_space<vmem>>, vector<8x8xf32>,
    %124 = vector.extract_strided_slice %46 {offsets = [8, 0], sizes = [8, 32], strides = [1, 1]} : vector<16x32xf32> to vector<8x32xf32>
    %125 = vector.extract_strided_slice %47 {offsets = [8, 0], sizes = [8, 32], strides = [1, 1]} : vector<16x32xf32> to vector<8x32xf32>
    %126 = vector.extract_strided_slice %48 {offsets = [8, 0], sizes = [8, 32], strides = [1, 1]} : vector<16x32xf32> to vector<8x32xf32>
    %127 = vector.extract_strided_slice %124 {offsets = [0, 0], sizes = [8, 8], strides = [1, 1]} : vector<8x32xf32> to vector<8x8xf32>
    %128 = vector.extract_strided_slice %125 {offsets = [0, 0], sizes = [8, 8], strides = [1, 1]} : vector<8x32xf32> to vector<8x8xf32>
    %129 = vector.extract_strided_slice %126 {offsets = [0, 0], sizes = [8, 8], strides = [1, 1]} : vector<8x32xf32> to vector<8x8xf32>
    %cst_42 = arith.constant dense<0.000000e+00> : vector<8x8xf32>
    %130 = tpu.matmul %127, %128, %cst_42 {dimension_numbers = #tpu.dot_dimension_numbers<[1], [1], [0], [0], [0, 0, 1, 0], [], []>} : vector<8x8xf32>, vector<8x8xf32>, vector<8x8xf32> -> vector<8x8xf32>
    %cst_43 = arith.constant -1.000000e+09 : f32
    %131 = vector.broadcast %cst_43 : f32 to vector<8x8xf32>
    %132 = arith.select %6, %130, %131 : vector<8x8xi1>, vector<8x8xf32>
    %cst_44 = arith.constant dense<0xFF800000> : vector<8xf32>
    %133 = vector.multi_reduction <maximumf>, %132, %cst_44 [1] : vector<8x8xf32> to vector<8xf32>
    %134 = vector.shape_cast %133 : vector<8xf32> to vector<8x1xf32>
    %135 = vector.broadcast %134 : vector<8x1xf32> to vector<8x8xf32>
    %136 = arith.subf %132, %135 : vector<8x8xf32>
    %137 = math.exp %136 : vector<8x8xf32>
    %cst_45 = arith.constant dense<0.000000e+00> : vector<8xf32>
    %138 = vector.multi_reduction <add>, %137, %cst_45 [1] : vector<8x8xf32> to vector<8xf32>
    %139 = vector.shape_cast %138 : vector<8xf32> to vector<8x1xf32>
    %140 = tpu.reciprocal %139 {approx = true} : vector<8x1xf32> -> vector<8x1xf32>
    %141 = vector.broadcast %140 : vector<8x1xf32> to vector<8x8xf32>
    %142 = arith.mulf %137, %141 : vector<8x8xf32>
    %cst_46 = arith.constant dense<0.000000e+00> : vector<8x8xf32>
    %143 = tpu.matmul %142, %129, %cst_46 {dimension_numbers = #tpu.dot_dimension_numbers<[1], [0], [0], [1], [0, 0, 1, 1], [], []>} : vector<8x8xf32>, vector<8x8xf32>, vector<8x8xf32> -> vector<8x8xf32>
    %c8_47 = arith.constant 8 : index
    %c0_48 = arith.constant 0 : index
    %144 = vector.load %arg20[%c8_47, %c0_48] : memref<16x32xf32, #tpu.memory_space<vmem>>, vector<8x8xf32>
    tpu.vector_store %arg20[%c8_47, %c0_48], %143 {strides = array<i32>} : memref<16x32xf32, #tpu.memory_space<vmem>>, vector<8x8xf32>,
    %145 = vector.extract_strided_slice %124 {offsets = [0, 8], sizes = [8, 8], strides = [1, 1]} : vector<8x32xf32> to vector<8x8xf32>
    %146 = vector.extract_strided_slice %125 {offsets = [0, 8], sizes = [8, 8], strides = [1, 1]} : vector<8x32xf32> to vector<8x8xf32>
    %147 = vector.extract_strided_slice %126 {offsets = [0, 8], sizes = [8, 8], strides = [1, 1]} : vector<8x32xf32> to vector<8x8xf32>
    %cst_49 = arith.constant dense<0.000000e+00> : vector<8x8xf32>
    %148 = tpu.matmul %145, %146, %cst_49 {dimension_numbers = #tpu.dot_dimension_numbers<[1], [1], [0], [0], [0, 0, 1, 0], [], []>} : vector<8x8xf32>, vector<8x8xf32>, vector<8x8xf32> -> vector<8x8xf32>
    %cst_50 = arith.constant -1.000000e+09 : f32
    %149 = vector.broadcast %cst_50 : f32 to vector<8x8xf32>
    %150 = arith.select %6, %148, %149 : vector<8x8xi1>, vector<8x8xf32>
    %cst_51 = arith.constant dense<0xFF800000> : vector<8xf32>
    %151 = vector.multi_reduction <maximumf>, %150, %cst_51 [1] : vector<8x8xf32> to vector<8xf32>
    %152 = vector.shape_cast %151 : vector<8xf32> to vector<8x1xf32>
    %153 = vector.broadcast %152 : vector<8x1xf32> to vector<8x8xf32>
    %154 = arith.subf %150, %153 : vector<8x8xf32>
    %155 = math.exp %154 : vector<8x8xf32>
    %cst_52 = arith.constant dense<0.000000e+00> : vector<8xf32>
    %156 = vector.multi_reduction <add>, %155, %cst_52 [1] : vector<8x8xf32> to vector<8xf32>
    %157 = vector.shape_cast %156 : vector<8xf32> to vector<8x1xf32>
    %158 = tpu.reciprocal %157 {approx = true} : vector<8x1xf32> -> vector<8x1xf32>
    %159 = vector.broadcast %158 : vector<8x1xf32> to vector<8x8xf32>
    %160 = arith.mulf %155, %159 : vector<8x8xf32>
    %cst_53 = arith.constant dense<0.000000e+00> : vector<8x8xf32>
    %161 = tpu.matmul %160, %147, %cst_53 {dimension_numbers = #tpu.dot_dimension_numbers<[1], [0], [0], [1], [0, 0, 1, 1], [], []>} : vector<8x8xf32>, vector<8x8xf32>, vector<8x8xf32> -> vector<8x8xf32>
    %c8_54 = arith.constant 8 : index
    %c8_55 = arith.constant 8 : index
    %162 = vector.load %arg20[%c8_54, %c8_55] : memref<16x32xf32, #tpu.memory_space<vmem>>, vector<8x8xf32>
    tpu.vector_store %arg20[%c8_54, %c8_55], %161 {strides = array<i32>} : memref<16x32xf32, #tpu.memory_space<vmem>>, vector<8x8xf32>,
    %163 = vector.extract_strided_slice %124 {offsets = [0, 16], sizes = [8, 8], strides = [1, 1]} : vector<8x32xf32> to vector<8x8xf32>
    %164 = vector.extract_strided_slice %125 {offsets = [0, 16], sizes = [8, 8], strides = [1, 1]} : vector<8x32xf32> to vector<8x8xf32>
    %165 = vector.extract_strided_slice %126 {offsets = [0, 16], sizes = [8, 8], strides = [1, 1]} : vector<8x32xf32> to vector<8x8xf32>
    %cst_56 = arith.constant dense<0.000000e+00> : vector<8x8xf32>
    %166 = tpu.matmul %163, %164, %cst_56 {dimension_numbers = #tpu.dot_dimension_numbers<[1], [1], [0], [0], [0, 0, 1, 0], [], []>} : vector<8x8xf32>, vector<8x8xf32>, vector<8x8xf32> -> vector<8x8xf32>
    %cst_57 = arith.constant -1.000000e+09 : f32
    %167 = vector.broadcast %cst_57 : f32 to vector<8x8xf32>
    %168 = arith.select %6, %166, %167 : vector<8x8xi1>, vector<8x8xf32>
    %cst_58 = arith.constant dense<0xFF800000> : vector<8xf32>
    %169 = vector.multi_reduction <maximumf>, %168, %cst_58 [1] : vector<8x8xf32> to vector<8xf32>
    %170 = vector.shape_cast %169 : vector<8xf32> to vector<8x1xf32>
    %171 = vector.broadcast %170 : vector<8x1xf32> to vector<8x8xf32>
    %172 = arith.subf %168, %171 : vector<8x8xf32>
    %173 = math.exp %172 : vector<8x8xf32>
    %cst_59 = arith.constant dense<0.000000e+00> : vector<8xf32>
    %174 = vector.multi_reduction <add>, %173, %cst_59 [1] : vector<8x8xf32> to vector<8xf32>
    %175 = vector.shape_cast %174 : vector<8xf32> to vector<8x1xf32>
    %176 = tpu.reciprocal %175 {approx = true} : vector<8x1xf32> -> vector<8x1xf32>
    %177 = vector.broadcast %176 : vector<8x1xf32> to vector<8x8xf32>
    %178 = arith.mulf %173, %177 : vector<8x8xf32>
    %cst_60 = arith.constant dense<0.000000e+00> : vector<8x8xf32>
    %179 = tpu.matmul %178, %165, %cst_60 {dimension_numbers = #tpu.dot_dimension_numbers<[1], [0], [0], [1], [0, 0, 1, 1], [], []>} : vector<8x8xf32>, vector<8x8xf32>, vector<8x8xf32> -> vector<8x8xf32>
    %c8_61 = arith.constant 8 : index
    %c16_62 = arith.constant 16 : index
    %180 = vector.load %arg20[%c8_61, %c16_62] : memref<16x32xf32, #tpu.memory_space<vmem>>, vector<8x8xf32>
    tpu.vector_store %arg20[%c8_61, %c16_62], %179 {strides = array<i32>} : memref<16x32xf32, #tpu.memory_space<vmem>>, vector<8x8xf32>,
    %181 = vector.extract_strided_slice %124 {offsets = [0, 24], sizes = [8, 8], strides = [1, 1]} : vector<8x32xf32> to vector<8x8xf32>
    %182 = vector.extract_strided_slice %125 {offsets = [0, 24], sizes = [8, 8], strides = [1, 1]} : vector<8x32xf32> to vector<8x8xf32>
    %183 = vector.extract_strided_slice %126 {offsets = [0, 24], sizes = [8, 8], strides = [1, 1]} : vector<8x32xf32> to vector<8x8xf32>
    %cst_63 = arith.constant dense<0.000000e+00> : vector<8x8xf32>
    %184 = tpu.matmul %181, %182, %cst_63 {dimension_numbers = #tpu.dot_dimension_numbers<[1], [1], [0], [0], [0, 0, 1, 0], [], []>} : vector<8x8xf32>, vector<8x8xf32>, vector<8x8xf32> -> vector<8x8xf32>
    %cst_64 = arith.constant -1.000000e+09 : f32
    %185 = vector.broadcast %cst_64 : f32 to vector<8x8xf32>
    %186 = arith.select %6, %184, %185 : vector<8x8xi1>, vector<8x8xf32>
    %cst_65 = arith.constant dense<0xFF800000> : vector<8xf32>
    %187 = vector.multi_reduction <maximumf>, %186, %cst_65 [1] : vector<8x8xf32> to vector<8xf32>
    %188 = vector.shape_cast %187 : vector<8xf32> to vector<8x1xf32>
    %189 = vector.broadcast %188 : vector<8x1xf32> to vector<8x8xf32>
    %190 = arith.subf %186, %189 : vector<8x8xf32>
    %191 = math.exp %190 : vector<8x8xf32>
    %cst_66 = arith.constant dense<0.000000e+00> : vector<8xf32>
    %192 = vector.multi_reduction <add>, %191, %cst_66 [1] : vector<8x8xf32> to vector<8xf32>
    %193 = vector.shape_cast %192 : vector<8xf32> to vector<8x1xf32>
    %194 = tpu.reciprocal %193 {approx = true} : vector<8x1xf32> -> vector<8x1xf32>
    %195 = vector.broadcast %194 : vector<8x1xf32> to vector<8x8xf32>
    %196 = arith.mulf %191, %195 : vector<8x8xf32>
    %cst_67 = arith.constant dense<0.000000e+00> : vector<8x8xf32>
    %197 = tpu.matmul %196, %183, %cst_67 {dimension_numbers = #tpu.dot_dimension_numbers<[1], [0], [0], [1], [0, 0, 1, 1], [], []>} : vector<8x8xf32>, vector<8x8xf32>, vector<8x8xf32> -> vector<8x8xf32>
    %c8_68 = arith.constant 8 : index
    %c24_69 = arith.constant 24 : index
    %198 = vector.load %arg20[%c8_68, %c24_69] : memref<16x32xf32, #tpu.memory_space<vmem>>, vector<8x8xf32>
    tpu.vector_store %arg20[%c8_68, %c24_69], %197 {strides = array<i32>} : memref<16x32xf32, #tpu.memory_space<vmem>>, vector<8x8xf32>,
    %c0_70 = arith.constant 0 : index
    %c0_71 = arith.constant 0 : index
    %199 = vector.load %arg20[%c0_70, %c0_71] : memref<16x32xf32, #tpu.memory_space<vmem>>, vector<16x32xf32>
    %c0_72 = arith.constant 0 : index
    %c0_73 = arith.constant 0 : index
    %200 = vector.load %arg5[%c0_72, %c0_73] : memref<32x32xf32, #tpu.memory_space<vmem>>, vector<32x32xf32>
    %cst_74 = arith.constant dense<0.000000e+00> : vector<16x32xf32>
    %201 = tpu.matmul %199, %200, %cst_74 {dimension_numbers = #tpu.dot_dimension_numbers<[1], [0], [0], [1], [0, 0, 1, 1], [], []>} : vector<16x32xf32>, vector<32x32xf32>, vector<16x32xf32> -> vector<16x32xf32>
    %202 = arith.addf %1, %201 : vector<16x32xf32>
    %c0_75 = arith.constant 0 : index
    %c0_76 = arith.constant 0 : index
    %203 = vector.load %arg15[%c0_75, %c0_76] : memref<1x32xf32, #tpu.memory_space<vmem>>, vector<1x32xf32>
    %c0_77 = arith.constant 0 : index
    %c0_78 = arith.constant 0 : index
    %204 = vector.load %arg16[%c0_77, %c0_78] : memref<1x32xf32, #tpu.memory_space<vmem>>, vector<1x32xf32>
    %cst_79 = arith.constant dense<0.000000e+00> : vector<16xf32>
    %205 = vector.multi_reduction <add>, %202, %cst_79 [1] : vector<16x32xf32> to vector<16xf32>
    %206 = vector.shape_cast %205 : vector<16xf32> to vector<16x1xf32>
    %cst_80 = arith.constant 3.200000e+01 : f32
    %207 = vector.broadcast %cst_80 : f32 to vector<16x1xf32>
    %208 = arith.divf %206, %207 : vector<16x1xf32>
    %209 = vector.broadcast %208 : vector<16x1xf32> to vector<16x32xf32>
    %210 = arith.subf %202, %209 : vector<16x32xf32>
    %211 = arith.mulf %210, %210 : vector<16x32xf32>
    %cst_81 = arith.constant dense<0.000000e+00> : vector<16xf32>
    %212 = vector.multi_reduction <add>, %211, %cst_81 [1] : vector<16x32xf32> to vector<16xf32>
    %213 = vector.shape_cast %212 : vector<16xf32> to vector<16x1xf32>
    %cst_82 = arith.constant 3.100000e+01 : f32
    %214 = vector.broadcast %cst_82 : f32 to vector<16x1xf32>
    %215 = arith.divf %213, %214 : vector<16x1xf32>
    %216 = vector.broadcast %208 : vector<16x1xf32> to vector<16x32xf32>
    %217 = arith.subf %202, %216 : vector<16x32xf32>
    %218 = vector.broadcast %203 : vector<1x32xf32> to vector<16x32xf32>
    %219 = arith.mulf %218, %217 : vector<16x32xf32>
    %220 = math.sqrt %215 : vector<16x1xf32>
    %cst_83 = arith.constant 9.99999997E-7 : f32
    %221 = vector.broadcast %cst_83 : f32 to vector<16x1xf32>
    %222 = arith.addf %220, %221 : vector<16x1xf32>
    %223 = vector.broadcast %222 : vector<16x1xf32> to vector<16x32xf32>
    %224 = arith.divf %219, %223 : vector<16x32xf32>
    %225 = vector.broadcast %204 : vector<1x32xf32> to vector<16x32xf32>
    %226 = arith.addf %224, %225 : vector<16x32xf32>
    %c0_84 = arith.constant 0 : index
    %c0_85 = arith.constant 0 : index
    %227 = vector.load %arg6[%c0_84, %c0_85] : memref<32x32xf32, #tpu.memory_space<vmem>>, vector<32x32xf32>
    %cst_86 = arith.constant dense<0.000000e+00> : vector<16x32xf32>
    %228 = tpu.matmul %226, %227, %cst_86 {dimension_numbers = #tpu.dot_dimension_numbers<[1], [0], [0], [1], [0, 0, 1, 1], [], []>} : vector<16x32xf32>, vector<32x32xf32>, vector<16x32xf32> -> vector<16x32xf32>
    %c0_87 = arith.constant 0 : index
    %c0_88 = arith.constant 0 : index
    %229 = vector.load %arg7[%c0_87, %c0_88] : memref<32x64xf32, #tpu.memory_space<vmem>>, vector<32x64xf32>
    %cst_89 = arith.constant dense<0.000000e+00> : vector<32x64xf32>
    %230 = tpu.matmul %3, %229, %cst_89 {dimension_numbers = #tpu.dot_dimension_numbers<[1], [0], [0], [1], [0, 0, 1, 1], [], []>} : vector<32x32xf32>, vector<32x64xf32>, vector<32x64xf32> -> vector<32x64xf32>
    %231 = vector.extract_strided_slice %230 {offsets = [0, 0], sizes = [32, 32], strides = [1, 1]} : vector<32x64xf32> to vector<32x32xf32>
    %232 = vector.extract_strided_slice %230 {offsets = [0, 32], sizes = [32, 32], strides = [1, 1]} : vector<32x64xf32> to vector<32x32xf32>
    %233 = vector.extract_strided_slice %228 {offsets = [0, 0], sizes = [8, 32], strides = [1, 1]} : vector<16x32xf32> to vector<8x32xf32>
    %234 = vector.extract_strided_slice %231 {offsets = [0, 0], sizes = [16, 32], strides = [1, 1]} : vector<32x32xf32> to vector<16x32xf32>
    %235 = vector.extract_strided_slice %232 {offsets = [0, 0], sizes = [16, 32], strides = [1, 1]} : vector<32x32xf32> to vector<16x32xf32>
    %236 = vector.extract_strided_slice %233 {offsets = [0, 0], sizes = [8, 8], strides = [1, 1]} : vector<8x32xf32> to vector<8x8xf32>
    %237 = vector.extract_strided_slice %234 {offsets = [0, 0], sizes = [16, 8], strides = [1, 1]} : vector<16x32xf32> to vector<16x8xf32>
    %238 = vector.extract_strided_slice %235 {offsets = [0, 0], sizes = [16, 8], strides = [1, 1]} : vector<16x32xf32> to vector<16x8xf32>
    %cst_90 = arith.constant dense<0.000000e+00> : vector<8x16xf32>
    %239 = tpu.matmul %236, %237, %cst_90 {dimension_numbers = #tpu.dot_dimension_numbers<[1], [1], [0], [0], [0, 0, 1, 0], [], []>} : vector<8x8xf32>, vector<16x8xf32>, vector<8x16xf32> -> vector<8x16xf32>
    %cst_91 = arith.constant -1.000000e+09 : f32
    %240 = vector.broadcast %cst_91 : f32 to vector<8x16xf32>
    %241 = arith.select %13, %239, %240 : vector<8x16xi1>, vector<8x16xf32>
    %cst_92 = arith.constant dense<0xFF800000> : vector<8xf32>
    %242 = vector.multi_reduction <maximumf>, %241, %cst_92 [1] : vector<8x16xf32> to vector<8xf32>
    %243 = vector.shape_cast %242 : vector<8xf32> to vector<8x1xf32>
    %244 = vector.broadcast %243 : vector<8x1xf32> to vector<8x16xf32>
    %245 = arith.subf %241, %244 : vector<8x16xf32>
    %246 = math.exp %245 : vector<8x16xf32>
    %cst_93 = arith.constant dense<0.000000e+00> : vector<8xf32>
    %247 = vector.multi_reduction <add>, %246, %cst_93 [1] : vector<8x16xf32> to vector<8xf32>
    %248 = vector.shape_cast %247 : vector<8xf32> to vector<8x1xf32>
    %249 = tpu.reciprocal %248 {approx = true} : vector<8x1xf32> -> vector<8x1xf32>
    %250 = vector.broadcast %249 : vector<8x1xf32> to vector<8x16xf32>
    %251 = arith.mulf %246, %250 : vector<8x16xf32>
    %cst_94 = arith.constant dense<0.000000e+00> : vector<8x8xf32>
    %252 = tpu.matmul %251, %238, %cst_94 {dimension_numbers = #tpu.dot_dimension_numbers<[1], [0], [0], [1], [0, 0, 1, 1], [], []>} : vector<8x16xf32>, vector<16x8xf32>, vector<8x8xf32> -> vector<8x8xf32>
    %c0_95 = arith.constant 0 : index
    %c0_96 = arith.constant 0 : index
    %253 = vector.load %arg20[%c0_95, %c0_96] : memref<16x32xf32, #tpu.memory_space<vmem>>, vector<8x8xf32>
    tpu.vector_store %arg20[%c0_95, %c0_96], %252 {strides = array<i32>} : memref<16x32xf32, #tpu.memory_space<vmem>>, vector<8x8xf32>,
    %254 = vector.extract_strided_slice %233 {offsets = [0, 8], sizes = [8, 8], strides = [1, 1]} : vector<8x32xf32> to vector<8x8xf32>
    %255 = vector.extract_strided_slice %234 {offsets = [0, 8], sizes = [16, 8], strides = [1, 1]} : vector<16x32xf32> to vector<16x8xf32>
    %256 = vector.extract_strided_slice %235 {offsets = [0, 8], sizes = [16, 8], strides = [1, 1]} : vector<16x32xf32> to vector<16x8xf32>
    %cst_97 = arith.constant dense<0.000000e+00> : vector<8x16xf32>
    %257 = tpu.matmul %254, %255, %cst_97 {dimension_numbers = #tpu.dot_dimension_numbers<[1], [1], [0], [0], [0, 0, 1, 0], [], []>} : vector<8x8xf32>, vector<16x8xf32>, vector<8x16xf32> -> vector<8x16xf32>
    %cst_98 = arith.constant -1.000000e+09 : f32
    %258 = vector.broadcast %cst_98 : f32 to vector<8x16xf32>
    %259 = arith.select %13, %257, %258 : vector<8x16xi1>, vector<8x16xf32>
    %cst_99 = arith.constant dense<0xFF800000> : vector<8xf32>
    %260 = vector.multi_reduction <maximumf>, %259, %cst_99 [1] : vector<8x16xf32> to vector<8xf32>
    %261 = vector.shape_cast %260 : vector<8xf32> to vector<8x1xf32>
    %262 = vector.broadcast %261 : vector<8x1xf32> to vector<8x16xf32>
    %263 = arith.subf %259, %262 : vector<8x16xf32>
    %264 = math.exp %263 : vector<8x16xf32>
    %cst_100 = arith.constant dense<0.000000e+00> : vector<8xf32>
    %265 = vector.multi_reduction <add>, %264, %cst_100 [1] : vector<8x16xf32> to vector<8xf32>
    %266 = vector.shape_cast %265 : vector<8xf32> to vector<8x1xf32>
    %267 = tpu.reciprocal %266 {approx = true} : vector<8x1xf32> -> vector<8x1xf32>
    %268 = vector.broadcast %267 : vector<8x1xf32> to vector<8x16xf32>
    %269 = arith.mulf %264, %268 : vector<8x16xf32>
    %cst_101 = arith.constant dense<0.000000e+00> : vector<8x8xf32>
    %270 = tpu.matmul %269, %256, %cst_101 {dimension_numbers = #tpu.dot_dimension_numbers<[1], [0], [0], [1], [0, 0, 1, 1], [], []>} : vector<8x16xf32>, vector<16x8xf32>, vector<8x8xf32> -> vector<8x8xf32>
    %c0_102 = arith.constant 0 : index
    %c8_103 = arith.constant 8 : index
    %271 = vector.load %arg20[%c0_102, %c8_103] : memref<16x32xf32, #tpu.memory_space<vmem>>, vector<8x8xf32>
    tpu.vector_store %arg20[%c0_102, %c8_103], %270 {strides = array<i32>} : memref<16x32xf32, #tpu.memory_space<vmem>>, vector<8x8xf32>,
    %272 = vector.extract_strided_slice %233 {offsets = [0, 16], sizes = [8, 8], strides = [1, 1]} : vector<8x32xf32> to vector<8x8xf32>
    %273 = vector.extract_strided_slice %234 {offsets = [0, 16], sizes = [16, 8], strides = [1, 1]} : vector<16x32xf32> to vector<16x8xf32>
    %274 = vector.extract_strided_slice %235 {offsets = [0, 16], sizes = [16, 8], strides = [1, 1]} : vector<16x32xf32> to vector<16x8xf32>
    %cst_104 = arith.constant dense<0.000000e+00> : vector<8x16xf32>
    %275 = tpu.matmul %272, %273, %cst_104 {dimension_numbers = #tpu.dot_dimension_numbers<[1], [1], [0], [0], [0, 0, 1, 0], [], []>} : vector<8x8xf32>, vector<16x8xf32>, vector<8x16xf32> -> vector<8x16xf32>
    %cst_105 = arith.constant -1.000000e+09 : f32
    %276 = vector.broadcast %cst_105 : f32 to vector<8x16xf32>
    %277 = arith.select %13, %275, %276 : vector<8x16xi1>, vector<8x16xf32>
    %cst_106 = arith.constant dense<0xFF800000> : vector<8xf32>
    %278 = vector.multi_reduction <maximumf>, %277, %cst_106 [1] : vector<8x16xf32> to vector<8xf32>
    %279 = vector.shape_cast %278 : vector<8xf32> to vector<8x1xf32>
    %280 = vector.broadcast %279 : vector<8x1xf32> to vector<8x16xf32>
    %281 = arith.subf %277, %280 : vector<8x16xf32>
    %282 = math.exp %281 : vector<8x16xf32>
    %cst_107 = arith.constant dense<0.000000e+00> : vector<8xf32>
    %283 = vector.multi_reduction <add>, %282, %cst_107 [1] : vector<8x16xf32> to vector<8xf32>
    %284 = vector.shape_cast %283 : vector<8xf32> to vector<8x1xf32>
    %285 = tpu.reciprocal %284 {approx = true} : vector<8x1xf32> -> vector<8x1xf32>
    %286 = vector.broadcast %285 : vector<8x1xf32> to vector<8x16xf32>
    %287 = arith.mulf %282, %286 : vector<8x16xf32>
    %cst_108 = arith.constant dense<0.000000e+00> : vector<8x8xf32>
    %288 = tpu.matmul %287, %274, %cst_108 {dimension_numbers = #tpu.dot_dimension_numbers<[1], [0], [0], [1], [0, 0, 1, 1], [], []>} : vector<8x16xf32>, vector<16x8xf32>, vector<8x8xf32> -> vector<8x8xf32>
    %c0_109 = arith.constant 0 : index
    %c16_110 = arith.constant 16 : index
    %289 = vector.load %arg20[%c0_109, %c16_110] : memref<16x32xf32, #tpu.memory_space<vmem>>, vector<8x8xf32>
    tpu.vector_store %arg20[%c0_109, %c16_110], %288 {strides = array<i32>} : memref<16x32xf32, #tpu.memory_space<vmem>>, vector<8x8xf32>,
    %290 = vector.extract_strided_slice %233 {offsets = [0, 24], sizes = [8, 8], strides = [1, 1]} : vector<8x32xf32> to vector<8x8xf32>
    %291 = vector.extract_strided_slice %234 {offsets = [0, 24], sizes = [16, 8], strides = [1, 1]} : vector<16x32xf32> to vector<16x8xf32>
    %292 = vector.extract_strided_slice %235 {offsets = [0, 24], sizes = [16, 8], strides = [1, 1]} : vector<16x32xf32> to vector<16x8xf32>
    %cst_111 = arith.constant dense<0.000000e+00> : vector<8x16xf32>
    %293 = tpu.matmul %290, %291, %cst_111 {dimension_numbers = #tpu.dot_dimension_numbers<[1], [1], [0], [0], [0, 0, 1, 0], [], []>} : vector<8x8xf32>, vector<16x8xf32>, vector<8x16xf32> -> vector<8x16xf32>
    %cst_112 = arith.constant -1.000000e+09 : f32
    %294 = vector.broadcast %cst_112 : f32 to vector<8x16xf32>
    %295 = arith.select %13, %293, %294 : vector<8x16xi1>, vector<8x16xf32>
    %cst_113 = arith.constant dense<0xFF800000> : vector<8xf32>
    %296 = vector.multi_reduction <maximumf>, %295, %cst_113 [1] : vector<8x16xf32> to vector<8xf32>
    %297 = vector.shape_cast %296 : vector<8xf32> to vector<8x1xf32>
    %298 = vector.broadcast %297 : vector<8x1xf32> to vector<8x16xf32>
    %299 = arith.subf %295, %298 : vector<8x16xf32>
    %300 = math.exp %299 : vector<8x16xf32>
    %cst_114 = arith.constant dense<0.000000e+00> : vector<8xf32>
    %301 = vector.multi_reduction <add>, %300, %cst_114 [1] : vector<8x16xf32> to vector<8xf32>
    %302 = vector.shape_cast %301 : vector<8xf32> to vector<8x1xf32>
    %303 = tpu.reciprocal %302 {approx = true} : vector<8x1xf32> -> vector<8x1xf32>
    %304 = vector.broadcast %303 : vector<8x1xf32> to vector<8x16xf32>
    %305 = arith.mulf %300, %304 : vector<8x16xf32>
    %cst_115 = arith.constant dense<0.000000e+00> : vector<8x8xf32>
    %306 = tpu.matmul %305, %292, %cst_115 {dimension_numbers = #tpu.dot_dimension_numbers<[1], [0], [0], [1], [0, 0, 1, 1], [], []>} : vector<8x16xf32>, vector<16x8xf32>, vector<8x8xf32> -> vector<8x8xf32>
    %c0_116 = arith.constant 0 : index
    %c24_117 = arith.constant 24 : index
    %307 = vector.load %arg20[%c0_116, %c24_117] : memref<16x32xf32, #tpu.memory_space<vmem>>, vector<8x8xf32>
    tpu.vector_store %arg20[%c0_116, %c24_117], %306 {strides = array<i32>} : memref<16x32xf32, #tpu.memory_space<vmem>>, vector<8x8xf32>,
    %308 = vector.extract_strided_slice %228 {offsets = [8, 0], sizes = [8, 32], strides = [1, 1]} : vector<16x32xf32> to vector<8x32xf32>
    %309 = vector.extract_strided_slice %231 {offsets = [16, 0], sizes = [16, 32], strides = [1, 1]} : vector<32x32xf32> to vector<16x32xf32>
    %310 = vector.extract_strided_slice %232 {offsets = [16, 0], sizes = [16, 32], strides = [1, 1]} : vector<32x32xf32> to vector<16x32xf32>
    %311 = vector.extract_strided_slice %308 {offsets = [0, 0], sizes = [8, 8], strides = [1, 1]} : vector<8x32xf32> to vector<8x8xf32>
    %312 = vector.extract_strided_slice %309 {offsets = [0, 0], sizes = [16, 8], strides = [1, 1]} : vector<16x32xf32> to vector<16x8xf32>
    %313 = vector.extract_strided_slice %310 {offsets = [0, 0], sizes = [16, 8], strides = [1, 1]} : vector<16x32xf32> to vector<16x8xf32>
    %cst_118 = arith.constant dense<0.000000e+00> : vector<8x16xf32>
    %314 = tpu.matmul %311, %312, %cst_118 {dimension_numbers = #tpu.dot_dimension_numbers<[1], [1], [0], [0], [0, 0, 1, 0], [], []>} : vector<8x8xf32>, vector<16x8xf32>, vector<8x16xf32> -> vector<8x16xf32>
    %cst_119 = arith.constant -1.000000e+09 : f32
    %315 = vector.broadcast %cst_119 : f32 to vector<8x16xf32>
    %316 = arith.select %19, %314, %315 : vector<8x16xi1>, vector<8x16xf32>
    %cst_120 = arith.constant dense<0xFF800000> : vector<8xf32>
    %317 = vector.multi_reduction <maximumf>, %316, %cst_120 [1] : vector<8x16xf32> to vector<8xf32>
    %318 = vector.shape_cast %317 : vector<8xf32> to vector<8x1xf32>
    %319 = vector.broadcast %318 : vector<8x1xf32> to vector<8x16xf32>
    %320 = arith.subf %316, %319 : vector<8x16xf32>
    %321 = math.exp %320 : vector<8x16xf32>
    %cst_121 = arith.constant dense<0.000000e+00> : vector<8xf32>
    %322 = vector.multi_reduction <add>, %321, %cst_121 [1] : vector<8x16xf32> to vector<8xf32>
    %323 = vector.shape_cast %322 : vector<8xf32> to vector<8x1xf32>
    %324 = tpu.reciprocal %323 {approx = true} : vector<8x1xf32> -> vector<8x1xf32>
    %325 = vector.broadcast %324 : vector<8x1xf32> to vector<8x16xf32>
    %326 = arith.mulf %321, %325 : vector<8x16xf32>
    %cst_122 = arith.constant dense<0.000000e+00> : vector<8x8xf32>
    %327 = tpu.matmul %326, %313, %cst_122 {dimension_numbers = #tpu.dot_dimension_numbers<[1], [0], [0], [1], [0, 0, 1, 1], [], []>} : vector<8x16xf32>, vector<16x8xf32>, vector<8x8xf32> -> vector<8x8xf32>
    %c8_123 = arith.constant 8 : index
    %c0_124 = arith.constant 0 : index
    %328 = vector.load %arg20[%c8_123, %c0_124] : memref<16x32xf32, #tpu.memory_space<vmem>>, vector<8x8xf32>
    tpu.vector_store %arg20[%c8_123, %c0_124], %327 {strides = array<i32>} : memref<16x32xf32, #tpu.memory_space<vmem>>, vector<8x8xf32>,
    %329 = vector.extract_strided_slice %308 {offsets = [0, 8], sizes = [8, 8], strides = [1, 1]} : vector<8x32xf32> to vector<8x8xf32>
    %330 = vector.extract_strided_slice %309 {offsets = [0, 8], sizes = [16, 8], strides = [1, 1]} : vector<16x32xf32> to vector<16x8xf32>
    %331 = vector.extract_strided_slice %310 {offsets = [0, 8], sizes = [16, 8], strides = [1, 1]} : vector<16x32xf32> to vector<16x8xf32>
    %cst_125 = arith.constant dense<0.000000e+00> : vector<8x16xf32>
    %332 = tpu.matmul %329, %330, %cst_125 {dimension_numbers = #tpu.dot_dimension_numbers<[1], [1], [0], [0], [0, 0, 1, 0], [], []>} : vector<8x8xf32>, vector<16x8xf32>, vector<8x16xf32> -> vector<8x16xf32>
    %cst_126 = arith.constant -1.000000e+09 : f32
    %333 = vector.broadcast %cst_126 : f32 to vector<8x16xf32>
    %334 = arith.select %19, %332, %333 : vector<8x16xi1>, vector<8x16xf32>
    %cst_127 = arith.constant dense<0xFF800000> : vector<8xf32>
    %335 = vector.multi_reduction <maximumf>, %334, %cst_127 [1] : vector<8x16xf32> to vector<8xf32>
    %336 = vector.shape_cast %335 : vector<8xf32> to vector<8x1xf32>
    %337 = vector.broadcast %336 : vector<8x1xf32> to vector<8x16xf32>
    %338 = arith.subf %334, %337 : vector<8x16xf32>
    %339 = math.exp %338 : vector<8x16xf32>
    %cst_128 = arith.constant dense<0.000000e+00> : vector<8xf32>
    %340 = vector.multi_reduction <add>, %339, %cst_128 [1] : vector<8x16xf32> to vector<8xf32>
    %341 = vector.shape_cast %340 : vector<8xf32> to vector<8x1xf32>
    %342 = tpu.reciprocal %341 {approx = true} : vector<8x1xf32> -> vector<8x1xf32>
    %343 = vector.broadcast %342 : vector<8x1xf32> to vector<8x16xf32>
    %344 = arith.mulf %339, %343 : vector<8x16xf32>
    %cst_129 = arith.constant dense<0.000000e+00> : vector<8x8xf32>
    %345 = tpu.matmul %344, %331, %cst_129 {dimension_numbers = #tpu.dot_dimension_numbers<[1], [0], [0], [1], [0, 0, 1, 1], [], []>} : vector<8x16xf32>, vector<16x8xf32>, vector<8x8xf32> -> vector<8x8xf32>
    %c8_130 = arith.constant 8 : index
    %c8_131 = arith.constant 8 : index
    %346 = vector.load %arg20[%c8_130, %c8_131] : memref<16x32xf32, #tpu.memory_space<vmem>>, vector<8x8xf32>
    tpu.vector_store %arg20[%c8_130, %c8_131], %345 {strides = array<i32>} : memref<16x32xf32, #tpu.memory_space<vmem>>, vector<8x8xf32>,
    %347 = vector.extract_strided_slice %308 {offsets = [0, 16], sizes = [8, 8], strides = [1, 1]} : vector<8x32xf32> to vector<8x8xf32>
    %348 = vector.extract_strided_slice %309 {offsets = [0, 16], sizes = [16, 8], strides = [1, 1]} : vector<16x32xf32> to vector<16x8xf32>
    %349 = vector.extract_strided_slice %310 {offsets = [0, 16], sizes = [16, 8], strides = [1, 1]} : vector<16x32xf32> to vector<16x8xf32>
    %cst_132 = arith.constant dense<0.000000e+00> : vector<8x16xf32>
    %350 = tpu.matmul %347, %348, %cst_132 {dimension_numbers = #tpu.dot_dimension_numbers<[1], [1], [0], [0], [0, 0, 1, 0], [], []>} : vector<8x8xf32>, vector<16x8xf32>, vector<8x16xf32> -> vector<8x16xf32>
    %cst_133 = arith.constant -1.000000e+09 : f32
    %351 = vector.broadcast %cst_133 : f32 to vector<8x16xf32>
    %352 = arith.select %19, %350, %351 : vector<8x16xi1>, vector<8x16xf32>
    %cst_134 = arith.constant dense<0xFF800000> : vector<8xf32>
    %353 = vector.multi_reduction <maximumf>, %352, %cst_134 [1] : vector<8x16xf32> to vector<8xf32>
    %354 = vector.shape_cast %353 : vector<8xf32> to vector<8x1xf32>
    %355 = vector.broadcast %354 : vector<8x1xf32> to vector<8x16xf32>
    %356 = arith.subf %352, %355 : vector<8x16xf32>
    %357 = math.exp %356 : vector<8x16xf32>
    %cst_135 = arith.constant dense<0.000000e+00> : vector<8xf32>
    %358 = vector.multi_reduction <add>, %357, %cst_135 [1] : vector<8x16xf32> to vector<8xf32>
    %359 = vector.shape_cast %358 : vector<8xf32> to vector<8x1xf32>
    %360 = tpu.reciprocal %359 {approx = true} : vector<8x1xf32> -> vector<8x1xf32>
    %361 = vector.broadcast %360 : vector<8x1xf32> to vector<8x16xf32>
    %362 = arith.mulf %357, %361 : vector<8x16xf32>
    %cst_136 = arith.constant dense<0.000000e+00> : vector<8x8xf32>
    %363 = tpu.matmul %362, %349, %cst_136 {dimension_numbers = #tpu.dot_dimension_numbers<[1], [0], [0], [1], [0, 0, 1, 1], [], []>} : vector<8x16xf32>, vector<16x8xf32>, vector<8x8xf32> -> vector<8x8xf32>
    %c8_137 = arith.constant 8 : index
    %c16_138 = arith.constant 16 : index
    %364 = vector.load %arg20[%c8_137, %c16_138] : memref<16x32xf32, #tpu.memory_space<vmem>>, vector<8x8xf32>
    tpu.vector_store %arg20[%c8_137, %c16_138], %363 {strides = array<i32>} : memref<16x32xf32, #tpu.memory_space<vmem>>, vector<8x8xf32>,
    %365 = vector.extract_strided_slice %308 {offsets = [0, 24], sizes = [8, 8], strides = [1, 1]} : vector<8x32xf32> to vector<8x8xf32>
    %366 = vector.extract_strided_slice %309 {offsets = [0, 24], sizes = [16, 8], strides = [1, 1]} : vector<16x32xf32> to vector<16x8xf32>
    %367 = vector.extract_strided_slice %310 {offsets = [0, 24], sizes = [16, 8], strides = [1, 1]} : vector<16x32xf32> to vector<16x8xf32>
    %cst_139 = arith.constant dense<0.000000e+00> : vector<8x16xf32>
    %368 = tpu.matmul %365, %366, %cst_139 {dimension_numbers = #tpu.dot_dimension_numbers<[1], [1], [0], [0], [0, 0, 1, 0], [], []>} : vector<8x8xf32>, vector<16x8xf32>, vector<8x16xf32> -> vector<8x16xf32>
    %cst_140 = arith.constant -1.000000e+09 : f32
    %369 = vector.broadcast %cst_140 : f32 to vector<8x16xf32>
    %370 = arith.select %19, %368, %369 : vector<8x16xi1>, vector<8x16xf32>
    %cst_141 = arith.constant dense<0xFF800000> : vector<8xf32>
    %371 = vector.multi_reduction <maximumf>, %370, %cst_141 [1] : vector<8x16xf32> to vector<8xf32>
    %372 = vector.shape_cast %371 : vector<8xf32> to vector<8x1xf32>
    %373 = vector.broadcast %372 : vector<8x1xf32> to vector<8x16xf32>
    %374 = arith.subf %370, %373 : vector<8x16xf32>
    %375 = math.exp %374 : vector<8x16xf32>
    %cst_142 = arith.constant dense<0.000000e+00> : vector<8xf32>
    %376 = vector.multi_reduction <add>, %375, %cst_142 [1] : vector<8x16xf32> to vector<8xf32>
    %377 = vector.shape_cast %376 : vector<8xf32> to vector<8x1xf32>
    %378 = tpu.reciprocal %377 {approx = true} : vector<8x1xf32> -> vector<8x1xf32>
    %379 = vector.broadcast %378 : vector<8x1xf32> to vector<8x16xf32>
    %380 = arith.mulf %375, %379 : vector<8x16xf32>
    %cst_143 = arith.constant dense<0.000000e+00> : vector<8x8xf32>
    %381 = tpu.matmul %380, %367, %cst_143 {dimension_numbers = #tpu.dot_dimension_numbers<[1], [0], [0], [1], [0, 0, 1, 1], [], []>} : vector<8x16xf32>, vector<16x8xf32>, vector<8x8xf32> -> vector<8x8xf32>
    %c8_144 = arith.constant 8 : index
    %c24_145 = arith.constant 24 : index
    %382 = vector.load %arg20[%c8_144, %c24_145] : memref<16x32xf32, #tpu.memory_space<vmem>>, vector<8x8xf32>
    tpu.vector_store %arg20[%c8_144, %c24_145], %381 {strides = array<i32>} : memref<16x32xf32, #tpu.memory_space<vmem>>, vector<8x8xf32>,
    %c0_146 = arith.constant 0 : index
    %c0_147 = arith.constant 0 : index
    %383 = vector.load %arg20[%c0_146, %c0_147] : memref<16x32xf32, #tpu.memory_space<vmem>>, vector<16x32xf32>
    %c0_148 = arith.constant 0 : index
    %c0_149 = arith.constant 0 : index
    %384 = vector.load %arg8[%c0_148, %c0_149] : memref<32x32xf32, #tpu.memory_space<vmem>>, vector<32x32xf32>
    %cst_150 = arith.constant dense<0.000000e+00> : vector<16x32xf32>
    %385 = tpu.matmul %383, %384, %cst_150 {dimension_numbers = #tpu.dot_dimension_numbers<[1], [0], [0], [1], [0, 0, 1, 1], [], []>} : vector<16x32xf32>, vector<32x32xf32>, vector<16x32xf32> -> vector<16x32xf32>
    %386 = arith.addf %202, %385 : vector<16x32xf32>
    %c0_151 = arith.constant 0 : index
    %c0_152 = arith.constant 0 : index
    %387 = vector.load %arg17[%c0_151, %c0_152] : memref<1x32xf32, #tpu.memory_space<vmem>>, vector<1x32xf32>
    %c0_153 = arith.constant 0 : index
    %c0_154 = arith.constant 0 : index
    %388 = vector.load %arg18[%c0_153, %c0_154] : memref<1x32xf32, #tpu.memory_space<vmem>>, vector<1x32xf32>
    %cst_155 = arith.constant dense<0.000000e+00> : vector<16xf32>
    %389 = vector.multi_reduction <add>, %386, %cst_155 [1] : vector<16x32xf32> to vector<16xf32>
    %390 = vector.shape_cast %389 : vector<16xf32> to vector<16x1xf32>
    %cst_156 = arith.constant 3.200000e+01 : f32
    %391 = vector.broadcast %cst_156 : f32 to vector<16x1xf32>
    %392 = arith.divf %390, %391 : vector<16x1xf32>
    %393 = vector.broadcast %392 : vector<16x1xf32> to vector<16x32xf32>
    %394 = arith.subf %386, %393 : vector<16x32xf32>
    %395 = arith.mulf %394, %394 : vector<16x32xf32>
    %cst_157 = arith.constant dense<0.000000e+00> : vector<16xf32>
    %396 = vector.multi_reduction <add>, %395, %cst_157 [1] : vector<16x32xf32> to vector<16xf32>
    %397 = vector.shape_cast %396 : vector<16xf32> to vector<16x1xf32>
    %cst_158 = arith.constant 3.100000e+01 : f32
    %398 = vector.broadcast %cst_158 : f32 to vector<16x1xf32>
    %399 = arith.divf %397, %398 : vector<16x1xf32>
    %400 = vector.broadcast %392 : vector<16x1xf32> to vector<16x32xf32>
    %401 = arith.subf %386, %400 : vector<16x32xf32>
    %402 = vector.broadcast %387 : vector<1x32xf32> to vector<16x32xf32>
    %403 = arith.mulf %402, %401 : vector<16x32xf32>
    %404 = math.sqrt %399 : vector<16x1xf32>
    %cst_159 = arith.constant 9.99999997E-7 : f32
    %405 = vector.broadcast %cst_159 : f32 to vector<16x1xf32>
    %406 = arith.addf %404, %405 : vector<16x1xf32>
    %407 = vector.broadcast %406 : vector<16x1xf32> to vector<16x32xf32>
    %408 = arith.divf %403, %407 : vector<16x32xf32>
    %409 = vector.broadcast %388 : vector<1x32xf32> to vector<16x32xf32>
    %410 = arith.addf %408, %409 : vector<16x32xf32>
    %c0_160 = arith.constant 0 : index
    %c0_161 = arith.constant 0 : index
    %411 = vector.load %arg9[%c0_160, %c0_161] : memref<32x64xf32, #tpu.memory_space<vmem>>, vector<32x64xf32>
    %cst_162 = arith.constant dense<0.000000e+00> : vector<16x64xf32>
    %412 = tpu.matmul %410, %411, %cst_162 {dimension_numbers = #tpu.dot_dimension_numbers<[1], [0], [0], [1], [0, 0, 1, 1], [], []>} : vector<16x32xf32>, vector<32x64xf32>, vector<16x64xf32> -> vector<16x64xf32>
    %c0_163 = arith.constant 0 : index
    %c0_164 = arith.constant 0 : index
    %413 = vector.load %arg10[%c0_163, %c0_164] : memref<1x64xf32, #tpu.memory_space<vmem>>, vector<1x64xf32>
    %414 = vector.broadcast %413 : vector<1x64xf32> to vector<16x64xf32>
    %415 = arith.addf %412, %414 : vector<16x64xf32>
    %cst_165 = arith.constant 0.000000e+00 : f32
    %416 = vector.broadcast %cst_165 : f32 to vector<16x64xf32>
    %417 = arith.maximumf %415, %416 : vector<16x64xf32>
    %c0_166 = arith.constant 0 : index
    %c0_167 = arith.constant 0 : index
    %418 = vector.load %arg11[%c0_166, %c0_167] : memref<64x32xf32, #tpu.memory_space<vmem>>, vector<64x32xf32>
    %cst_168 = arith.constant dense<0.000000e+00> : vector<16x32xf32>
    %419 = tpu.matmul %417, %418, %cst_168 {dimension_numbers = #tpu.dot_dimension_numbers<[1], [0], [0], [1], [0, 0, 1, 1], [], []>} : vector<16x64xf32>, vector<64x32xf32>, vector<16x32xf32> -> vector<16x32xf32>
    %420 = arith.addf %386, %419 : vector<16x32xf32>
    %c0_169 = arith.constant 0 : index
    %c0_170 = arith.constant 0 : index
    %421 = vector.load %arg12[%c0_169, %c0_170] : memref<1x32xf32, #tpu.memory_space<vmem>>, vector<1x32xf32>
    %422 = vector.broadcast %421 : vector<1x32xf32> to vector<16x32xf32>
    %423 = arith.addf %420, %422 : vector<16x32xf32>
    %424 = vector.shape_cast %423 : vector<16x32xf32> to vector<2x8x32xf32>
    %c0_171 = arith.constant 0 : index
    %c0_172 = arith.constant 0 : index
    %c0_173 = arith.constant 0 : index
    %425 = vector.load %arg19[%c0_171, %c0_172, %c0_173] : memref<2x8x32xf32, #tpu.memory_space<vmem>>, vector<2x8x32xf32>
    tpu.vector_store %arg19[%c0_171, %c0_172, %c0_173], %424 {strides = array<i32>} : memref<2x8x32xf32, #tpu.memory_space<vmem>>, vector<2x8x32xf32>,
    return
  }
  func.func @transform_0(%arg0: i32, %arg1: memref<2xi32, #tpu.memory_space<smem>>) -> (i32, i32, i32) {
    %c0_i32 = arith.constant 0 : i32
    %c0_i32_0 = arith.constant 0 : i32
    %c0_i32_1 = arith.constant 0 : i32
    return %arg0, %c0_i32, %c0_i32_0 : i32, i32, i32
  }
  func.func @transform_1(%arg0: i32, %arg1: memref<2xi32, #tpu.memory_space<smem>>) -> (i32, i32, i32) {
    %c0_i32 = arith.constant 0 : i32
    %c0_i32_0 = arith.constant 0 : i32
    %c0_i32_1 = arith.constant 0 : i32
    return %arg0, %c0_i32, %c0_i32_0 : i32, i32, i32
  }
  func.func @transform_2(%arg0: i32, %arg1: memref<2xi32, #tpu.memory_space<smem>>) -> (i32, i32) {
    %c0_i32 = arith.constant 0 : i32
    %c0_i32_0 = arith.constant 0 : i32
    %c0_i32_1 = arith.constant 0 : i32
    return %c0_i32, %c0_i32_0 : i32, i32
  }
  func.func @transform_3(%arg0: i32, %arg1: memref<2xi32, #tpu.memory_space<smem>>) -> (i32, i32) {
    %c0_i32 = arith.constant 0 : i32
    %c0_i32_0 = arith.constant 0 : i32
    %c0_i32_1 = arith.constant 0 : i32
    return %c0_i32, %c0_i32_0 : i32, i32
  }
  func.func @transform_4(%arg0: i32, %arg1: memref<2xi32, #tpu.memory_space<smem>>) -> (i32, i32) {
    %c0_i32 = arith.constant 0 : i32
    %c0_i32_0 = arith.constant 0 : i32
    %c0_i32_1 = arith.constant 0 : i32
    return %c0_i32, %c0_i32_0 : i32, i32
  }
  func.func @transform_5(%arg0: i32, %arg1: memref<2xi32, #tpu.memory_space<smem>>) -> (i32, i32) {
    %c0_i32 = arith.constant 0 : i32
    %c0_i32_0 = arith.constant 0 : i32
    %c0_i32_1 = arith.constant 0 : i32
    return %c0_i32, %c0_i32_0 : i32, i32
  }
  func.func @transform_6(%arg0: i32, %arg1: memref<2xi32, #tpu.memory_space<smem>>) -> (i32, i32) {
    %c0_i32 = arith.constant 0 : i32
    %c0_i32_0 = arith.constant 0 : i32
    %c0_i32_1 = arith.constant 0 : i32
    return %c0_i32, %c0_i32_0 : i32, i32
  }
  func.func @transform_7(%arg0: i32, %arg1: memref<2xi32, #tpu.memory_space<smem>>) -> (i32, i32) {
    %c0_i32 = arith.constant 0 : i32
    %c0_i32_0 = arith.constant 0 : i32
    %c0_i32_1 = arith.constant 0 : i32
    return %c0_i32, %c0_i32_0 : i32, i32
  }
  func.func @transform_8(%arg0: i32, %arg1: memref<2xi32, #tpu.memory_space<smem>>) -> (i32, i32) {
    %c0_i32 = arith.constant 0 : i32
    %c0_i32_0 = arith.constant 0 : i32
    %c0_i32_1 = arith.constant 0 : i32
    return %c0_i32, %c0_i32_0 : i32, i32
  }
  func.func @transform_9(%arg0: i32, %arg1: memref<2xi32, #tpu.memory_space<smem>>) -> (i32, i32) {
    %c0_i32 = arith.constant 0 : i32
    %c0_i32_0 = arith.constant 0 : i32
    %c0_i32_1 = arith.constant 0 : i32
    return %c0_i32, %c0_i32_0 : i32, i32
  }
  func.func @transform_10(%arg0: i32, %arg1: memref<2xi32, #tpu.memory_space<smem>>) -> (i32, i32) {
    %c0_i32 = arith.constant 0 : i32
    %c0_i32_0 = arith.constant 0 : i32
    %c0_i32_1 = arith.constant 0 : i32
    return %c0_i32, %c0_i32_0 : i32, i32
  }
  func.func @transform_11(%arg0: i32, %arg1: memref<2xi32, #tpu.memory_space<smem>>) -> (i32, i32) {
    %c0_i32 = arith.constant 0 : i32
    %c0_i32_0 = arith.constant 0 : i32
    %c0_i32_1 = arith.constant 0 : i32
    return %c0_i32, %c0_i32_0 : i32, i32
  }
  func.func @transform_12(%arg0: i32, %arg1: memref<2xi32, #tpu.memory_space<smem>>) -> (i32, i32) {
    %c0_i32 = arith.constant 0 : i32
    %c0_i32_0 = arith.constant 0 : i32
    %c0_i32_1 = arith.constant 0 : i32
    return %c0_i32, %c0_i32_0 : i32, i32
  }
  func.func @transform_13(%arg0: i32, %arg1: memref<2xi32, #tpu.memory_space<smem>>) -> (i32, i32) {
    %c0_i32 = arith.constant 0 : i32
    %c0_i32_0 = arith.constant 0 : i32
    %c0_i32_1 = arith.constant 0 : i32
    return %c0_i32, %c0_i32_0 : i32, i32
  }
  func.func @transform_14(%arg0: i32, %arg1: memref<2xi32, #tpu.memory_space<smem>>) -> (i32, i32) {
    %c0_i32 = arith.constant 0 : i32
    %c0_i32_0 = arith.constant 0 : i32
    %c0_i32_1 = arith.constant 0 : i32
    return %c0_i32, %c0_i32_0 : i32, i32
  }
  func.func @transform_15(%arg0: i32, %arg1: memref<2xi32, #tpu.memory_space<smem>>) -> (i32, i32) {
    %c0_i32 = arith.constant 0 : i32
    %c0_i32_0 = arith.constant 0 : i32
    %c0_i32_1 = arith.constant 0 : i32
    return %c0_i32, %c0_i32_0 : i32, i32
  }
  func.func @transform_16(%arg0: i32, %arg1: memref<2xi32, #tpu.memory_space<smem>>) -> (i32, i32) {
    %c0_i32 = arith.constant 0 : i32
    %c0_i32_0 = arith.constant 0 : i32
    %c0_i32_1 = arith.constant 0 : i32
    return %c0_i32, %c0_i32_0 : i32, i32
  }
  func.func @transform_17(%arg0: i32, %arg1: memref<2xi32, #tpu.memory_space<smem>>) -> (i32, i32, i32) {
    %c0_i32 = arith.constant 0 : i32
    %c0_i32_0 = arith.constant 0 : i32
    %c0_i32_1 = arith.constant 0 : i32
    return %arg0, %c0_i32, %c0_i32_0 : i32, i32, i32
  }
}

module attributes {stable_mosaic.version = 11 : i64} {
  func.func @decoder_block_kernel(%arg0: i32, %arg1: memref<2xi32, #tpu.memory_space<smem>>, %arg2: memref<2x8x32xf32, #tpu.memory_space<vmem>>, %arg3: memref<2x16x32xf32, #tpu.memory_space<vmem>>, %arg4: memref<32x96xf32, #tpu.memory_space<vmem>>, %arg5: memref<32x32xf32, #tpu.memory_space<vmem>>, %arg6: memref<32x32xf32, #tpu.memory_space<vmem>>, %arg7: memref<32x64xf32, #tpu.memory_space<vmem>>, %arg8: memref<32x32xf32, #tpu.memory_space<vmem>>, %arg9: memref<32x64xf32, #tpu.memory_space<vmem>>, %arg10: memref<1x64xf32, #tpu.memory_space<vmem>>, %arg11: memref<64x32xf32, #tpu.memory_space<vmem>>, %arg12: memref<1x32xf32, #tpu.memory_space<vmem>>, %arg13: memref<1x32xf32, #tpu.memory_space<vmem>>, %arg14: memref<1x32xf32, #tpu.memory_space<vmem>>, %arg15: memref<1x32xf32, #tpu.memory_space<vmem>>, %arg16: memref<1x32xf32, #tpu.memory_space<vmem>>, %arg17: memref<1x32xf32, #tpu.memory_space<vmem>>, %arg18: memref<1x32xf32, #tpu.memory_space<vmem>>, %arg19: memref<2x8x32xf32, #tpu.memory_space<vmem>>, %arg20: memref<16x32xf32, #tpu.memory_space<vmem>>) attributes {dimension_semantics = [#tpu.dimension_semantics<parallel>], iteration_bounds = array<i64: 1>, scalar_prefetch = 1 : i64, scratch_operands = 1 : i64, tpu.core_type = #tpu.core_type<tc>, window_params = [{transform_indices = @transform_0, window_bounds = array<i64: 2, 8, 32>}, {transform_indices = @transform_1, window_bounds = array<i64: 2, 16, 32>}, {pipeline_mode = #tpu.pipeline_mode<synchronous>, transform_indices = @transform_2, window_bounds = array<i64: 32, 96>}, {pipeline_mode = #tpu.pipeline_mode<synchronous>, transform_indices = @transform_3, window_bounds = array<i64: 32, 32>}, {pipeline_mode = #tpu.pipeline_mode<synchronous>, transform_indices = @transform_4, window_bounds = array<i64: 32, 32>}, {pipeline_mode = #tpu.pipeline_mode<synchronous>, transform_indices = @transform_5, window_bounds = array<i64: 32, 64>}, {pipeline_mode = #tpu.pipeline_mode<synchronous>, transform_indices = @transform_6, window_bounds = array<i64: 32, 32>}, {pipeline_mode = #tpu.pipeline_mode<synchronous>, transform_indices = @transform_7, window_bounds = array<i64: 32, 64>}, {pipeline_mode = #tpu.pipeline_mode<synchronous>, transform_indices = @transform_8, window_bounds = array<i64: 1, 64>}, {pipeline_mode = #tpu.pipeline_mode<synchronous>, transform_indices = @transform_9, window_bounds = array<i64: 64, 32>}, {pipeline_mode = #tpu.pipeline_mode<synchronous>, transform_indices = @transform_10, window_bounds = array<i64: 1, 32>}, {pipeline_mode = #tpu.pipeline_mode<synchronous>, transform_indices = @transform_11, window_bounds = array<i64: 1, 32>}, {pipeline_mode = #tpu.pipeline_mode<synchronous>, transform_indices = @transform_12, window_bounds = array<i64: 1, 32>}, {pipeline_mode = #tpu.pipeline_mode<synchronous>, transform_indices = @transform_13, window_bounds = array<i64: 1, 32>}, {pipeline_mode = #tpu.pipeline_mode<synchronous>, transform_indices = @transform_14, window_bounds = array<i64: 1, 32>}, {pipeline_mode = #tpu.pipeline_mode<synchronous>, transform_indices = @transform_15, window_bounds = array<i64: 1, 32>}, {pipeline_mode = #tpu.pipeline_mode<synchronous>, transform_indices = @transform_16, window_bounds = array<i64: 1, 32>}, {transform_indices = @transform_17, window_bounds = array<i64: 2, 8, 32>}]} {
    %c0 = arith.constant 0 : index
    %c0_0 = arith.constant 0 : index
    %c0_1 = arith.constant 0 : index
    %0 = vector.load %arg2[%c0, %c0_0, %c0_1] : memref<2x8x32xf32, #tpu.memory_space<vmem>>, vector<2x8x32xf32>
    %1 = vector.shape_cast %0 : vector<2x8x32xf32> to vector<16x32xf32>
    %c0_2 = arith.constant 0 : index
    %c0_3 = arith.constant 0 : index
    %c0_4 = arith.constant 0 : index
    %2 = vector.load %arg3[%c0_2, %c0_3, %c0_4] : memref<2x16x32xf32, #tpu.memory_space<vmem>>, vector<2x16x32xf32>
    %3 = vector.shape_cast %2 : vector<2x16x32xf32> to vector<32x32xf32>
    %4 = tpu.iota {dimensions = array<i32: 0>} : vector<8x8xi32>
    %5 = tpu.iota {dimensions = array<i32: 1>} : vector<8x8xi32>
    %6 = arith.cmpi sge, %4, %5 : vector<8x8xi32>
    %7 = tpu.iota {dimensions = array<i32: 1>} : vector<8x16xi32>
    %c2_i32 = arith.constant 2 : i32
    %8 = arith.muli %arg0, %c2_i32 : i32
    %c0_i32 = arith.constant 0 : i32
    %9 = arith.addi %8, %c0_i32 : i32
    %10 = arith.index_cast %9 : i32 to index
    %11 = memref.load %arg1[%10] : memref<2xi32, #tpu.memory_space<smem>>
    %12 = vector.broadcast %11 : i32 to vector<8x16xi32>
    %13 = arith.cmpi slt, %7, %12 : vector<8x16xi32>
    %c2_i32_5 = arith.constant 2 : i32
    %14 = arith.muli %arg0, %c2_i32_5 : i32
    %c1_i32 = arith.constant 1 : i32
    %15 = arith.addi %14, %c1_i32 : i32
    %16 = arith.index_cast %15 : i32 to index
    %17 = memref.load %arg1[%16] : memref<2xi32, #tpu.memory_space<smem>>
    %18 = vector.broadcast %17 : i32 to vector<8x16xi32>
    %19 = arith.cmpi slt, %7, %18 : vector<8x16xi32>
    %c0_6 = arith.constant 0 : index
    %c0_7 = arith.constant 0 : index
    %20 = vector.load %arg13[%c0_6, %c0_7] : memref<1x32xf32, #tpu.memory_space<vmem>>, vector<1x32xf32>
    %c0_8 = arith.constant 0 : index
    %c0_9 = arith.constant 0 : index
    %21 = vector.load %arg14[%c0_8, %c0_9] : memref<1x32xf32, #tpu.memory_space<vmem>>, vector<1x32xf32>
    %cst = arith.constant dense<0.000000e+00> : vector<16xf32>
    %22 = vector.multi_reduction <add>, %1, %cst [1] : vector<16x32xf32> to vector<16xf32>
    %23 = vector.shape_cast %22 : vector<16xf32> to vector<16x1xf32>
    %cst_10 = arith.constant 3.200000e+01 : f32
    %24 = vector.broadcast %cst_10 : f32 to vector<16x1xf32>
    %25 = arith.divf %23, %24 : vector<16x1xf32>
    %26 = vector.broadcast %25 : vector<16x1xf32> to vector<16x32xf32>
    %27 = arith.subf %1, %26 : vector<16x32xf32>
    %28 = arith.mulf %27, %27 : vector<16x32xf32>
    %cst_11 = arith.constant dense<0.000000e+00> : vector<16xf32>
    %29 = vector.multi_reduction <add>, %28, %cst_11 [1] : vector<16x32xf32> to vector<16xf32>
    %30 = vector.shape_cast %29 : vector<16xf32> to vector<16x1xf32>
    %cst_12 = arith.constant 3.100000e+01 : f32
    %31 = vector.broadcast %cst_12 : f32 to vector<16x1xf32>
    %32 = arith.divf %30, %31 : vector<16x1xf32>
    %33 = vector.broadcast %25 : vector<16x1xf32> to vector<16x32xf32>
    %34 = arith.subf %1, %33 : vector<16x32xf32>
    %35 = vector.broadcast %20 : vector<1x32xf32> to vector<16x32xf32>
    %36 = arith.mulf %35, %34 : vector<16x32xf32>
    %37 = math.sqrt %32 : vector<16x1xf32>
    %cst_13 = arith.constant 9.99999997E-7 : f32
    %38 = vector.broadcast %cst_13 : f32 to vector<16x1xf32>
    %39 = arith.addf %37, %38 : vector<16x1xf32>
    %40 = vector.broadcast %39 : vector<16x1xf32> to vector<16x32xf32>
    %41 = arith.divf %36, %40 : vector<16x32xf32>
    %42 = vector.broadcast %21 : vector<1x32xf32> to vector<16x32xf32>
    %43 = arith.addf %41, %42 : vector<16x32xf32>
    %c0_14 = arith.constant 0 : index
    %c0_15 = arith.constant 0 : index
    %44 = vector.load %arg4[%c0_14, %c0_15] : memref<32x96xf32, #tpu.memory_space<vmem>>, vector<32x96xf32>
    %cst_16 = arith.constant dense<0.000000e+00> : vector<16x96xf32>
    %45 = tpu.matmul %43, %44, %cst_16 {dimension_numbers = #tpu.dot_dimension_numbers<[1], [0], [0], [1], [0, 0, 1, 1], [], []>} : vector<16x32xf32>, vector<32x96xf32>, vector<16x96xf32> -> vector<16x96xf32>
    %46 = vector.extract_strided_slice %45 {offsets = [0, 0], sizes = [16, 32], strides = [1, 1]} : vector<16x96xf32> to vector<16x32xf32>
    %47 = vector.extract_strided_slice %45 {offsets = [0, 32], sizes = [16, 32], strides = [1, 1]} : vector<16x96xf32> to vector<16x32xf32>
    %48 = vector.extract_strided_slice %45 {offsets = [0, 64], sizes = [16, 32], strides = [1, 1]} : vector<16x96xf32> to vector<16x32xf32>
    %49 = vector.extract_strided_slice %46 {offsets = [0, 0], sizes = [8, 32], strides = [1, 1]} : vector<16x32xf32> to vector<8x32xf32>
    %50 = vector.extract_strided_slice %47 {offsets = [0, 0], sizes = [8, 32], strides = [1, 1]} : vector<16x32xf32> to vector<8x32xf32>
    %51 = vector.extract_strided_slice %48 {offsets = [0, 0], sizes = [8, 32], strides = [1, 1]} : vector<16x32xf32> to vector<8x32xf32>
    %52 = vector.extract_strided_slice %49 {offsets = [0, 0], sizes = [8, 8], strides = [1, 1]} : vector<8x32xf32> to vector<8x8xf32>
    %53 = vector.extract_strided_slice %50 {offsets = [0, 0], sizes = [8, 8], strides = [1, 1]} : vector<8x32xf32> to vector<8x8xf32>
    %54 = vector.extract_strided_slice %51 {offsets = [0, 0], sizes = [8, 8], strides = [1, 1]} : vector<8x32xf32> to vector<8x8xf32>
    %cst_17 = arith.constant dense<0.000000e+00> : vector<8x8xf32>
    %55 = tpu.matmul %52, %53, %cst_17 {dimension_numbers = #tpu.dot_dimension_numbers<[1], [1], [0], [0], [0, 0, 1, 0], [], []>} : vector<8x8xf32>, vector<8x8xf32>, vector<8x8xf32> -> vector<8x8xf32>
    %cst_18 = arith.constant -1.000000e+09 : f32
    %56 = vector.broadcast %cst_18 : f32 to vector<8x8xf32>
    %57 = arith.select %6, %55, %56 : vector<8x8xi1>, vector<8x8xf32>
    %cst_19 = arith.constant dense<0xFF800000> : vector<8xf32>
    %58 = vector.multi_reduction <maximumf>, %57, %cst_19 [1] : vector<8x8xf32> to vector<8xf32>
    %59 = vector.shape_cast %58 : vector<8xf32> to vector<8x1xf32>
    %60 = vector.broadcast %59 : vector<8x1xf32> to vector<8x8xf32>
    %61 = arith.subf %57, %60 : vector<8x8xf32>
    %62 = math.exp %61 : vector<8x8xf32>
    %cst_20 = arith.constant dense<0.000000e+00> : vector<8xf32>
    %63 = vector.multi_reduction <add>, %62, %cst_20 [1] : vector<8x8xf32> to vector<8xf32>
    %64 = vector.shape_cast %63 : vector<8xf32> to vector<8x1xf32>
    %65 = tpu.reciprocal %64 {approx = true} : vector<8x1xf32> -> vector<8x1xf32>
    %66 = vector.broadcast %65 : vector<8x1xf32> to vector<8x8xf32>
    %67 = arith.mulf %62, %66 : vector<8x8xf32>
    %cst_21 = arith.constant dense<0.000000e+00> : vector<8x8xf32>
    %68 = tpu.matmul %67, %54, %cst_21 {dimension_numbers = #tpu.dot_dimension_numbers<[1], [0], [0], [1], [0, 0, 1, 1], [], []>} : vector<8x8xf32>, vector<8x8xf32>, vector<8x8xf32> -> vector<8x8xf32>
    %c0_22 = arith.constant 0 : index
    %c0_23 = arith.constant 0 : index
    %69 = vector.load %arg20[%c0_22, %c0_23] : memref<16x32xf32, #tpu.memory_space<vmem>>, vector<8x8xf32>
    tpu.vector_store %arg20[%c0_22, %c0_23], %68 {strides = array<i32>} : memref<16x32xf32, #tpu.memory_space<vmem>>, vector<8x8xf32>,
    %70 = vector.extract_strided_slice %49 {offsets = [0, 8], sizes = [8, 8], strides = [1, 1]} : vector<8x32xf32> to vector<8x8xf32>
    %71 = vector.extract_strided_slice %50 {offsets = [0, 8], sizes = [8, 8], strides = [1, 1]} : vector<8x32xf32> to vector<8x8xf32>
    %72 = vector.extract_strided_slice %51 {offsets = [0, 8], sizes = [8, 8], strides = [1, 1]} : vector<8x32xf32> to vector<8x8xf32>
    %cst_24 = arith.constant dense<0.000000e+00> : vector<8x8xf32>
    %73 = tpu.matmul %70, %71, %cst_24 {dimension_numbers = #tpu.dot_dimension_numbers<[1], [1], [0], [0], [0, 0, 1, 0], [], []>} : vector<8x8xf32>, vector<8x8xf32>, vector<8x8xf32> -> vector<8x8xf32>
    %cst_25 = arith.constant -1.000000e+09 : f32
    %74 = vector.broadcast %cst_25 : f32 to vector<8x8xf32>
    %75 = arith.select %6, %73, %74 : vector<8x8xi1>, vector<8x8xf32>
    %cst_26 = arith.constant dense<0xFF800000> : vector<8xf32>
    %76 = vector.multi_reduction <maximumf>, %75, %cst_26 [1] : vector<8x8xf32> to vector<8xf32>
    %77 = vector.shape_cast %76 : vector<8xf32> to vector<8x1xf32>
    %78 = vector.broadcast %77 : vector<8x1xf32> to vector<8x8xf32>
    %79 = arith.subf %75, %78 : vector<8x8xf32>
    %80 = math.exp %79 : vector<8x8xf32>
    %cst_27 = arith.constant dense<0.000000e+00> : vector<8xf32>
    %81 = vector.multi_reduction <add>, %80, %cst_27 [1] : vector<8x8xf32> to vector<8xf32>
    %82 = vector.shape_cast %81 : vector<8xf32> to vector<8x1xf32>
    %83 = tpu.reciprocal %82 {approx = true} : vector<8x1xf32> -> vector<8x1xf32>
    %84 = vector.broadcast %83 : vector<8x1xf32> to vector<8x8xf32>
    %85 = arith.mulf %80, %84 : vector<8x8xf32>
    %cst_28 = arith.constant dense<0.000000e+00> : vector<8x8xf32>
    %86 = tpu.matmul %85, %72, %cst_28 {dimension_numbers = #tpu.dot_dimension_numbers<[1], [0], [0], [1], [0, 0, 1, 1], [], []>} : vector<8x8xf32>, vector<8x8xf32>, vector<8x8xf32> -> vector<8x8xf32>
    %c0_29 = arith.constant 0 : index
    %c8 = arith.constant 8 : index
    %87 = vector.load %arg20[%c0_29, %c8] : memref<16x32xf32, #tpu.memory_space<vmem>>, vector<8x8xf32>
    tpu.vector_store %arg20[%c0_29, %c8], %86 {strides = array<i32>} : memref<16x32xf32, #tpu.memory_space<vmem>>, vector<8x8xf32>,
    %88 = vector.extract_strided_slice %49 {offsets = [0, 16], sizes = [8, 8], strides = [1, 1]} : vector<8x32xf32> to vector<8x8xf32>
    %89 = vector.extract_strided_slice %50 {offsets = [0, 16], sizes = [8, 8], strides = [1, 1]} : vector<8x32xf32> to vector<8x8xf32>
    %90 = vector.extract_strided_slice %51 {offsets = [0, 16], sizes = [8, 8], strides = [1, 1]} : vector<8x32xf32> to vector<8x8xf32>
    %cst_30 = arith.constant dense<0.000000e+00> : vector<8x8xf32>
    %91 = tpu.matmul %88, %89, %cst_30 {dimension_numbers = #tpu.dot_dimension_numbers<[1], [1], [0], [0], [0, 0, 1, 0], [], []>} : vector<8x8xf32>, vector<8x8xf32>, vector<8x8xf32> -> vector<8x8xf32>
    %cst_31 = arith.constant -1.000000e+09 : f32
    %92 = vector.broadcast %cst_31 : f32 to vector<8x8xf32>
    %93 = arith.select %6, %91, %92 : vector<8x8xi1>, vector<8x8xf32>
    %cst_32 = arith.constant dense<0xFF800000> : vector<8xf32>
    %94 = vector.multi_reduction <maximumf>, %93, %cst_32 [1] : vector<8x8xf32> to vector<8xf32>
    %95 = vector.shape_cast %94 : vector<8xf32> to vector<8x1xf32>
    %96 = vector.broadcast %95 : vector<8x1xf32> to vector<8x8xf32>
    %97 = arith.subf %93, %96 : vector<8x8xf32>
    %98 = math.exp %97 : vector<8x8xf32>
    %cst_33 = arith.constant dense<0.000000e+00> : vector<8xf32>
    %99 = vector.multi_reduction <add>, %98, %cst_33 [1] : vector<8x8xf32> to vector<8xf32>
    %100 = vector.shape_cast %99 : vector<8xf32> to vector<8x1xf32>
    %101 = tpu.reciprocal %100 {approx = true} : vector<8x1xf32> -> vector<8x1xf32>
    %102 = vector.broadcast %101 : vector<8x1xf32> to vector<8x8xf32>
    %103 = arith.mulf %98, %102 : vector<8x8xf32>
    %cst_34 = arith.constant dense<0.000000e+00> : vector<8x8xf32>
    %104 = tpu.matmul %103, %90, %cst_34 {dimension_numbers = #tpu.dot_dimension_numbers<[1], [0], [0], [1], [0, 0, 1, 1], [], []>} : vector<8x8xf32>, vector<8x8xf32>, vector<8x8xf32> -> vector<8x8xf32>
    %c0_35 = arith.constant 0 : index
    %c16 = arith.constant 16 : index
    %105 = vector.load %arg20[%c0_35, %c16] : memref<16x32xf32, #tpu.memory_space<vmem>>, vector<8x8xf32>
    tpu.vector_store %arg20[%c0_35, %c16], %104 {strides = array<i32>} : memref<16x32xf32, #tpu.memory_space<vmem>>, vector<8x8xf32>,
    %106 = vector.extract_strided_slice %49 {offsets = [0, 24], sizes = [8, 8], strides = [1, 1]} : vector<8x32xf32> to vector<8x8xf32>
    %107 = vector.extract_strided_slice %50 {offsets = [0, 24], sizes = [8, 8], strides = [1, 1]} : vector<8x32xf32> to vector<8x8xf32>
    %108 = vector.extract_strided_slice %51 {offsets = [0, 24], sizes = [8, 8], strides = [1, 1]} : vector<8x32xf32> to vector<8x8xf32>
    %cst_36 = arith.constant dense<0.000000e+00> : vector<8x8xf32>
    %109 = tpu.matmul %106, %107, %cst_36 {dimension_numbers = #tpu.dot_dimension_numbers<[1], [1], [0], [0], [0, 0, 1, 0], [], []>} : vector<8x8xf32>, vector<8x8xf32>, vector<8x8xf32> -> vector<8x8xf32>
    %cst_37 = arith.constant -1.000000e+09 : f32
    %110 = vector.broadcast %cst_37 : f32 to vector<8x8xf32>
    %111 = arith.select %6, %109, %110 : vector<8x8xi1>, vector<8x8xf32>
    %cst_38 = arith.constant dense<0xFF800000> : vector<8xf32>
    %112 = vector.multi_reduction <maximumf>, %111, %cst_38 [1] : vector<8x8xf32> to vector<8xf32>
    %113 = vector.shape_cast %112 : vector<8xf32> to vector<8x1xf32>
    %114 = vector.broadcast %113 : vector<8x1xf32> to vector<8x8xf32>
    %115 = arith.subf %111, %114 : vector<8x8xf32>
    %116 = math.exp %115 : vector<8x8xf32>
    %cst_39 = arith.constant dense<0.000000e+00> : vector<8xf32>
    %117 = vector.multi_reduction <add>, %116, %cst_39 [1] : vector<8x8xf32> to vector<8xf32>
    %118 = vector.shape_cast %117 : vector<8xf32> to vector<8x1xf32>
    %119 = tpu.reciprocal %118 {approx = true} : vector<8x1xf32> -> vector<8x1xf32>
    %120 = vector.broadcast %119 : vector<8x1xf32> to vector<8x8xf32>
    %121 = arith.mulf %116, %120 : vector<8x8xf32>
    %cst_40 = arith.constant dense<0.000000e+00> : vector<8x8xf32>
    %122 = tpu.matmul %121, %108, %cst_40 {dimension_numbers = #tpu.dot_dimension_numbers<[1], [0], [0], [1], [0, 0, 1, 1], [], []>} : vector<8x8xf32>, vector<8x8xf32>, vector<8x8xf32> -> vector<8x8xf32>
    %c0_41 = arith.constant 0 : index
    %c24 = arith.constant 24 : index
    %123 = vector.load %arg20[%c0_41, %c24] : memref<16x32xf32, #tpu.memory_space<vmem>>, vector<8x8xf32>
    tpu.vector_store %arg20[%c0_41, %c24], %122 {strides = array<i32>} : memref<16x32xf32, #tpu.memory_space<vmem>>, vector<8x8xf32>,
    %124 = vector.extract_strided_slice %46 {offsets = [8, 0], sizes = [8, 32], strides = [1, 1]} : vector<16x32xf32> to vector<8x32xf32>
    %125 = vector.extract_strided_slice %47 {offsets = [8, 0], sizes = [8, 32], strides = [1, 1]} : vector<16x32xf32> to vector<8x32xf32>
    %126 = vector.extract_strided_slice %48 {offsets = [8, 0], sizes = [8, 32], strides = [1, 1]} : vector<16x32xf32> to vector<8x32xf32>
    %127 = vector.extract_strided_slice %124 {offsets = [0, 0], sizes = [8, 8], strides = [1, 1]} : vector<8x32xf32> to vector<8x8xf32>
    %128 = vector.extract_strided_slice %125 {offsets = [0, 0], sizes = [8, 8], strides = [1, 1]} : vector<8x32xf32> to vector<8x8xf32>
    %129 = vector.extract_strided_slice %126 {offsets = [0, 0], sizes = [8, 8], strides = [1, 1]} : vector<8x32xf32> to vector<8x8xf32>
    %cst_42 = arith.constant dense<0.000000e+00> : vector<8x8xf32>
    %130 = tpu.matmul %127, %128, %cst_42 {dimension_numbers = #tpu.dot_dimension_numbers<[1], [1], [0], [0], [0, 0, 1, 0], [], []>} : vector<8x8xf32>, vector<8x8xf32>, vector<8x8xf32> -> vector<8x8xf32>
    %cst_43 = arith.constant -1.000000e+09 : f32
    %131 = vector.broadcast %cst_43 : f32 to vector<8x8xf32>
    %132 = arith.select %6, %130, %131 : vector<8x8xi1>, vector<8x8xf32>
    %cst_44 = arith.constant dense<0xFF800000> : vector<8xf32>
    %133 = vector.multi_reduction <maximumf>, %132, %cst_44 [1] : vector<8x8xf32> to vector<8xf32>
    %134 = vector.shape_cast %133 : vector<8xf32> to vector<8x1xf32>
    %135 = vector.broadcast %134 : vector<8x1xf32> to vector<8x8xf32>
    %136 = arith.subf %132, %135 : vector<8x8xf32>
    %137 = math.exp %136 : vector<8x8xf32>
    %cst_45 = arith.constant dense<0.000000e+00> : vector<8xf32>
    %138 = vector.multi_reduction <add>, %137, %cst_45 [1] : vector<8x8xf32> to vector<8xf32>
    %139 = vector.shape_cast %138 : vector<8xf32> to vector<8x1xf32>
    %140 = tpu.reciprocal %139 {approx = true} : vector<8x1xf32> -> vector<8x1xf32>
    %141 = vector.broadcast %140 : vector<8x1xf32> to vector<8x8xf32>
    %142 = arith.mulf %137, %141 : vector<8x8xf32>
    %cst_46 = arith.constant dense<0.000000e+00> : vector<8x8xf32>
    %143 = tpu.matmul %142, %129, %cst_46 {dimension_numbers = #tpu.dot_dimension_numbers<[1], [0], [0], [1], [0, 0, 1, 1], [], []>} : vector<8x8xf32>, vector<8x8xf32>, vector<8x8xf32> -> vector<8x8xf32>
    %c8_47 = arith.constant 8 : index
    %c0_48 = arith.constant 0 : index
    %144 = vector.load %arg20[%c8_47, %c0_48] : memref<16x32xf32, #tpu.memory_space<vmem>>, vector<8x8xf32>
    tpu.vector_store %arg20[%c8_47, %c0_48], %143 {strides = array<i32>} : memref<16x32xf32, #tpu.memory_space<vmem>>, vector<8x8xf32>,
    %145 = vector.extract_strided_slice %124 {offsets = [0, 8], sizes = [8, 8], strides = [1, 1]} : vector<8x32xf32> to vector<8x8xf32>
    %146 = vector.extract_strided_slice %125 {offsets = [0, 8], sizes = [8, 8], strides = [1, 1]} : vector<8x32xf32> to vector<8x8xf32>
    %147 = vector.extract_strided_slice %126 {offsets = [0, 8], sizes = [8, 8], strides = [1, 1]} : vector<8x32xf32> to vector<8x8xf32>
    %cst_49 = arith.constant dense<0.000000e+00> : vector<8x8xf32>
    %148 = tpu.matmul %145, %146, %cst_49 {dimension_numbers = #tpu.dot_dimension_numbers<[1], [1], [0], [0], [0, 0, 1, 0], [], []>} : vector<8x8xf32>, vector<8x8xf32>, vector<8x8xf32> -> vector<8x8xf32>
    %cst_50 = arith.constant -1.000000e+09 : f32
    %149 = vector.broadcast %cst_50 : f32 to vector<8x8xf32>
    %150 = arith.select %6, %148, %149 : vector<8x8xi1>, vector<8x8xf32>
    %cst_51 = arith.constant dense<0xFF800000> : vector<8xf32>
    %151 = vector.multi_reduction <maximumf>, %150, %cst_51 [1] : vector<8x8xf32> to vector<8xf32>
    %152 = vector.shape_cast %151 : vector<8xf32> to vector<8x1xf32>
    %153 = vector.broadcast %152 : vector<8x1xf32> to vector<8x8xf32>
    %154 = arith.subf %150, %153 : vector<8x8xf32>
    %155 = math.exp %154 : vector<8x8xf32>
    %cst_52 = arith.constant dense<0.000000e+00> : vector<8xf32>
    %156 = vector.multi_reduction <add>, %155, %cst_52 [1] : vector<8x8xf32> to vector<8xf32>
    %157 = vector.shape_cast %156 : vector<8xf32> to vector<8x1xf32>
    %158 = tpu.reciprocal %157 {approx = true} : vector<8x1xf32> -> vector<8x1xf32>
    %159 = vector.broadcast %158 : vector<8x1xf32> to vector<8x8xf32>
    %160 = arith.mulf %155, %159 : vector<8x8xf32>
    %cst_53 = arith.constant dense<0.000000e+00> : vector<8x8xf32>
    %161 = tpu.matmul %160, %147, %cst_53 {dimension_numbers = #tpu.dot_dimension_numbers<[1], [0], [0], [1], [0, 0, 1, 1], [], []>} : vector<8x8xf32>, vector<8x8xf32>, vector<8x8xf32> -> vector<8x8xf32>
    %c8_54 = arith.constant 8 : index
    %c8_55 = arith.constant 8 : index
    %162 = vector.load %arg20[%c8_54, %c8_55] : memref<16x32xf32, #tpu.memory_space<vmem>>, vector<8x8xf32>
    tpu.vector_store %arg20[%c8_54, %c8_55], %161 {strides = array<i32>} : memref<16x32xf32, #tpu.memory_space<vmem>>, vector<8x8xf32>,
    %163 = vector.extract_strided_slice %124 {offsets = [0, 16], sizes = [8, 8], strides = [1, 1]} : vector<8x32xf32> to vector<8x8xf32>
    %164 = vector.extract_strided_slice %125 {offsets = [0, 16], sizes = [8, 8], strides = [1, 1]} : vector<8x32xf32> to vector<8x8xf32>
    %165 = vector.extract_strided_slice %126 {offsets = [0, 16], sizes = [8, 8], strides = [1, 1]} : vector<8x32xf32> to vector<8x8xf32>
    %cst_56 = arith.constant dense<0.000000e+00> : vector<8x8xf32>
    %166 = tpu.matmul %163, %164, %cst_56 {dimension_numbers = #tpu.dot_dimension_numbers<[1], [1], [0], [0], [0, 0, 1, 0], [], []>} : vector<8x8xf32>, vector<8x8xf32>, vector<8x8xf32> -> vector<8x8xf32>
    %cst_57 = arith.constant -1.000000e+09 : f32
    %167 = vector.broadcast %cst_57 : f32 to vector<8x8xf32>
    %168 = arith.select %6, %166, %167 : vector<8x8xi1>, vector<8x8xf32>
    %cst_58 = arith.constant dense<0xFF800000> : vector<8xf32>
    %169 = vector.multi_reduction <maximumf>, %168, %cst_58 [1] : vector<8x8xf32> to vector<8xf32>
    %170 = vector.shape_cast %169 : vector<8xf32> to vector<8x1xf32>
    %171 = vector.broadcast %170 : vector<8x1xf32> to vector<8x8xf32>
    %172 = arith.subf %168, %171 : vector<8x8xf32>
    %173 = math.exp %172 : vector<8x8xf32>
    %cst_59 = arith.constant dense<0.000000e+00> : vector<8xf32>
    %174 = vector.multi_reduction <add>, %173, %cst_59 [1] : vector<8x8xf32> to vector<8xf32>
    %175 = vector.shape_cast %174 : vector<8xf32> to vector<8x1xf32>
    %176 = tpu.reciprocal %175 {approx = true} : vector<8x1xf32> -> vector<8x1xf32>
    %177 = vector.broadcast %176 : vector<8x1xf32> to vector<8x8xf32>
    %178 = arith.mulf %173, %177 : vector<8x8xf32>
    %cst_60 = arith.constant dense<0.000000e+00> : vector<8x8xf32>
    %179 = tpu.matmul %178, %165, %cst_60 {dimension_numbers = #tpu.dot_dimension_numbers<[1], [0], [0], [1], [0, 0, 1, 1], [], []>} : vector<8x8xf32>, vector<8x8xf32>, vector<8x8xf32> -> vector<8x8xf32>
    %c8_61 = arith.constant 8 : index
    %c16_62 = arith.constant 16 : index
    %180 = vector.load %arg20[%c8_61, %c16_62] : memref<16x32xf32, #tpu.memory_space<vmem>>, vector<8x8xf32>
    tpu.vector_store %arg20[%c8_61, %c16_62], %179 {strides = array<i32>} : memref<16x32xf32, #tpu.memory_space<vmem>>, vector<8x8xf32>,
    %181 = vector.extract_strided_slice %124 {offsets = [0, 24], sizes = [8, 8], strides = [1, 1]} : vector<8x32xf32> to vector<8x8xf32>
    %182 = vector.extract_strided_slice %125 {offsets = [0, 24], sizes = [8, 8], strides = [1, 1]} : vector<8x32xf32> to vector<8x8xf32>
    %183 = vector.extract_strided_slice %126 {offsets = [0, 24], sizes = [8, 8], strides = [1, 1]} : vector<8x32xf32> to vector<8x8xf32>
    %cst_63 = arith.constant dense<0.000000e+00> : vector<8x8xf32>
    %184 = tpu.matmul %181, %182, %cst_63 {dimension_numbers = #tpu.dot_dimension_numbers<[1], [1], [0], [0], [0, 0, 1, 0], [], []>} : vector<8x8xf32>, vector<8x8xf32>, vector<8x8xf32> -> vector<8x8xf32>
    %cst_64 = arith.constant -1.000000e+09 : f32
    %185 = vector.broadcast %cst_64 : f32 to vector<8x8xf32>
    %186 = arith.select %6, %184, %185 : vector<8x8xi1>, vector<8x8xf32>
    %cst_65 = arith.constant dense<0xFF800000> : vector<8xf32>
    %187 = vector.multi_reduction <maximumf>, %186, %cst_65 [1] : vector<8x8xf32> to vector<8xf32>
    %188 = vector.shape_cast %187 : vector<8xf32> to vector<8x1xf32>
    %189 = vector.broadcast %188 : vector<8x1xf32> to vector<8x8xf32>
    %190 = arith.subf %186, %189 : vector<8x8xf32>
    %191 = math.exp %190 : vector<8x8xf32>
    %cst_66 = arith.constant dense<0.000000e+00> : vector<8xf32>
    %192 = vector.multi_reduction <add>, %191, %cst_66 [1] : vector<8x8xf32> to vector<8xf32>
    %193 = vector.shape_cast %192 : vector<8xf32> to vector<8x1xf32>
    %194 = tpu.reciprocal %193 {approx = true} : vector<8x1xf32> -> vector<8x1xf32>
    %195 = vector.broadcast %194 : vector<8x1xf32> to vector<8x8xf32>
    %196 = arith.mulf %191, %195 : vector<8x8xf32>
    %cst_67 = arith.constant dense<0.000000e+00> : vector<8x8xf32>
    %197 = tpu.matmul %196, %183, %cst_67 {dimension_numbers = #tpu.dot_dimension_numbers<[1], [0], [0], [1], [0, 0, 1, 1], [], []>} : vector<8x8xf32>, vector<8x8xf32>, vector<8x8xf32> -> vector<8x8xf32>
    %c8_68 = arith.constant 8 : index
    %c24_69 = arith.constant 24 : index
    %198 = vector.load %arg20[%c8_68, %c24_69] : memref<16x32xf32, #tpu.memory_space<vmem>>, vector<8x8xf32>
    tpu.vector_store %arg20[%c8_68, %c24_69], %197 {strides = array<i32>} : memref<16x32xf32, #tpu.memory_space<vmem>>, vector<8x8xf32>,
    %c0_70 = arith.constant 0 : index
    %c0_71 = arith.constant 0 : index
    %199 = vector.load %arg20[%c0_70, %c0_71] : memref<16x32xf32, #tpu.memory_space<vmem>>, vector<16x32xf32>
    %c0_72 = arith.constant 0 : index
    %c0_73 = arith.constant 0 : index
    %200 = vector.load %arg5[%c0_72, %c0_73] : memref<32x32xf32, #tpu.memory_space<vmem>>, vector<32x32xf32>
    %cst_74 = arith.constant dense<0.000000e+00> : vector<16x32xf32>
    %201 = tpu.matmul %199, %200, %cst_74 {dimension_numbers = #tpu.dot_dimension_numbers<[1], [0], [0], [1], [0, 0, 1, 1], [], []>} : vector<16x32xf32>, vector<32x32xf32>, vector<16x32xf32> -> vector<16x32xf32>
    %202 = arith.addf %1, %201 : vector<16x32xf32>
    %c0_75 = arith.constant 0 : index
    %c0_76 = arith.constant 0 : index
    %203 = vector.load %arg15[%c0_75, %c0_76] : memref<1x32xf32, #tpu.memory_space<vmem>>, vector<1x32xf32>
    %c0_77 = arith.constant 0 : index
    %c0_78 = arith.constant 0 : index
    %204 = vector.load %arg16[%c0_77, %c0_78] : memref<1x32xf32, #tpu.memory_space<vmem>>, vector<1x32xf32>
    %cst_79 = arith.constant dense<0.000000e+00> : vector<16xf32>
    %205 = vector.multi_reduction <add>, %202, %cst_79 [1] : vector<16x32xf32> to vector<16xf32>
    %206 = vector.shape_cast %205 : vector<16xf32> to vector<16x1xf32>
    %cst_80 = arith.constant 3.200000e+01 : f32
    %207 = vector.broadcast %cst_80 : f32 to vector<16x1xf32>
    %208 = arith.divf %206, %207 : vector<16x1xf32>
    %209 = vector.broadcast %208 : vector<16x1xf32> to vector<16x32xf32>
    %210 = arith.subf %202, %209 : vector<16x32xf32>
    %211 = arith.mulf %210, %210 : vector<16x32xf32>
    %cst_81 = arith.constant dense<0.000000e+00> : vector<16xf32>
    %212 = vector.multi_reduction <add>, %211, %cst_81 [1] : vector<16x32xf32> to vector<16xf32>
    %213 = vector.shape_cast %212 : vector<16xf32> to vector<16x1xf32>
    %cst_82 = arith.constant 3.100000e+01 : f32
    %214 = vector.broadcast %cst_82 : f32 to vector<16x1xf32>
    %215 = arith.divf %213, %214 : vector<16x1xf32>
    %216 = vector.broadcast %208 : vector<16x1xf32> to vector<16x32xf32>
    %217 = arith.subf %202, %216 : vector<16x32xf32>
    %218 = vector.broadcast %203 : vector<1x32xf32> to vector<16x32xf32>
    %219 = arith.mulf %218, %217 : vector<16x32xf32>
    %220 = math.sqrt %215 : vector<16x1xf32>
    %cst_83 = arith.constant 9.99999997E-7 : f32
    %221 = vector.broadcast %cst_83 : f32 to vector<16x1xf32>
    %222 = arith.addf %220, %221 : vector<16x1xf32>
    %223 = vector.broadcast %222 : vector<16x1xf32> to vector<16x32xf32>
    %224 = arith.divf %219, %223 : vector<16x32xf32>
    %225 = vector.broadcast %204 : vector<1x32xf32> to vector<16x32xf32>
    %226 = arith.addf %224, %225 : vector<16x32xf32>
    %c0_84 = arith.constant 0 : index
    %c0_85 = arith.constant 0 : index
    %227 = vector.load %arg6[%c0_84, %c0_85] : memref<32x32xf32, #tpu.memory_space<vmem>>, vector<32x32xf32>
    %cst_86 = arith.constant dense<0.000000e+00> : vector<16x32xf32>
    %228 = tpu.matmul %226, %227, %cst_86 {dimension_numbers = #tpu.dot_dimension_numbers<[1], [0], [0], [1], [0, 0, 1, 1], [], []>} : vector<16x32xf32>, vector<32x32xf32>, vector<16x32xf32> -> vector<16x32xf32>
    %c0_87 = arith.constant 0 : index
    %c0_88 = arith.constant 0 : index
    %229 = vector.load %arg7[%c0_87, %c0_88] : memref<32x64xf32, #tpu.memory_space<vmem>>, vector<32x64xf32>
    %cst_89 = arith.constant dense<0.000000e+00> : vector<32x64xf32>
    %230 = tpu.matmul %3, %229, %cst_89 {dimension_numbers = #tpu.dot_dimension_numbers<[1], [0], [0], [1], [0, 0, 1, 1], [], []>} : vector<32x32xf32>, vector<32x64xf32>, vector<32x64xf32> -> vector<32x64xf32>
    %231 = vector.extract_strided_slice %230 {offsets = [0, 0], sizes = [32, 32], strides = [1, 1]} : vector<32x64xf32> to vector<32x32xf32>
    %232 = vector.extract_strided_slice %230 {offsets = [0, 32], sizes = [32, 32], strides = [1, 1]} : vector<32x64xf32> to vector<32x32xf32>
    %233 = vector.extract_strided_slice %228 {offsets = [0, 0], sizes = [8, 32], strides = [1, 1]} : vector<16x32xf32> to vector<8x32xf32>
    %234 = vector.extract_strided_slice %231 {offsets = [0, 0], sizes = [16, 32], strides = [1, 1]} : vector<32x32xf32> to vector<16x32xf32>
    %235 = vector.extract_strided_slice %232 {offsets = [0, 0], sizes = [16, 32], strides = [1, 1]} : vector<32x32xf32> to vector<16x32xf32>
    %236 = vector.extract_strided_slice %233 {offsets = [0, 0], sizes = [8, 8], strides = [1, 1]} : vector<8x32xf32> to vector<8x8xf32>
    %237 = vector.extract_strided_slice %234 {offsets = [0, 0], sizes = [16, 8], strides = [1, 1]} : vector<16x32xf32> to vector<16x8xf32>
    %238 = vector.extract_strided_slice %235 {offsets = [0, 0], sizes = [16, 8], strides = [1, 1]} : vector<16x32xf32> to vector<16x8xf32>
    %cst_90 = arith.constant dense<0.000000e+00> : vector<8x16xf32>
    %239 = tpu.matmul %236, %237, %cst_90 {dimension_numbers = #tpu.dot_dimension_numbers<[1], [1], [0], [0], [0, 0, 1, 0], [], []>} : vector<8x8xf32>, vector<16x8xf32>, vector<8x16xf32> -> vector<8x16xf32>
    %cst_91 = arith.constant -1.000000e+09 : f32
    %240 = vector.broadcast %cst_91 : f32 to vector<8x16xf32>
    %241 = arith.select %13, %239, %240 : vector<8x16xi1>, vector<8x16xf32>
    %cst_92 = arith.constant dense<0xFF800000> : vector<8xf32>
    %242 = vector.multi_reduction <maximumf>, %241, %cst_92 [1] : vector<8x16xf32> to vector<8xf32>
    %243 = vector.shape_cast %242 : vector<8xf32> to vector<8x1xf32>
    %244 = vector.broadcast %243 : vector<8x1xf32> to vector<8x16xf32>
    %245 = arith.subf %241, %244 : vector<8x16xf32>
    %246 = math.exp %245 : vector<8x16xf32>
    %cst_93 = arith.constant dense<0.000000e+00> : vector<8xf32>
    %247 = vector.multi_reduction <add>, %246, %cst_93 [1] : vector<8x16xf32> to vector<8xf32>
    %248 = vector.shape_cast %247 : vector<8xf32> to vector<8x1xf32>
    %249 = tpu.reciprocal %248 {approx = true} : vector<8x1xf32> -> vector<8x1xf32>
    %250 = vector.broadcast %249 : vector<8x1xf32> to vector<8x16xf32>
    %251 = arith.mulf %246, %250 : vector<8x16xf32>
    %cst_94 = arith.constant dense<0.000000e+00> : vector<8x8xf32>
    %252 = tpu.matmul %251, %238, %cst_94 {dimension_numbers = #tpu.dot_dimension_numbers<[1], [0], [0], [1], [0, 0, 1, 1], [], []>} : vector<8x16xf32>, vector<16x8xf32>, vector<8x8xf32> -> vector<8x8xf32>
    %c0_95 = arith.constant 0 : index
    %c0_96 = arith.constant 0 : index
    %253 = vector.load %arg20[%c0_95, %c0_96] : memref<16x32xf32, #tpu.memory_space<vmem>>, vector<8x8xf32>
    tpu.vector_store %arg20[%c0_95, %c0_96], %252 {strides = array<i32>} : memref<16x32xf32, #tpu.memory_space<vmem>>, vector<8x8xf32>,
    %254 = vector.extract_strided_slice %233 {offsets = [0, 8], sizes = [8, 8], strides = [1, 1]} : vector<8x32xf32> to vector<8x8xf32>
    %255 = vector.extract_strided_slice %234 {offsets = [0, 8], sizes = [16, 8], strides = [1, 1]} : vector<16x32xf32> to vector<16x8xf32>
    %256 = vector.extract_strided_slice %235 {offsets = [0, 8], sizes = [16, 8], strides = [1, 1]} : vector<16x32xf32> to vector<16x8xf32>
    %cst_97 = arith.constant dense<0.000000e+00> : vector<8x16xf32>
    %257 = tpu.matmul %254, %255, %cst_97 {dimension_numbers = #tpu.dot_dimension_numbers<[1], [1], [0], [0], [0, 0, 1, 0], [], []>} : vector<8x8xf32>, vector<16x8xf32>, vector<8x16xf32> -> vector<8x16xf32>
    %cst_98 = arith.constant -1.000000e+09 : f32
    %258 = vector.broadcast %cst_98 : f32 to vector<8x16xf32>
    %259 = arith.select %13, %257, %258 : vector<8x16xi1>, vector<8x16xf32>
    %cst_99 = arith.constant dense<0xFF800000> : vector<8xf32>
    %260 = vector.multi_reduction <maximumf>, %259, %cst_99 [1] : vector<8x16xf32> to vector<8xf32>
    %261 = vector.shape_cast %260 : vector<8xf32> to vector<8x1xf32>
    %262 = vector.broadcast %261 : vector<8x1xf32> to vector<8x16xf32>
    %263 = arith.subf %259, %262 : vector<8x16xf32>
    %264 = math.exp %263 : vector<8x16xf32>
    %cst_100 = arith.constant dense<0.000000e+00> : vector<8xf32>
    %265 = vector.multi_reduction <add>, %264, %cst_100 [1] : vector<8x16xf32> to vector<8xf32>
    %266 = vector.shape_cast %265 : vector<8xf32> to vector<8x1xf32>
    %267 = tpu.reciprocal %266 {approx = true} : vector<8x1xf32> -> vector<8x1xf32>
    %268 = vector.broadcast %267 : vector<8x1xf32> to vector<8x16xf32>
    %269 = arith.mulf %264, %268 : vector<8x16xf32>
    %cst_101 = arith.constant dense<0.000000e+00> : vector<8x8xf32>
    %270 = tpu.matmul %269, %256, %cst_101 {dimension_numbers = #tpu.dot_dimension_numbers<[1], [0], [0], [1], [0, 0, 1, 1], [], []>} : vector<8x16xf32>, vector<16x8xf32>, vector<8x8xf32> -> vector<8x8xf32>
    %c0_102 = arith.constant 0 : index
    %c8_103 = arith.constant 8 : index
    %271 = vector.load %arg20[%c0_102, %c8_103] : memref<16x32xf32, #tpu.memory_space<vmem>>, vector<8x8xf32>
    tpu.vector_store %arg20[%c0_102, %c8_103], %270 {strides = array<i32>} : memref<16x32xf32, #tpu.memory_space<vmem>>, vector<8x8xf32>,
    %272 = vector.extract_strided_slice %233 {offsets = [0, 16], sizes = [8, 8], strides = [1, 1]} : vector<8x32xf32> to vector<8x8xf32>
    %273 = vector.extract_strided_slice %234 {offsets = [0, 16], sizes = [16, 8], strides = [1, 1]} : vector<16x32xf32> to vector<16x8xf32>
    %274 = vector.extract_strided_slice %235 {offsets = [0, 16], sizes = [16, 8], strides = [1, 1]} : vector<16x32xf32> to vector<16x8xf32>
    %cst_104 = arith.constant dense<0.000000e+00> : vector<8x16xf32>
    %275 = tpu.matmul %272, %273, %cst_104 {dimension_numbers = #tpu.dot_dimension_numbers<[1], [1], [0], [0], [0, 0, 1, 0], [], []>} : vector<8x8xf32>, vector<16x8xf32>, vector<8x16xf32> -> vector<8x16xf32>
    %cst_105 = arith.constant -1.000000e+09 : f32
    %276 = vector.broadcast %cst_105 : f32 to vector<8x16xf32>
    %277 = arith.select %13, %275, %276 : vector<8x16xi1>, vector<8x16xf32>
    %cst_106 = arith.constant dense<0xFF800000> : vector<8xf32>
    %278 = vector.multi_reduction <maximumf>, %277, %cst_106 [1] : vector<8x16xf32> to vector<8xf32>
    %279 = vector.shape_cast %278 : vector<8xf32> to vector<8x1xf32>
    %280 = vector.broadcast %279 : vector<8x1xf32> to vector<8x16xf32>
    %281 = arith.subf %277, %280 : vector<8x16xf32>
    %282 = math.exp %281 : vector<8x16xf32>
    %cst_107 = arith.constant dense<0.000000e+00> : vector<8xf32>
    %283 = vector.multi_reduction <add>, %282, %cst_107 [1] : vector<8x16xf32> to vector<8xf32>
    %284 = vector.shape_cast %283 : vector<8xf32> to vector<8x1xf32>
    %285 = tpu.reciprocal %284 {approx = true} : vector<8x1xf32> -> vector<8x1xf32>
    %286 = vector.broadcast %285 : vector<8x1xf32> to vector<8x16xf32>
    %287 = arith.mulf %282, %286 : vector<8x16xf32>
    %cst_108 = arith.constant dense<0.000000e+00> : vector<8x8xf32>
    %288 = tpu.matmul %287, %274, %cst_108 {dimension_numbers = #tpu.dot_dimension_numbers<[1], [0], [0], [1], [0, 0, 1, 1], [], []>} : vector<8x16xf32>, vector<16x8xf32>, vector<8x8xf32> -> vector<8x8xf32>
    %c0_109 = arith.constant 0 : index
    %c16_110 = arith.constant 16 : index
    %289 = vector.load %arg20[%c0_109, %c16_110] : memref<16x32xf32, #tpu.memory_space<vmem>>, vector<8x8xf32>
    tpu.vector_store %arg20[%c0_109, %c16_110], %288 {strides = array<i32>} : memref<16x32xf32, #tpu.memory_space<vmem>>, vector<8x8xf32>,
    %290 = vector.extract_strided_slice %233 {offsets = [0, 24], sizes = [8, 8], strides = [1, 1]} : vector<8x32xf32> to vector<8x8xf32>
    %291 = vector.extract_strided_slice %234 {offsets = [0, 24], sizes = [16, 8], strides = [1, 1]} : vector<16x32xf32> to vector<16x8xf32>
    %292 = vector.extract_strided_slice %235 {offsets = [0, 24], sizes = [16, 8], strides = [1, 1]} : vector<16x32xf32> to vector<16x8xf32>
    %cst_111 = arith.constant dense<0.000000e+00> : vector<8x16xf32>
    %293 = tpu.matmul %290, %291, %cst_111 {dimension_numbers = #tpu.dot_dimension_numbers<[1], [1], [0], [0], [0, 0, 1, 0], [], []>} : vector<8x8xf32>, vector<16x8xf32>, vector<8x16xf32> -> vector<8x16xf32>
    %cst_112 = arith.constant -1.000000e+09 : f32
    %294 = vector.broadcast %cst_112 : f32 to vector<8x16xf32>
    %295 = arith.select %13, %293, %294 : vector<8x16xi1>, vector<8x16xf32>
    %cst_113 = arith.constant dense<0xFF800000> : vector<8xf32>
    %296 = vector.multi_reduction <maximumf>, %295, %cst_113 [1] : vector<8x16xf32> to vector<8xf32>
    %297 = vector.shape_cast %296 : vector<8xf32> to vector<8x1xf32>
    %298 = vector.broadcast %297 : vector<8x1xf32> to vector<8x16xf32>
    %299 = arith.subf %295, %298 : vector<8x16xf32>
    %300 = math.exp %299 : vector<8x16xf32>
    %cst_114 = arith.constant dense<0.000000e+00> : vector<8xf32>
    %301 = vector.multi_reduction <add>, %300, %cst_114 [1] : vector<8x16xf32> to vector<8xf32>
    %302 = vector.shape_cast %301 : vector<8xf32> to vector<8x1xf32>
    %303 = tpu.reciprocal %302 {approx = true} : vector<8x1xf32> -> vector<8x1xf32>
    %304 = vector.broadcast %303 : vector<8x1xf32> to vector<8x16xf32>
    %305 = arith.mulf %300, %304 : vector<8x16xf32>
    %cst_115 = arith.constant dense<0.000000e+00> : vector<8x8xf32>
    %306 = tpu.matmul %305, %292, %cst_115 {dimension_numbers = #tpu.dot_dimension_numbers<[1], [0], [0], [1], [0, 0, 1, 1], [], []>} : vector<8x16xf32>, vector<16x8xf32>, vector<8x8xf32> -> vector<8x8xf32>
    %c0_116 = arith.constant 0 : index
    %c24_117 = arith.constant 24 : index
    %307 = vector.load %arg20[%c0_116, %c24_117] : memref<16x32xf32, #tpu.memory_space<vmem>>, vector<8x8xf32>
    tpu.vector_store %arg20[%c0_116, %c24_117], %306 {strides = array<i32>} : memref<16x32xf32, #tpu.memory_space<vmem>>, vector<8x8xf32>,
    %308 = vector.extract_strided_slice %228 {offsets = [8, 0], sizes = [8, 32], strides = [1, 1]} : vector<16x32xf32> to vector<8x32xf32>
    %309 = vector.extract_strided_slice %231 {offsets = [16, 0], sizes = [16, 32], strides = [1, 1]} : vector<32x32xf32> to vector<16x32xf32>
    %310 = vector.extract_strided_slice %232 {offsets = [16, 0], sizes = [16, 32], strides = [1, 1]} : vector<32x32xf32> to vector<16x32xf32>
    %311 = vector.extract_strided_slice %308 {offsets = [0, 0], sizes = [8, 8], strides = [1, 1]} : vector<8x32xf32> to vector<8x8xf32>
    %312 = vector.extract_strided_slice %309 {offsets = [0, 0], sizes = [16, 8], strides = [1, 1]} : vector<16x32xf32> to vector<16x8xf32>
    %313 = vector.extract_strided_slice %310 {offsets = [0, 0], sizes = [16, 8], strides = [1, 1]} : vector<16x32xf32> to vector<16x8xf32>
    %cst_118 = arith.constant dense<0.000000e+00> : vector<8x16xf32>
    %314 = tpu.matmul %311, %312, %cst_118 {dimension_numbers = #tpu.dot_dimension_numbers<[1], [1], [0], [0], [0, 0, 1, 0], [], []>} : vector<8x8xf32>, vector<16x8xf32>, vector<8x16xf32> -> vector<8x16xf32>
    %cst_119 = arith.constant -1.000000e+09 : f32
    %315 = vector.broadcast %cst_119 : f32 to vector<8x16xf32>
    %316 = arith.select %19, %314, %315 : vector<8x16xi1>, vector<8x16xf32>
    %cst_120 = arith.constant dense<0xFF800000> : vector<8xf32>
    %317 = vector.multi_reduction <maximumf>, %316, %cst_120 [1] : vector<8x16xf32> to vector<8xf32>
    %318 = vector.shape_cast %317 : vector<8xf32> to vector<8x1xf32>
    %319 = vector.broadcast %318 : vector<8x1xf32> to vector<8x16xf32>
    %320 = arith.subf %316, %319 : vector<8x16xf32>
    %321 = math.exp %320 : vector<8x16xf32>
    %cst_121 = arith.constant dense<0.000000e+00> : vector<8xf32>
    %322 = vector.multi_reduction <add>, %321, %cst_121 [1] : vector<8x16xf32> to vector<8xf32>
    %323 = vector.shape_cast %322 : vector<8xf32> to vector<8x1xf32>
    %324 = tpu.reciprocal %323 {approx = true} : vector<8x1xf32> -> vector<8x1xf32>
    %325 = vector.broadcast %324 : vector<8x1xf32> to vector<8x16xf32>
    %326 = arith.mulf %321, %325 : vector<8x16xf32>
    %cst_122 = arith.constant dense<0.000000e+00> : vector<8x8xf32>
    %327 = tpu.matmul %326, %313, %cst_122 {dimension_numbers = #tpu.dot_dimension_numbers<[1], [0], [0], [1], [0, 0, 1, 1], [], []>} : vector<8x16xf32>, vector<16x8xf32>, vector<8x8xf32> -> vector<8x8xf32>
    %c8_123 = arith.constant 8 : index
    %c0_124 = arith.constant 0 : index
    %328 = vector.load %arg20[%c8_123, %c0_124] : memref<16x32xf32, #tpu.memory_space<vmem>>, vector<8x8xf32>
    tpu.vector_store %arg20[%c8_123, %c0_124], %327 {strides = array<i32>} : memref<16x32xf32, #tpu.memory_space<vmem>>, vector<8x8xf32>,
    %329 = vector.extract_strided_slice %308 {offsets = [0, 8], sizes = [8, 8], strides = [1, 1]} : vector<8x32xf32> to vector<8x8xf32>
    %330 = vector.extract_strided_slice %309 {offsets = [0, 8], sizes = [16, 8], strides = [1, 1]} : vector<16x32xf32> to vector<16x8xf32>
    %331 = vector.extract_strided_slice %310 {offsets = [0, 8], sizes = [16, 8], strides = [1, 1]} : vector<16x32xf32> to vector<16x8xf32>
    %cst_125 = arith.constant dense<0.000000e+00> : vector<8x16xf32>
    %332 = tpu.matmul %329, %330, %cst_125 {dimension_numbers = #tpu.dot_dimension_numbers<[1], [1], [0], [0], [0, 0, 1, 0], [], []>} : vector<8x8xf32>, vector<16x8xf32>, vector<8x16xf32> -> vector<8x16xf32>
    %cst_126 = arith.constant -1.000000e+09 : f32
    %333 = vector.broadcast %cst_126 : f32 to vector<8x16xf32>
    %334 = arith.select %19, %332, %333 : vector<8x16xi1>, vector<8x16xf32>
    %cst_127 = arith.constant dense<0xFF800000> : vector<8xf32>
    %335 = vector.multi_reduction <maximumf>, %334, %cst_127 [1] : vector<8x16xf32> to vector<8xf32>
    %336 = vector.shape_cast %335 : vector<8xf32> to vector<8x1xf32>
    %337 = vector.broadcast %336 : vector<8x1xf32> to vector<8x16xf32>
    %338 = arith.subf %334, %337 : vector<8x16xf32>
    %339 = math.exp %338 : vector<8x16xf32>
    %cst_128 = arith.constant dense<0.000000e+00> : vector<8xf32>
    %340 = vector.multi_reduction <add>, %339, %cst_128 [1] : vector<8x16xf32> to vector<8xf32>
    %341 = vector.shape_cast %340 : vector<8xf32> to vector<8x1xf32>
    %342 = tpu.reciprocal %341 {approx = true} : vector<8x1xf32> -> vector<8x1xf32>
    %343 = vector.broadcast %342 : vector<8x1xf32> to vector<8x16xf32>
    %344 = arith.mulf %339, %343 : vector<8x16xf32>
    %cst_129 = arith.constant dense<0.000000e+00> : vector<8x8xf32>
    %345 = tpu.matmul %344, %331, %cst_129 {dimension_numbers = #tpu.dot_dimension_numbers<[1], [0], [0], [1], [0, 0, 1, 1], [], []>} : vector<8x16xf32>, vector<16x8xf32>, vector<8x8xf32> -> vector<8x8xf32>
    %c8_130 = arith.constant 8 : index
    %c8_131 = arith.constant 8 : index
    %346 = vector.load %arg20[%c8_130, %c8_131] : memref<16x32xf32, #tpu.memory_space<vmem>>, vector<8x8xf32>
    tpu.vector_store %arg20[%c8_130, %c8_131], %345 {strides = array<i32>} : memref<16x32xf32, #tpu.memory_space<vmem>>, vector<8x8xf32>,
    %347 = vector.extract_strided_slice %308 {offsets = [0, 16], sizes = [8, 8], strides = [1, 1]} : vector<8x32xf32> to vector<8x8xf32>
    %348 = vector.extract_strided_slice %309 {offsets = [0, 16], sizes = [16, 8], strides = [1, 1]} : vector<16x32xf32> to vector<16x8xf32>
    %349 = vector.extract_strided_slice %310 {offsets = [0, 16], sizes = [16, 8], strides = [1, 1]} : vector<16x32xf32> to vector<16x8xf32>
    %cst_132 = arith.constant dense<0.000000e+00> : vector<8x16xf32>
    %350 = tpu.matmul %347, %348, %cst_132 {dimension_numbers = #tpu.dot_dimension_numbers<[1], [1], [0], [0], [0, 0, 1, 0], [], []>} : vector<8x8xf32>, vector<16x8xf32>, vector<8x16xf32> -> vector<8x16xf32>
    %cst_133 = arith.constant -1.000000e+09 : f32
    %351 = vector.broadcast %cst_133 : f32 to vector<8x16xf32>
    %352 = arith.select %19, %350, %351 : vector<8x16xi1>, vector<8x16xf32>
    %cst_134 = arith.constant dense<0xFF800000> : vector<8xf32>
    %353 = vector.multi_reduction <maximumf>, %352, %cst_134 [1] : vector<8x16xf32> to vector<8xf32>
    %354 = vector.shape_cast %353 : vector<8xf32> to vector<8x1xf32>
    %355 = vector.broadcast %354 : vector<8x1xf32> to vector<8x16xf32>
    %356 = arith.subf %352, %355 : vector<8x16xf32>
    %357 = math.exp %356 : vector<8x16xf32>
    %cst_135 = arith.constant dense<0.000000e+00> : vector<8xf32>
    %358 = vector.multi_reduction <add>, %357, %cst_135 [1] : vector<8x16xf32> to vector<8xf32>
    %359 = vector.shape_cast %358 : vector<8xf32> to vector<8x1xf32>
    %360 = tpu.reciprocal %359 {approx = true} : vector<8x1xf32> -> vector<8x1xf32>
    %361 = vector.broadcast %360 : vector<8x1xf32> to vector<8x16xf32>
    %362 = arith.mulf %357, %361 : vector<8x16xf32>
    %cst_136 = arith.constant dense<0.000000e+00> : vector<8x8xf32>
    %363 = tpu.matmul %362, %349, %cst_136 {dimension_numbers = #tpu.dot_dimension_numbers<[1], [0], [0], [1], [0, 0, 1, 1], [], []>} : vector<8x16xf32>, vector<16x8xf32>, vector<8x8xf32> -> vector<8x8xf32>
    %c8_137 = arith.constant 8 : index
    %c16_138 = arith.constant 16 : index
    %364 = vector.load %arg20[%c8_137, %c16_138] : memref<16x32xf32, #tpu.memory_space<vmem>>, vector<8x8xf32>
    tpu.vector_store %arg20[%c8_137, %c16_138], %363 {strides = array<i32>} : memref<16x32xf32, #tpu.memory_space<vmem>>, vector<8x8xf32>,
    %365 = vector.extract_strided_slice %308 {offsets = [0, 24], sizes = [8, 8], strides = [1, 1]} : vector<8x32xf32> to vector<8x8xf32>
    %366 = vector.extract_strided_slice %309 {offsets = [0, 24], sizes = [16, 8], strides = [1, 1]} : vector<16x32xf32> to vector<16x8xf32>
    %367 = vector.extract_strided_slice %310 {offsets = [0, 24], sizes = [16, 8], strides = [1, 1]} : vector<16x32xf32> to vector<16x8xf32>
    %cst_139 = arith.constant dense<0.000000e+00> : vector<8x16xf32>
    %368 = tpu.matmul %365, %366, %cst_139 {dimension_numbers = #tpu.dot_dimension_numbers<[1], [1], [0], [0], [0, 0, 1, 0], [], []>} : vector<8x8xf32>, vector<16x8xf32>, vector<8x16xf32> -> vector<8x16xf32>
    %cst_140 = arith.constant -1.000000e+09 : f32
    %369 = vector.broadcast %cst_140 : f32 to vector<8x16xf32>
    %370 = arith.select %19, %368, %369 : vector<8x16xi1>, vector<8x16xf32>
    %cst_141 = arith.constant dense<0xFF800000> : vector<8xf32>
    %371 = vector.multi_reduction <maximumf>, %370, %cst_141 [1] : vector<8x16xf32> to vector<8xf32>
    %372 = vector.shape_cast %371 : vector<8xf32> to vector<8x1xf32>
    %373 = vector.broadcast %372 : vector<8x1xf32> to vector<8x16xf32>
    %374 = arith.subf %370, %373 : vector<8x16xf32>
    %375 = math.exp %374 : vector<8x16xf32>
    %cst_142 = arith.constant dense<0.000000e+00> : vector<8xf32>
    %376 = vector.multi_reduction <add>, %375, %cst_142 [1] : vector<8x16xf32> to vector<8xf32>
    %377 = vector.shape_cast %376 : vector<8xf32> to vector<8x1xf32>
    %378 = tpu.reciprocal %377 {approx = true} : vector<8x1xf32> -> vector<8x1xf32>
    %379 = vector.broadcast %378 : vector<8x1xf32> to vector<8x16xf32>
    %380 = arith.mulf %375, %379 : vector<8x16xf32>
    %cst_143 = arith.constant dense<0.000000e+00> : vector<8x8xf32>
    %381 = tpu.matmul %380, %367, %cst_143 {dimension_numbers = #tpu.dot_dimension_numbers<[1], [0], [0], [1], [0, 0, 1, 1], [], []>} : vector<8x16xf32>, vector<16x8xf32>, vector<8x8xf32> -> vector<8x8xf32>
    %c8_144 = arith.constant 8 : index
    %c24_145 = arith.constant 24 : index
    %382 = vector.load %arg20[%c8_144, %c24_145] : memref<16x32xf32, #tpu.memory_space<vmem>>, vector<8x8xf32>
    tpu.vector_store %arg20[%c8_144, %c24_145], %381 {strides = array<i32>} : memref<16x32xf32, #tpu.memory_space<vmem>>, vector<8x8xf32>,
    %c0_146 = arith.constant 0 : index
    %c0_147 = arith.constant 0 : index
    %383 = vector.load %arg20[%c0_146, %c0_147] : memref<16x32xf32, #tpu.memory_space<vmem>>, vector<16x32xf32>
    %c0_148 = arith.constant 0 : index
    %c0_149 = arith.constant 0 : index
    %384 = vector.load %arg8[%c0_148, %c0_149] : memref<32x32xf32, #tpu.memory_space<vmem>>, vector<32x32xf32>
    %cst_150 = arith.constant dense<0.000000e+00> : vector<16x32xf32>
    %385 = tpu.matmul %383, %384, %cst_150 {dimension_numbers = #tpu.dot_dimension_numbers<[1], [0], [0], [1], [0, 0, 1, 1], [], []>} : vector<16x32xf32>, vector<32x32xf32>, vector<16x32xf32> -> vector<16x32xf32>
    %386 = arith.addf %202, %385 : vector<16x32xf32>
    %c0_151 = arith.constant 0 : index
    %c0_152 = arith.constant 0 : index
    %387 = vector.load %arg17[%c0_151, %c0_152] : memref<1x32xf32, #tpu.memory_space<vmem>>, vector<1x32xf32>
    %c0_153 = arith.constant 0 : index
    %c0_154 = arith.constant 0 : index
    %388 = vector.load %arg18[%c0_153, %c0_154] : memref<1x32xf32, #tpu.memory_space<vmem>>, vector<1x32xf32>
    %cst_155 = arith.constant dense<0.000000e+00> : vector<16xf32>
    %389 = vector.multi_reduction <add>, %386, %cst_155 [1] : vector<16x32xf32> to vector<16xf32>
    %390 = vector.shape_cast %389 : vector<16xf32> to vector<16x1xf32>
    %cst_156 = arith.constant 3.200000e+01 : f32
    %391 = vector.broadcast %cst_156 : f32 to vector<16x1xf32>
    %392 = arith.divf %390, %391 : vector<16x1xf32>
    %393 = vector.broadcast %392 : vector<16x1xf32> to vector<16x32xf32>
    %394 = arith.subf %386, %393 : vector<16x32xf32>
    %395 = arith.mulf %394, %394 : vector<16x32xf32>
    %cst_157 = arith.constant dense<0.000000e+00> : vector<16xf32>
    %396 = vector.multi_reduction <add>, %395, %cst_157 [1] : vector<16x32xf32> to vector<16xf32>
    %397 = vector.shape_cast %396 : vector<16xf32> to vector<16x1xf32>
    %cst_158 = arith.constant 3.100000e+01 : f32
    %398 = vector.broadcast %cst_158 : f32 to vector<16x1xf32>
    %399 = arith.divf %397, %398 : vector<16x1xf32>
    %400 = vector.broadcast %392 : vector<16x1xf32> to vector<16x32xf32>
    %401 = arith.subf %386, %400 : vector<16x32xf32>
    %402 = vector.broadcast %387 : vector<1x32xf32> to vector<16x32xf32>
    %403 = arith.mulf %402, %401 : vector<16x32xf32>
    %404 = math.sqrt %399 : vector<16x1xf32>
    %cst_159 = arith.constant 9.99999997E-7 : f32
    %405 = vector.broadcast %cst_159 : f32 to vector<16x1xf32>
    %406 = arith.addf %404, %405 : vector<16x1xf32>
    %407 = vector.broadcast %406 : vector<16x1xf32> to vector<16x32xf32>
    %408 = arith.divf %403, %407 : vector<16x32xf32>
    %409 = vector.broadcast %388 : vector<1x32xf32> to vector<16x32xf32>
    %410 = arith.addf %408, %409 : vector<16x32xf32>
    %c0_160 = arith.constant 0 : index
    %c0_161 = arith.constant 0 : index
    %411 = vector.load %arg9[%c0_160, %c0_161] : memref<32x64xf32, #tpu.memory_space<vmem>>, vector<32x64xf32>
    %cst_162 = arith.constant dense<0.000000e+00> : vector<16x64xf32>
    %412 = tpu.matmul %410, %411, %cst_162 {dimension_numbers = #tpu.dot_dimension_numbers<[1], [0], [0], [1], [0, 0, 1, 1], [], []>} : vector<16x32xf32>, vector<32x64xf32>, vector<16x64xf32> -> vector<16x64xf32>
    %c0_163 = arith.constant 0 : index
    %c0_164 = arith.constant 0 : index
    %413 = vector.load %arg10[%c0_163, %c0_164] : memref<1x64xf32, #tpu.memory_space<vmem>>, vector<1x64xf32>
    %414 = vector.broadcast %413 : vector<1x64xf32> to vector<16x64xf32>
    %415 = arith.addf %412, %414 : vector<16x64xf32>
    %cst_165 = arith.constant 0.000000e+00 : f32
    %416 = vector.broadcast %cst_165 : f32 to vector<16x64xf32>
    %417 = arith.maximumf %415, %416 : vector<16x64xf32>
    %c0_166 = arith.constant 0 : index
    %c0_167 = arith.constant 0 : index
    %418 = vector.load %arg11[%c0_166, %c0_167] : memref<64x32xf32, #tpu.memory_space<vmem>>, vector<64x32xf32>
    %cst_168 = arith.constant dense<0.000000e+00> : vector<16x32xf32>
    %419 = tpu.matmul %417, %418, %cst_168 {dimension_numbers = #tpu.dot_dimension_numbers<[1], [0], [0], [1], [0, 0, 1, 1], [], []>} : vector<16x64xf32>, vector<64x32xf32>, vector<16x32xf32> -> vector<16x32xf32>
    %420 = arith.addf %386, %419 : vector<16x32xf32>
    %c0_169 = arith.constant 0 : index
    %c0_170 = arith.constant 0 : index
    %421 = vector.load %arg12[%c0_169, %c0_170] : memref<1x32xf32, #tpu.memory_space<vmem>>, vector<1x32xf32>
    %422 = vector.broadcast %421 : vector<1x32xf32> to vector<16x32xf32>
    %423 = arith.addf %420, %422 : vector<16x32xf32>
    %424 = vector.shape_cast %423 : vector<16x32xf32> to vector<2x8x32xf32>
    %c0_171 = arith.constant 0 : index
    %c0_172 = arith.constant 0 : index
    %c0_173 = arith.constant 0 : index
    %425 = vector.load %arg19[%c0_171, %c0_172, %c0_173] : memref<2x8x32xf32, #tpu.memory_space<vmem>>, vector<2x8x32xf32>
    tpu.vector_store %arg19[%c0_171, %c0_172, %c0_173], %424 {strides = array<i32>} : memref<2x8x32xf32, #tpu.memory_space<vmem>>, vector<2x8x32xf32>,
    return
  }
  func.func @transform_0(%arg0: i32, %arg1: memref<2xi32, #tpu.memory_space<smem>>) -> (i32, i32, i32) {
    %c0_i32 = arith.constant 0 : i32
    %c0_i32_0 = arith.constant 0 : i32
    %c0_i32_1 = arith.constant 0 : i32
    return %arg0, %c0_i32, %c0_i32_0 : i32, i32, i32
  }
  func.func @transform_1(%arg0: i32, %arg1: memref<2xi32, #tpu.memory_space<smem>>) -> (i32, i32, i32) {
    %c0_i32 = arith.constant 0 : i32
    %c0_i32_0 = arith.constant 0 : i32
    %c0_i32_1 = arith.constant 0 : i32
    return %arg0, %c0_i32, %c0_i32_0 : i32, i32, i32
  }
  func.func @transform_2(%arg0: i32, %arg1: memref<2xi32, #tpu.memory_space<smem>>) -> (i32, i32) {
    %c0_i32 = arith.constant 0 : i32
    %c0_i32_0 = arith.constant 0 : i32
    %c0_i32_1 = arith.constant 0 : i32
    return %c0_i32, %c0_i32_0 : i32, i32
  }
  func.func @transform_3(%arg0: i32, %arg1: memref<2xi32, #tpu.memory_space<smem>>) -> (i32, i32) {
    %c0_i32 = arith.constant 0 : i32
    %c0_i32_0 = arith.constant 0 : i32
    %c0_i32_1 = arith.constant 0 : i32
    return %c0_i32, %c0_i32_0 : i32, i32
  }
  func.func @transform_4(%arg0: i32, %arg1: memref<2xi32, #tpu.memory_space<smem>>) -> (i32, i32) {
    %c0_i32 = arith.constant 0 : i32
    %c0_i32_0 = arith.constant 0 : i32
    %c0_i32_1 = arith.constant 0 : i32
    return %c0_i32, %c0_i32_0 : i32, i32
  }
  func.func @transform_5(%arg0: i32, %arg1: memref<2xi32, #tpu.memory_space<smem>>) -> (i32, i32) {
    %c0_i32 = arith.constant 0 : i32
    %c0_i32_0 = arith.constant 0 : i32
    %c0_i32_1 = arith.constant 0 : i32
    return %c0_i32, %c0_i32_0 : i32, i32
  }
  func.func @transform_6(%arg0: i32, %arg1: memref<2xi32, #tpu.memory_space<smem>>) -> (i32, i32) {
    %c0_i32 = arith.constant 0 : i32
    %c0_i32_0 = arith.constant 0 : i32
    %c0_i32_1 = arith.constant 0 : i32
    return %c0_i32, %c0_i32_0 : i32, i32
  }
  func.func @transform_7(%arg0: i32, %arg1: memref<2xi32, #tpu.memory_space<smem>>) -> (i32, i32) {
    %c0_i32 = arith.constant 0 : i32
    %c0_i32_0 = arith.constant 0 : i32
    %c0_i32_1 = arith.constant 0 : i32
    return %c0_i32, %c0_i32_0 : i32, i32
  }
  func.func @transform_8(%arg0: i32, %arg1: memref<2xi32, #tpu.memory_space<smem>>) -> (i32, i32) {
    %c0_i32 = arith.constant 0 : i32
    %c0_i32_0 = arith.constant 0 : i32
    %c0_i32_1 = arith.constant 0 : i32
    return %c0_i32, %c0_i32_0 : i32, i32
  }
  func.func @transform_9(%arg0: i32, %arg1: memref<2xi32, #tpu.memory_space<smem>>) -> (i32, i32) {
    %c0_i32 = arith.constant 0 : i32
    %c0_i32_0 = arith.constant 0 : i32
    %c0_i32_1 = arith.constant 0 : i32
    return %c0_i32, %c0_i32_0 : i32, i32
  }
  func.func @transform_10(%arg0: i32, %arg1: memref<2xi32, #tpu.memory_space<smem>>) -> (i32, i32) {
    %c0_i32 = arith.constant 0 : i32
    %c0_i32_0 = arith.constant 0 : i32
    %c0_i32_1 = arith.constant 0 : i32
    return %c0_i32, %c0_i32_0 : i32, i32
  }
  func.func @transform_11(%arg0: i32, %arg1: memref<2xi32, #tpu.memory_space<smem>>) -> (i32, i32) {
    %c0_i32 = arith.constant 0 : i32
    %c0_i32_0 = arith.constant 0 : i32
    %c0_i32_1 = arith.constant 0 : i32
    return %c0_i32, %c0_i32_0 : i32, i32
  }
  func.func @transform_12(%arg0: i32, %arg1: memref<2xi32, #tpu.memory_space<smem>>) -> (i32, i32) {
    %c0_i32 = arith.constant 0 : i32
    %c0_i32_0 = arith.constant 0 : i32
    %c0_i32_1 = arith.constant 0 : i32
    return %c0_i32, %c0_i32_0 : i32, i32
  }
  func.func @transform_13(%arg0: i32, %arg1: memref<2xi32, #tpu.memory_space<smem>>) -> (i32, i32) {
    %c0_i32 = arith.constant 0 : i32
    %c0_i32_0 = arith.constant 0 : i32
    %c0_i32_1 = arith.constant 0 : i32
    return %c0_i32, %c0_i32_0 : i32, i32
  }
  func.func @transform_14(%arg0: i32, %arg1: memref<2xi32, #tpu.memory_space<smem>>) -> (i32, i32) {
    %c0_i32 = arith.constant 0 : i32
    %c0_i32_0 = arith.constant 0 : i32
    %c0_i32_1 = arith.constant 0 : i32
    return %c0_i32, %c0_i32_0 : i32, i32
  }
  func.func @transform_15(%arg0: i32, %arg1: memref<2xi32, #tpu.memory_space<smem>>) -> (i32, i32) {
    %c0_i32 = arith.constant 0 : i32
    %c0_i32_0 = arith.constant 0 : i32
    %c0_i32_1 = arith.constant 0 : i32
    return %c0_i32, %c0_i32_0 : i32, i32
  }
  func.func @transform_16(%arg0: i32, %arg1: memref<2xi32, #tpu.memory_space<smem>>) -> (i32, i32) {
    %c0_i32 = arith.constant 0 : i32
    %c0_i32_0 = arith.constant 0 : i32
    %c0_i32_1 = arith.constant 0 : i32
    return %c0_i32, %c0_i32_0 : i32, i32
  }
  func.func @transform_17(%arg0: i32, %arg1: memref<2xi32, #tpu.memory_space<smem>>) -> (i32, i32, i32) {
    %c0_i32 = arith.constant 0 : i32
    %c0_i32_0 = arith.constant 0 : i32
    %c0_i32_1 = arith.constant 0 : i32
    return %arg0, %c0_i32, %c0_i32_0 : i32, i32, i32
  }
}

</mosaic_0001>

<bundles_post_ra>
// kernel: tpu_custom_call.1
= control target key start
LH: loop header
LB: loop body
LE: loop exit
PB: predicated region body
PF: predicated region fallthrough
CT: control target
= control target key end

     0   :  { %s5498_s0 = inlined_call_operand.hbm [shape: s32[2], index: 0, kind: input, shape index: {}]   ;;  %s5499_s1 = inlined_call_operand.hbm [shape: f32[2,8,32], index: 1, kind: input, shape index: {}]   ;;  %s5500_s2 = inlined_call_operand.vmem [shape: f32[2,16,32], index: 2, kind: input, shape index: {}]   ;;  %s5501_s3 = inlined_call_operand.vmem [shape: f32[32,96], index: 3, kind: input, shape index: {}]   ;;  %s5502_s4 = inlined_call_operand.vmem [shape: f32[32,32], index: 4, kind: input, shape index: {}]   ;;  %s5503_s5 = inlined_call_operand.hbm [shape: f32[32,32], index: 5, kind: input, shape index: {}]   ;;  %s5504_s6 = inlined_call_operand.hbm [shape: f32[32,64], index: 6, kind: input, shape index: {}]   ;;  %s5505_s7 = inlined_call_operand.hbm [shape: f32[32,32], index: 7, kind: input, shape index: {}]   ;;  %s5506_s8 = inlined_call_operand.hbm [shape: f32[32,64], index: 8, kind: input, shape index: {}]   ;;  %s5507_s9 = inlined_call_operand.vmem [shape: f32[1,64], index: 9, kind: input, shape index: {}]   ;;  %s5508_s10 = inlined_call_operand.vmem [shape: f32[64,32], index: 10, kind: input, shape index: {}]   ;;  %s5509_s11 = inlined_call_operand.vmem [shape: f32[1,32], index: 11, kind: input, shape index: {}]   ;;  %s5510_s12 = inlined_call_operand.vmem [shape: f32[1,32], index: 12, kind: input, shape index: {}]   ;;  %s5511_s13 = inlined_call_operand.vmem [shape: f32[1,32], index: 13, kind: input, shape index: {}]   ;;  %s5512_s14 = inlined_call_operand.vmem [shape: f32[1,32], index: 14, kind: input, shape index: {}]   ;;  %s5513_s15 = inlined_call_operand.vmem [shape: f32[1,32], index: 15, kind: input, shape index: {}]   ;;  %s5514_s16 = inlined_call_operand.vmem [shape: f32[1,32], index: 16, kind: input, shape index: {}]   ;;  %s5515_s17 = inlined_call_operand.vmem [shape: f32[1,32], index: 17, kind: input, shape index: {}]   ;;  %s5516_s18 = inlined_call_operand.hbm [shape: f32[2,8,32], index: 18, kind: output, shape index: {}]  }
   0x1   :  { %5520 = sst [smem:[#allocation20_spill]] %s5498_s0 }
   0x2   :  { %5521 = sst [smem:[#allocation21_spill]] %s5499_s1  ;;  %s5524_s29 = sld [smem:[#allocation20_spill]] }
   0x3   :  { %5522 = sst [smem:[#allocation22_spill]] %s5500_s2 }
   0x4   :  { %5523 = sst [smem:[#allocation23_spill]] %s5509_s11 }
   0x8   :  { %s4556_s11 = scalar_lea.hbm %s5524_s29, 16 }
   0x9   :  { %p4557_p0 = scmp.ne.s32.totalorder %s5524_s29, %s4556_s11  ;;  %p4560_p1 = scmp.lt.u32.totalorder %s4556_s11, %s5524_s29 }
   0xb   :  { %p4562_p2 = pnand %p4560_p1, %p4557_p0 }
   0xd   :  { %4565 = shalt.err (!%p4562_p2)  }
   0xe   :  { %s4708_s20 = smov [#allocation4]  }
   0xf   :  { %24 = dma.hbm_to_smem %s5524_s29, 16, %s4708_s20, [#allocation3] }
  0x10   :  { %4698 = dma.done.wait [#allocation3], 16 }
  0x11   :  { %4699 = vsyncadd [#allocation3], 4294967280 }
  0x12   :  { %26 = sfence }
  0x13   :  { %27 = vsyncpa [#allocation6], 0 }
  0x14   :  { %28 = vsyncpa [#allocation9], 0 }
  0x15   :  { %29 = vsyncpa [#allocation12], 0 }
  0x16   :  { %30 = vsyncpa [#allocation7], 0  ;;  %s4709_s2 = smov [#allocation8]   ;;  %s4710_s24 = smov [#allocation11]  }
  0x17   :  { %s54_s23 = sshll.u32 %s4709_s2, 4  ;;  %s78_s25 = sshll.u32 %s4710_s24, 4  ;;  %s55_s23 = int_to_ptr.vmem [resolvable:$true] %s54_s23  ;;  %s4840_s25 = int_to_ptr.vmem [resolvable:$true] %s78_s25 }
  0x18   :  { %s4566_s27 = scalar_lea.hbm %s5503_s5, 512 }
  0x19   :  { %p4567_p3 = scmp.ne.s32.totalorder %s5503_s5, %s4566_s27  ;;  %p4570_p4 = scmp.lt.u32.totalorder %s4566_s27, %s5503_s5 }
  0x1b   :  { %p4572_p5 = pnand %p4570_p4, %p4567_p3 }
  0x1d   :  { %4575 = shalt.err (!%p4572_p5)
}
  0x1e   :  { %s4576_s19 = scalar_lea.vmem %s55_s23, 512  ;;  %p4581_p7 = scmp.lt.s32.totalorder %s55_s23, %s55_s23 }
  0x1f   :  { %p4577_p6 = scmp.ne.s32.totalorder %s55_s23, %s4576_s19  ;;  %p4582_p8 = scmp.lt.s32.totalorder %s4576_s19, %s4576_s19 }
  0x21   :  { %p4583_p9 = por %p4582_p8, %p4581_p7 }
  0x23   :  { %p4584_p10 = pnand %p4583_p9, %p4577_p6 }
  0x25   :  { %4587 = shalt.err (!%p4584_p10)
}
  0x26   :  { %s4711_s1 = smov 128   ;;  %s4712_s20 = smov 8  }
  0x27   :  { %60 = dma.hbm_to_vmem [thread:$0]  %s5503_s5, 512, %s55_s23, [#allocation9], %s4711_s1, %s4711_s1, %s4712_s20  }
  0x28   :  { %s4588_s11 = scalar_lea.hbm %s5505_s7, 512 }
  0x29   :  { %p4589_p11 = scmp.ne.s32.totalorder %s5505_s7, %s4588_s11  ;;  %p4592_p12 = scmp.lt.u32.totalorder %s4588_s11, %s5505_s7 }
  0x2b   :  { %p4594_p13 = pnand %p4592_p12, %p4589_p11 }
  0x2d   :  { %4597 = shalt.err (!%p4594_p13)
}
  0x2e   :  { %s4598_s30 = scalar_lea.vmem %s4840_s25, 512  ;;  %p4603_p1 = scmp.lt.s32.totalorder %s4840_s25, %s4840_s25 }
  0x2f   :  { %p4599_p0 = scmp.ne.s32.totalorder %s4840_s25, %s4598_s30  ;;  %p4604_p2 = scmp.lt.s32.totalorder %s4598_s30, %s4598_s30 }
  0x31   :  { %p4605_p3 = por %p4604_p2, %p4603_p1 }
  0x33   :  { %p4606_p4 = pnand %p4605_p3, %p4599_p0 }
  0x35   :  { %4609 = shalt.err (!%p4606_p4)
}
  0x36   :  { %84 = dma.hbm_to_vmem [thread:$0]  %s5505_s7, 512, %s4840_s25, [#allocation12], %s4711_s1, %s4711_s1, %s4712_s20  }
  0x37   :  { %s4713_s0 = smov [#allocation5]   ;;  %s4714_s21 = smov [#allocation10]  }
  0x38   :  { %s36_s19 = sshll.u32 %s4713_s0, 4  ;;  %s66_s22 = sshll.u32 %s4714_s21, 4  ;;  %s37_s19 = int_to_ptr.vmem [resolvable:$true] %s36_s19  ;;  %s4877_s22 = int_to_ptr.vmem [resolvable:$true] %s66_s22 }
  0x39   :  { %s5525_s11 = sld [smem:[#allocation21_spill]] }
  0x3f   :  { %s4610_s26 = scalar_lea.hbm %s5525_s11, 256 }
  0x40   :  { %p4611_p5 = scmp.ne.s32.totalorder %s5525_s11, %s4610_s26  ;;  %p4614_p6 = scmp.lt.u32.totalorder %s4610_s26, %s5525_s11 }
  0x42   :  { %p4616_p7 = pnand %p4614_p6, %p4611_p5 }
  0x44   :  { %4619 = shalt.err (!%p4616_p7)
}
  0x45   :  { %s4620_s7 = scalar_lea.vmem %s37_s19, 256  ;;  %p4625_p9 = scmp.lt.s32.totalorder %s37_s19, %s37_s19 }
  0x46   :  { %p4621_p8 = scmp.ne.s32.totalorder %s37_s19, %s4620_s7  ;;  %p4626_p10 = scmp.lt.s32.totalorder %s4620_s7, %s4620_s7 }
  0x48   :  { %p4627_p11 = por %p4626_p10, %p4625_p9 }
  0x4a   :  { %p4628_p12 = pnand %p4627_p11, %p4621_p8 }
  0x4c   :  { %4631 = shalt.err (!%p4628_p12)
}
  0x4d   :  { %42 = dma.hbm_to_vmem [thread:$0]  %s5525_s11, 256, %s37_s19, [#allocation6], %s4711_s1, %s4711_s1, %s4712_s20  }
  0x4e   :  { %s4632_s21 = scalar_lea.hbm %s5504_s6, 512 }
  0x4f   :  { %p4633_p13 = scmp.ne.s32.totalorder %s5504_s6, %s4632_s21  ;;  %p4636_p0 = scmp.lt.u32.totalorder %s4632_s21, %s5504_s6 }
  0x51   :  { %p4638_p1 = pnand %p4636_p0, %p4633_p13 }
  0x53   :  { %4641 = shalt.err (!%p4638_p1)
}
  0x54   :  { %s4642_s28 = scalar_lea.vmem %s4877_s22, 512  ;;  %p4647_p3 = scmp.lt.s32.totalorder %s4877_s22, %s4877_s22 }
  0x55   :  { %p4643_p2 = scmp.ne.s32.totalorder %s4877_s22, %s4642_s28  ;;  %p4648_p4 = scmp.lt.s32.totalorder %s4642_s28, %s4642_s28 }
  0x57   :  { %p4649_p5 = por %p4648_p4, %p4647_p3 }
  0x59   :  { %p4650_p6 = pnand %p4649_p5, %p4643_p2 }
  0x5b   :  { %4653 = shalt.err (!%p4650_p6)
}
  0x5c   :  { %72 = dma.hbm_to_vmem [thread:$0]  %s5504_s6, 512, %s4877_s22, [#allocation9], %s4711_s1, %s4711_s1, %s4712_s20  }
  0x5d   :  { %s4715_s29 = smov [#allocation13]   ;;  %s4654_s5 = scalar_lea.hbm %s5506_s8, 512 }
  0x5e   :  { %s90_s30 = sshll.u32 %s4715_s29, 4  ;;  %p4655_p7 = scmp.ne.s32.totalorder %s5506_s8, %s4654_s5  ;;  %s91_s30 = int_to_ptr.vmem [resolvable:$true] %s90_s30 }
  0x5f   :  { %p4658_p8 = scmp.lt.u32.totalorder %s4654_s5, %s5506_s8 }
  0x61   :  { %p4660_p9 = pnand %p4658_p8, %p4655_p7 }
  0x63   :  { %4663 = shalt.err (!%p4660_p9)
}
  0x64   :  { %s4664_s24 = scalar_lea.vmem %s91_s30, 512  ;;  %p4669_p11 = scmp.lt.s32.totalorder %s91_s30, %s91_s30 }
  0x65   :  { %p4665_p10 = scmp.ne.s32.totalorder %s91_s30, %s4664_s24  ;;  %p4670_p12 = scmp.lt.s32.totalorder %s4664_s24, %s4664_s24 }
  0x67   :  { %p4671_p13 = por %p4670_p12, %p4669_p11 }
  0x69   :  { %p4672_p0 = pnand %p4671_p13, %p4665_p10 }
  0x6b   :  { %4675 = shalt.err (!%p4672_p0)
}
  0x6c   :  { %96 = dma.hbm_to_vmem [thread:$0]  %s5506_s8, 512, %s91_s30, [#allocation12], %s4711_s1, %s4711_s1, %s4712_s20  }
  0x6d   :  { %4700 = dma.done.wait [#allocation6], 256  }
  0x6e   :  { %4701 = vsyncadd [#allocation6], 4294967040 }
  0x6f   :  { %4702 = dma.done.wait [#allocation9], 1024  }
  0x70   :  { %4703 = vsyncadd [#allocation9], 4294966272 }
  0x71   :  { %4704 = dma.done.wait [#allocation12], 1024  }
  0x72   :  { %4705 = vsyncadd [#allocation12], 4294966272  ;;  %vm151_vm0 = vcmask 261120   ;;  %v4929_v0 = vld [vmem:[#allocation5] sm:$0xff]  ;;  %v4931_v1 = vld [vmem:[#allocation5 + $0x8] sm:$0xff]  ;;  %v4716_v46 = vmov 0.0   ;;  %v136_v63 = vlaneseq }
  0x73   :  { %v152_v2 = vsel %vm151_vm0, %v4929_v0, 0.0  ;;  %v155_v3 = vsel %vm151_vm0, %v4931_v1, 0.0  ;;  %v210_v14 = vld [vmem:[%s5501_s3] sm:$0xff]  ;;  %v211_v15 = vld [vmem:[%s5501_s3 + $0x8] sm:$0xff]  ;;  %v212_v16 = vld [vmem:[%s5501_s3 + $0x10] sm:$0xff]  ;;  %3994 = vmatprep.subr.mxu0 %v4716_v46  ;;  %vm4717_vm5 = vmmov 0  }
  0x74   :  { %153 = vadd.xlane.f32.xlu0 %v152_v2  ;;  %v4253_v17 = vpack.c.bf16 %v211_v15, %v210_v14  ;;  %v213_v18 = vld [vmem:[%s5501_s3 + $0x18] sm:$0xff]  ;;  %v3765_v36 = vld [vmem:[%s5510_s12] ss:$0 sm:$0xff]  ;;  %3996 = vmatprep.mubr.msk.f32.mxu0 %vm4717_vm5, %v4716_v46  ;;  %s4718_s12 = smov 88   ;;  %s4720_s23 = smov 120   ;;  %vm298_vm6 = vcmask 64512  }
  0x75   :  { %v4257_v19 = vpack.c.bf16 %v213_v18, %v212_v16  ;;  %v3766_v39 = vld [vmem:[%s5511_s13] ss:$0 sm:$0xff]  ;;  %s4719_s13 = smov 96   ;;  %s4721_s0 = smov 112   ;;  %v137_v2 = vshrl.u32 %v136_v63, 7  ;;  %vm632_vm8 = vcmask 130112   ;;  %vm5211_vm15 = vmpackc.low %vm298_vm6, %vm298_vm6 }
  0x76   :  { %4254 = vmatprep.subr.bf16.mxu1 %v4253_v17  ;;  %s4722_s21 = smov 80   ;;  %s4723_s2 = smov 104   ;;  %vm804_vm9 = vcmask 195712   ;;  %vm976_vm10 = vcmask 261312  }
  0x77   :  { %4256 = vmatpush3.bf16.msra.mxu1 %v4253_v17  ;;  %s4724_s24 = smov 72   ;;  %s4725_s6 = smov 64  }
  0x78   :  { %156 = vadd.xlane.f32.xlu0 %v155_v3  ;;  %4258 = vmatprep.subr.bf16.mxu1 %v4257_v19  ;;  %v5038_v3 = vand.u32 127, %v136_v63  ;;  %s4726_s22 = smov 48   ;;  %s4727_s8 = smov 40  }
  0x79   :  { %s4728_s26 = smov 56   ;;  %s4729_s27 = smov 16  }
  0x7a   :  { %vm5041_vm7 = vcmp.ge.s32.totalorder %v137_v2, %v5038_v3  ;;  %s4730_s28 = smov 24   ;;  %s142_s25 = sld [smem:[#allocation4]] }
  0x7b   :  { %4260 = vmatpush3.bf16.msra.mxu1 %v4257_v19 }
  0x7c   :  { %3984 = vmatprep.subr.mxu1 %v4716_v46 }
 0x101   :  { %v154_v4 = vpop.xlane.xlu0 %153 }
 0x102   :  { %v159_v5 = vmul.f32 0.03125, %v154_v4 }
 0x104   :  { %v161_v6 = vsub.f32 %v4929_v0, %v159_v5 }
 0x105   :  { %v157_v7 = vpop.xlane.xlu0 %156 }
 0x106   :  { %v160_v8 = vmul.f32 0.03125, %v157_v7  ;;  %v163_v9 = vmul.f32 %v161_v6, %v161_v6  ;;  %v180_v37 = vmul.f32 %v3765_v36, %v161_v6 }
 0x108   :  { %v162_v10 = vsub.f32 %v4931_v1, %v160_v8  ;;  %v165_v11 = vsel %vm151_vm0, %v163_v9, 0.0 }
 0x109   :  { %166 = vadd.xlane.f32.xlu1 %v165_v11 }
 0x10a   :  { %v164_v12 = vmul.f32 %v162_v10, %v162_v10  ;;  %v181_v41 = vmul.f32 %v3765_v36, %v162_v10 }
 0x10c   :  { %v168_v13 = vsel %vm151_vm0, %v164_v12, 0.0 }
 0x10d   :  { %169 = vadd.xlane.f32.xlu1 %v168_v13 }
 0x196   :  { %v167_v20 = vpop.xlane.xlu1 %166 }
 0x197   :  { %v172_v21 = vmul.f32 0.032258064, %v167_v20 }
 0x199   :  { %4468 = vrsqrt.f32 %v172_v21  ;;  %vm184_vm1 = vcmp.eq.f32.partialorder %v172_v21, inf  ;;  %v187_v26 = vand.u32 2147483648, %v172_v21  ;;  %vm186_vm2 = vcmp.eq.f32.partialorder %v172_v21, 0.0 }
 0x19a   :  { %v170_v22 = vpop.xlane.xlu1 %169 }
 0x19b   :  { %v173_v23 = vmul.f32 0.032258064, %v170_v22 }
 0x19d   :  { %4470 = vrsqrt.f32 %v173_v23  ;;  %vm191_vm3 = vcmp.eq.f32.partialorder %v173_v23, inf  ;;  %v194_v32 = vand.u32 2147483648, %v173_v23  ;;  %vm193_vm4 = vcmp.eq.f32.partialorder %v173_v23, 0.0 }
 0x1a3   :  { %v4469_v24 = vpop.eup %4468 }
 0x1a4   :  { %v183_v25 = vmul.f32 %v4469_v24, %v172_v21 }
 0x1a6   :  { %v185_v27 = vsel %vm184_vm1, %v172_v21, %v183_v25 }
 0x1a7   :  { %v4471_v28 = vpop.eup %4470  ;;  %v188_v29 = vsel %vm186_vm2, %v187_v26, %v185_v27  ;;  %vm2070_vm2 = vcmask 130048  }
 0x1a8   :  { %v190_v30 = vmul.f32 %v4471_v28, %v173_v23  ;;  %v196_v31 = vadd.f32 1e-06, %v188_v29 }
 0x1aa   :  { %v192_v33 = vsel %vm191_vm3, %v173_v23, %v190_v30  ;;  %4472 = vrcp.f32 %v196_v31 }
 0x1ab   :  { %v195_v34 = vsel %vm193_vm4, %v194_v32, %v192_v33 }
 0x1ac   :  { %v197_v35 = vadd.f32 1e-06, %v195_v34 }
 0x1ae   :  { %4474 = vrcp.f32 %v197_v35 }
 0x1b4   :  { %v4473_v38 = vpop.eup %4472 }
 0x1b5   :  { %v199_v40 = vmul.f32 %v4473_v38, %v180_v37 }
 0x1b7   :  { %v208_v42 = vadd.f32 %v3766_v39, %v199_v40 }
 0x1b8   :  { %v4475_v43 = vpop.eup %4474 }
 0x1b9   :  { %v201_v44 = vmul.f32 %v4475_v43, %v181_v41  ;;  %3981 = vmatprep.mubr.msk.f32.mxu1 %vm151_vm0, %v208_v42 }
 0x1bb   :  { %v209_v45 = vadd.f32 %v3766_v39, %v201_v44 }
 0x1bd   :  { %3982 = vmatmul.mubr.msk.f32.vlgmr.msra.gmra.mrb[0].mxu1 %vm151_vm0, %v209_v45 }
 0x1be   :  { %3986 = vmatprep.mubr.msk.f32.mxu1 %vm4717_vm5, %v4716_v46 }
 0x290   :  { %v4967_v47 = vpop.f32.mrb[0].mxu1 }
 0x291   :  { %v4969_v48 = vpop.f32.mrb[1].mxu1 }
 0x292   :  { %464 = vrot.lane.b32.xlu1 %v4969_v48, %s4718_s12  ;;  %296 = vrot.lane.b32.xlu0 %v4969_v48, %s4719_s13 }
 0x296   :  { %462 = vrot.lane.b32.xlu1 %v4969_v48, %s4720_s23  ;;  %634 = vrot.lane.b32.xlu0 %v4969_v48, %s4721_s0 }
 0x29a   :  { %636 = vrot.lane.b32.xlu1 %v4969_v48, %s4722_s21  ;;  %806 = vrot.lane.b32.xlu0 %v4969_v48, %s4723_s2 }
 0x29e   :  { %808 = vrot.lane.b32.xlu1 %v4969_v48, %s4724_s24  ;;  %1146 = vrot.lane.b32.xlu0 %v4967_v47, %s4718_s12 }
 0x2a2   :  { %979 = vrot.lane.b32.xlu1 %v4967_v47, %s4719_s13  ;;  %1317 = vrot.lane.b32.xlu0 %v4967_v47, %s4722_s21 }
 0x2a6   :  { %1144 = vrot.lane.b32.xlu1 %v4967_v47, %s4720_s23  ;;  %1488 = vrot.lane.b32.xlu0 %v4967_v47, %s4724_s24 }
 0x2aa   :  { %1315 = vrot.lane.b32.xlu1 %v4967_v47, %s4721_s0 }
 0x2ae   :  { %1486 = vrot.lane.b32.xlu1 %v4967_v47, %s4723_s2 }
 0x304   :  { %v465_v49 = vpop.permute.xlu1 %464  ;;  %v297_v50 = vpop.permute.xlu0 %296 }
 0x305   :  { %3985 = vmatpush3.xpose.msk.msra.mxu1 %vm298_vm6, %v297_v50  ;;  %3995 = vmatpush3.xpose.msk.msra.mxu0 %vm298_vm6, %v465_v49 }
 0x306   :  { %4004 = vmatprep.subr.mxu0 %v4716_v46  ;;  %3989 = vmatprep.subr.mxu1 %v4716_v46 }
 0x308   :  { %v463_v51 = vpop.permute.xlu1 %462  ;;  %3987 = vmatmul.mubr.msk.f32.vlgmr.msra.gmra.mrb[2].mxu1 %vm298_vm6, %v4969_v48  ;;  %v635_v52 = vpop.permute.xlu0 %634 }
 0x309   :  { %3997 = vmatmul.mubr.msk.f32.vlgmr.msra.gmra.mrb[0].mxu0 %vm298_vm6, %v463_v51  ;;  %3991 = vmatprep.mubr.msk.f32.mxu1 %vm4717_vm5, %v4716_v46 }
 0x30a   :  { %4006 = vmatprep.mubr.msk.f32.mxu0 %vm4717_vm5, %v4716_v46 }
 0x30c   :  { %v637_v53 = vpop.permute.xlu1 %636  ;;  %v807_v54 = vpop.permute.xlu0 %806 }
 0x30d   :  { %4005 = vmatpush3.xpose.msk.msra.mxu0 %vm298_vm6, %v637_v53 }
 0x30e   :  { %4014 = vmatprep.subr.mxu0 %v4716_v46 }
 0x310   :  { %v809_v55 = vpop.permute.xlu1 %808  ;;  %4007 = vmatmul.mubr.msk.f32.vlgmr.msra.gmra.mrb[2].mxu0 %vm298_vm6, %v635_v52  ;;  %v1147_v56 = vpop.permute.xlu0 %1146 }
 0x311   :  { %4015 = vmatpush3.xpose.msk.msra.mxu0 %vm298_vm6, %v809_v55  ;;  %4016 = vmatprep.mubr.msk.f32.mxu0 %vm4717_vm5, %v4716_v46 }
 0x312   :  { %4024 = vmatprep.subr.mxu0 %v4716_v46 }
 0x314   :  { %v980_v57 = vpop.permute.xlu1 %979  ;;  %4017 = vmatmul.mubr.msk.f32.vlgmr.msra.gmra.mrb[4].mxu0 %vm298_vm6, %v807_v54  ;;  %v1318_v59 = vpop.permute.xlu0 %1317 }
 0x315   :  { %4025 = vmatpush3.xpose.msk.msra.mxu0 %vm298_vm6, %v980_v57  ;;  %4026 = vmatprep.mubr.msk.f32.mxu0 %vm4717_vm5, %v4716_v46 }
 0x316   :  { %4034 = vmatprep.subr.mxu0 %v4716_v46 }
 0x318   :  { %v1145_v58 = vpop.permute.xlu1 %1144  ;;  %4027 = vmatmul.mubr.msk.f32.vlgmr.msra.gmra.mrb[6].mxu0 %vm298_vm6, %v4967_v47  ;;  %v1489_v61 = vpop.permute.xlu0 %1488 }
 0x319   :  { %4035 = vmatpush3.xpose.msk.msra.mxu0 %vm298_vm6, %v1147_v56  ;;  %4036 = vmatprep.mubr.msk.f32.mxu0 %vm4717_vm5, %v4716_v46 }
 0x31a   :  { %4044 = vmatprep.subr.mxu0 %v4716_v46 }
 0x31c   :  { %4037 = vmatmul.mubr.msk.f32.vlgmr.msra.gmra.mrb[8].mxu0 %vm298_vm6, %v1145_v58  ;;  %v1316_v60 = vpop.permute.xlu1 %1315 }
 0x31d   :  { %4045 = vmatpush3.xpose.msk.msra.mxu0 %vm298_vm6, %v1318_v59  ;;  %4046 = vmatprep.mubr.msk.f32.mxu0 %vm4717_vm5, %v4716_v46 }
 0x31e   :  { %4054 = vmatprep.subr.mxu0 %v4716_v46 }
 0x320   :  { %4047 = vmatmul.mubr.msk.f32.vlgmr.msra.gmra.mrb[10].mxu0 %vm298_vm6, %v1316_v60  ;;  %v1487_v62 = vpop.permute.xlu1 %1486 }
 0x321   :  { %4055 = vmatpush3.xpose.msk.msra.mxu0 %vm298_vm6, %v1489_v61  ;;  %4056 = vmatprep.mubr.msk.f32.mxu0 %vm4717_vm5, %v4716_v46 }
 0x324   :  { %4057 = vmatmul.mubr.msk.f32.vlgmr.msra.gmra.mrb[12].mxu0 %vm298_vm6, %v1487_v62 }
 0x3db   :  { %v369_v5 = vpop.f32.mrb[2].mxu1 }
 0x3dc   :  { %v373_v6 = vsel %vm5041_vm7, %v369_v5, -1e+09  ;;  %v3988_v7 = vpop.f32.mrb[3].mxu1  ;;  %v536_v8 = vpop.f32.mrb[0].mxu0 }
 0x3dd   :  { %v540_v9 = vsel %vm5041_vm7, %v536_v8, -1e+09  ;;  %v3998_v10 = vpop.f32.mrb[1].mxu0  ;;  %v374_v11 = vsel %vm298_vm6, %v373_v6, -inf }
 0x3de   :  { %375 = vmax.xlane.f32.xlu0 %v374_v11  ;;  %v541_v12 = vsel %vm298_vm6, %v540_v9, -inf }
 0x3df   :  { %542 = vmax.xlane.f32.xlu1 %v541_v12 }
 0x3e3   :  { %v708_v13 = vpop.f32.mrb[2].mxu0 }
 0x3e4   :  { %v5053_v14 = vsel %vm5041_vm7, %v708_v13, -1e+09  ;;  %v4008_v15 = vpop.f32.mrb[3].mxu0 }
 0x3e5   :  { %v713_v16 = vsel %vm298_vm6, %v5053_v14, -inf }
 0x3e6   :  { %714 = vmax.xlane.f32.xlu0 %v713_v16 }
 0x3e7   :  { %v880_v17 = vpop.f32.mrb[4].mxu0 }
 0x3e8   :  { %v884_v18 = vsel %vm5041_vm7, %v880_v17, -1e+09  ;;  %v4018_v19 = vpop.f32.mrb[5].mxu0 }
 0x3e9   :  { %v885_v20 = vsel %vm298_vm6, %v884_v18, -inf }
 0x3ea   :  { %886 = vmax.xlane.f32.xlu0 %v885_v20 }
 0x3eb   :  { %v1051_v21 = vpop.f32.mrb[6].mxu0 }
 0x3ec   :  { %v1055_v22 = vsel %vm5041_vm7, %v1051_v21, -1e+09  ;;  %v4028_v23 = vpop.f32.mrb[7].mxu0 }
 0x3ed   :  { %v1056_v24 = vsel %vm298_vm6, %v1055_v22, -inf }
 0x3ee   :  { %1057 = vmax.xlane.f32.xlu0 %v1056_v24 }
 0x3ef   :  { %v1218_v25 = vpop.f32.mrb[8].mxu0 }
 0x3f0   :  { %v1222_v26 = vsel %vm5041_vm7, %v1218_v25, -1e+09  ;;  %v4038_v27 = vpop.f32.mrb[9].mxu0 }
 0x3f1   :  { %v1223_v28 = vsel %vm298_vm6, %v1222_v26, -inf }
 0x3f2   :  { %1224 = vmax.xlane.f32.xlu1 %v1223_v28 }
 0x3f3   :  { %v1389_v29 = vpop.f32.mrb[10].mxu0 }
 0x3f4   :  { %v1393_v30 = vsel %vm5041_vm7, %v1389_v29, -1e+09  ;;  %v4048_v31 = vpop.f32.mrb[11].mxu0 }
 0x3f5   :  { %v1394_v32 = vsel %vm298_vm6, %v1393_v30, -inf }
 0x3f6   :  { %1395 = vmax.xlane.f32.xlu0 %v1394_v32 }
 0x3f7   :  { %v1560_v33 = vpop.f32.mrb[12].mxu0 }
 0x3f8   :  { %v5071_v34 = vsel %vm5041_vm7, %v1560_v33, -1e+09  ;;  %v4058_v35 = vpop.f32.mrb[13].mxu0 }
 0x3f9   :  { %v1565_v36 = vsel %vm298_vm6, %v5071_v34, -inf }
 0x403   :  { %385 = vrot.lane.b32.xlu1 %v4969_v48, %s4725_s6 }
 0x427   :  { %1566 = vmax.xlane.f32.xlu1 %v1565_v36 }
 0x438   :  { %724 = vrot.lane.b32.xlu1 %v4969_v48, %s4726_s22 }
 0x43c   :  { %896 = vrot.lane.b32.xlu1 %v4969_v48, %s4727_s8 }
 0x440   :  { %1067 = vrot.lane.b32.xlu1 %v4967_v47, %s4725_s6 }
 0x46b   :  { %v376_v37 = vpop.xlane.xlu0 %375 }
 0x46c   :  { %v377_v38 = vsub.f32 %v373_v6, %v376_v37  ;;  %v543_v39 = vpop.xlane.xlu1 %542 }
 0x46d   :  { %v544_v40 = vsub.f32 %v540_v9, %v543_v39 }
 0x46e   :  { %v378_v41 = vmul.f32 1.442695, %v377_v38 }
 0x46f   :  { %v545_v42 = vmul.f32 1.442695, %v544_v40 }
 0x470   :  { %4476 = vpow2.f32 %v378_v41 }
 0x471   :  { %4478 = vpow2.f32 %v545_v42 }
 0x473   :  { %v715_v43 = vpop.xlane.xlu0 %714 }
 0x474   :  { %v716_v58 = vsub.f32 %v5053_v14, %v715_v43 }
 0x476   :  { %v717_v60 = vmul.f32 1.442695, %v716_v58 }
 0x477   :  { %v887_v44 = vpop.xlane.xlu0 %886 }
 0x478   :  { %v888_v45 = vsub.f32 %v884_v18, %v887_v44 }
 0x47a   :  { %v4477_v49 = vpop.eup %4476  ;;  %v889_v50 = vmul.f32 1.442695, %v888_v45 }
 0x47b   :  { %v5081_v51 = vpop.eup %4478  ;;  %v380_v52 = vsel %vm298_vm6, %v4477_v49, 0.0  ;;  %v1058_v59 = vpop.xlane.xlu0 %1057 }
 0x47c   :  { %4480 = vpow2.f32 %v889_v50  ;;  %381 = vadd.xlane.f32.xlu0 %v380_v52  ;;  %v547_v53 = vsel %vm298_vm6, %v5081_v51, 0.0  ;;  %v1059_v61 = vsub.f32 %v1055_v22, %v1058_v59 }
 0x47d   :  { %548 = vadd.xlane.f32.xlu1 %v547_v53  ;;  %4482 = vpow2.f32 %v717_v60  ;;  %v1659_v60 = vld [vmem:[%s5502_s4] sm:$0xff] }
 0x47e   :  { %v1060_v63 = vmul.f32 1.442695, %v1059_v61  ;;  %v1660_v61 = vld [vmem:[%s5502_s4 + $0x8] sm:$0xff] }
 0x47f   :  { %v1225_v54 = vpop.xlane.xlu1 %1224 }
 0x480   :  { %4484 = vpow2.f32 %v1060_v63  ;;  %v1226_v4 = vsub.f32 %v1222_v26, %v1225_v54 }
 0x482   :  { %v1227_v6 = vmul.f32 1.442695, %v1226_v4  ;;  %v1662_v4 = vld [vmem:[%s5502_s4 + $0x18] sm:$0xff] }
 0x483   :  { %v386_v55 = vpop.permute.xlu1 %385  ;;  %v1396_v62 = vpop.xlane.xlu0 %1395 }
 0x484   :  { %3990 = vmatpush3.msra.mxu1 %v386_v55  ;;  %v1397_v2 = vsub.f32 %v1393_v30, %v1396_v62  ;;  %v4261_v62 = vpack.c.bf16 %v1660_v61, %v1659_v60 }
 0x485   :  { %3999 = vmatprep.subr.mxu1 %v4716_v46 }
 0x486   :  { %v5087_v56 = vpop.eup %4480  ;;  %v1398_v5 = vmul.f32 1.442695, %v1397_v2  ;;  %v1661_v2 = vld [vmem:[%s5502_s4 + $0x10] sm:$0xff]  ;;  %4262 = vmatprep.subr.bf16.mxu0 %v4261_v62 }
 0x487   :  { %v891_v57 = vsel %vm298_vm6, %v5087_v56, 0.0  ;;  %v4483_v7 = vpop.eup %4482  ;;  %4264 = vmatpush3.bf16.msra.mxu0 %v4261_v62 }
 0x488   :  { %892 = vadd.xlane.f32.xlu1 %v891_v57  ;;  %4486 = vpow2.f32 %v1398_v5 }
 0x489   :  { %4488 = vpow2.f32 %v1227_v6  ;;  %v4265_v6 = vpack.c.bf16 %v1662_v4, %v1661_v2 }
 0x48a   :  { %v4485_v8 = vpop.eup %4484 }
 0x48b   :  { %v1062_v10 = vsel %vm298_vm6, %v4485_v8, 0.0  ;;  %4266 = vmatprep.subr.bf16.mxu0 %v4265_v6 }
 0x48c   :  { %4268 = vmatpush3.bf16.msra.mxu0 %v4265_v6  ;;  %v3795_v6 = vld [vmem:[%s5512_s14] ss:$0 sm:$0xff] }
 0x492   :  { %552 = vrot.lane.b32.xlu0 %v4969_v48, %s4728_s26  ;;  %v719_v48 = vsel %vm298_vm6, %v4483_v7, 0.0  ;;  %v5096_v11 = vpop.eup %4486 }
 0x493   :  { %v1400_v14 = vsel %vm298_vm6, %v5096_v11, 0.0  ;;  %v4489_v15 = vpop.eup %4488 }
 0x494   :  { %v1229_v16 = vsel %vm298_vm6, %v4489_v15, 0.0 }
 0x499   :  { %1234 = vrot.lane.b32.xlu1 %v4967_v47, %s4728_s26 }
 0x4b1   :  { %720 = vadd.xlane.f32.xlu0 %v719_v48 }
 0x4b4   :  { %v1567_v9 = vpop.xlane.xlu1 %1566 }
 0x4b5   :  { %v1568_v12 = vsub.f32 %v5071_v34, %v1567_v9  ;;  %1063 = vadd.xlane.f32.xlu0 %v1062_v10 }
 0x4b7   :  { %v1569_v13 = vmul.f32 1.442695, %v1568_v12 }
 0x4b8   :  { %v725_v19 = vpop.permute.xlu1 %724 }
 0x4b9   :  { %4490 = vpow2.f32 %v1569_v13  ;;  %1401 = vadd.xlane.f32.xlu0 %v1400_v14 }
 0x4bc   :  { %v897_v20 = vpop.permute.xlu1 %896 }
 0x4bd   :  { %1230 = vadd.xlane.f32.xlu1 %v1229_v16 }
 0x4c0   :  { %v1068_v21 = vpop.permute.xlu1 %1067 }
 0x4c3   :  { %v5102_v17 = vpop.eup %4490 }
 0x4c4   :  { %v1571_v18 = vsel %vm298_vm6, %v5102_v17, 0.0 }
 0x4c5   :  { %1572 = vadd.xlane.f32.xlu0 %v1571_v18 }
 0x4ce   :  { %1576 = vrot.lane.b32.xlu1 %v4967_v47, %s4727_s8 }
 0x4db   :  { %1405 = vrot.lane.b32.xlu0 %v4967_v47, %s4726_s22  ;;  %s5528_s22 = sld [smem:[#allocation22_spill]] }
 0x509   :  { %v382_v22 = vpop.xlane.xlu0 %381 }
 0x50a   :  { %4492 = vrcp.f32 %v382_v22  ;;  %v549_v23 = vpop.xlane.xlu1 %548 }
 0x50b   :  { %4494 = vrcp.f32 %v549_v23 }
 0x50d   :  { %v553_v27 = vpop.permute.xlu0 %552 }
 0x514   :  { %v4493_v24 = vpop.eup %4492 }
 0x515   :  { %v384_v25 = vmul.f32 %v4493_v24, %v4477_v49  ;;  %v4495_v26 = vpop.eup %4494  ;;  %v893_v47 = vpop.xlane.xlu1 %892 }
 0x516   :  { %v551_v28 = vmul.f32 %v4495_v26, %v5081_v51 }
 0x517   :  { %3992 = vmatmul.mubr.msk.f32.vlgmr.msra.gmra.mrb[4].mxu1 %vm298_vm6, %v384_v25 }
 0x518   :  { %4000 = vmatpush3.msra.mxu1 %v553_v27  ;;  %4001 = vmatprep.mubr.msk.f32.mxu1 %vm4717_vm5, %v4716_v46 }
 0x519   :  { %4009 = vmatprep.subr.mxu1 %v4716_v46  ;;  %v1235_v31 = vpop.permute.xlu1 %1234 }
 0x51b   :  { %4002 = vmatmul.mubr.msk.f32.vlgmr.msra.gmra.mrb[6].mxu1 %vm298_vm6, %v551_v28 }
 0x51c   :  { %4010 = vmatpush3.msra.mxu1 %v725_v19  ;;  %4011 = vmatprep.mubr.msk.f32.mxu1 %vm4717_vm5, %v4716_v46 }
 0x51d   :  { %4019 = vmatprep.subr.mxu1 %v4716_v46 }
 0x53e   :  { %v721_v29 = vpop.xlane.xlu0 %720 }
 0x53f   :  { %4496 = vrcp.f32 %v721_v29 }
 0x540   :  { %4498 = vrcp.f32 %v893_v47 }
 0x542   :  { %v1064_v30 = vpop.xlane.xlu0 %1063 }
 0x543   :  { %4500 = vrcp.f32 %v1064_v30 }
 0x546   :  { %v1402_v34 = vpop.xlane.xlu0 %1401 }
 0x549   :  { %v4497_v32 = vpop.eup %4496 }
 0x54a   :  { %v723_v33 = vmul.f32 %v4497_v32, %v4483_v7  ;;  %v1231_v35 = vpop.xlane.xlu1 %1230  ;;  %v4499_v36 = vpop.eup %4498 }
 0x54b   :  { %4502 = vrcp.f32 %v1231_v35  ;;  %v895_v37 = vmul.f32 %v4499_v36, %v5087_v56  ;;  %v1891_v36 = vld [vmem:[#allocation10 + $0x10] sm:$0xff] }
 0x54c   :  { %4012 = vmatmul.mubr.msk.f32.vlgmr.msra.gmra.mrb[8].mxu1 %vm298_vm6, %v723_v33  ;;  %4504 = vrcp.f32 %v1402_v34  ;;  %v1889_v33 = vld [vmem:[#allocation10] sm:$0xff]  ;;  %v1890_v34 = vld [vmem:[#allocation10 + $0x8] sm:$0xff] }
 0x54d   :  { %4020 = vmatpush3.msra.mxu1 %v897_v20  ;;  %4021 = vmatprep.mubr.msk.f32.mxu1 %vm4717_vm5, %v4716_v46  ;;  %v4501_v38 = vpop.eup %4500  ;;  %v4277_v35 = vpack.c.bf16 %v1890_v34, %v1889_v33 }
 0x54e   :  { %4029 = vmatprep.subr.mxu1 %v4716_v46  ;;  %v1066_v39 = vmul.f32 %v4501_v38, %v4485_v8  ;;  %v1577_v49 = vpop.permute.xlu1 %1576 }
 0x54f   :  { %4278 = vmatprep.subr.bf16.mxu0 %v4277_v35 }
 0x550   :  { %4022 = vmatmul.mubr.msk.f32.vlgmr.msra.gmra.mrb[10].mxu1 %vm298_vm6, %v895_v37  ;;  %v1892_v37 = vld [vmem:[#allocation10 + $0x18] sm:$0xff] }
 0x551   :  { %4030 = vmatpush3.msra.mxu1 %v1068_v21  ;;  %4031 = vmatprep.mubr.msk.f32.mxu1 %vm4717_vm5, %v4716_v46  ;;  %v4281_v38 = vpack.c.bf16 %v1892_v37, %v1891_v36  ;;  %v143_v37 = vstv %s142_s25  ;;  %s4732_s25 = smov [#allocation14]  }
 0x552   :  { %v1573_v40 = vpop.xlane.xlu0 %1572  ;;  %4039 = vmatprep.subr.mxu1 %v4716_v46  ;;  %vm5269_vm1 = vcmp.lt.s32.totalorder %v5038_v3, %v143_v37 }
 0x553   :  { %4506 = vrcp.f32 %v1573_v40  ;;  %v133_v40 = vld [vmem:[%s5528_s22 + $0x8] sm:$0xff] }
 0x554   :  { %4032 = vmatmul.mubr.msk.f32.vlgmr.msra.gmra.mrb[12].mxu1 %vm298_vm6, %v1066_v39  ;;  %v132_v39 = vld [vmem:[%s5528_s22] sm:$0xff] }
 0x555   :  { %v4503_v41 = vpop.eup %4502  ;;  %4040 = vmatpush3.msra.mxu1 %v1235_v31  ;;  %4041 = vmatprep.mubr.msk.f32.mxu1 %vm4717_vm5, %v4716_v46 }
 0x556   :  { %v1233_v42 = vmul.f32 %v4503_v41, %v4489_v15  ;;  %v1406_v43 = vpop.permute.xlu0 %1405  ;;  %4049 = vmatprep.subr.mxu1 %v4716_v46  ;;  %v4505_v44 = vpop.eup %4504  ;;  %v1804_v41 = vld [vmem:[#allocation8] sm:$0xff] }
 0x557   :  { %v1404_v45 = vmul.f32 %v4505_v44, %v5096_v11  ;;  %v1807_v44 = vld [vmem:[#allocation8 + $0x18] sm:$0xff] }
 0x558   :  { %4042 = vmatmul.mubr.msk.f32.vlgmr.msra.gmra.mrb[14].mxu1 %vm298_vm6, %v1233_v42  ;;  %v1805_v42 = vld [vmem:[#allocation8 + $0x8] sm:$0xff] }
 0x559   :  { %4050 = vmatpush3.msra.mxu1 %v1406_v43  ;;  %4051 = vmatprep.mubr.msk.f32.mxu1 %vm4717_vm5, %v4716_v46  ;;  %v1806_v43 = vld [vmem:[#allocation8 + $0x10] sm:$0xff] }
 0x55a   :  { %4059 = vmatprep.subr.mxu1 %v4716_v46 }
 0x55c   :  { %4052 = vmatmul.mubr.msk.f32.vlgmr.msra.gmra.mrb[16].mxu1 %vm298_vm6, %v1404_v45  ;;  %v4269_v45 = vpack.c.bf16 %v1805_v42, %v1804_v41 }
 0x55d   :  { %v4507_v50 = vpop.eup %4506  ;;  %4060 = vmatpush3.msra.mxu1 %v1577_v49  ;;  %4061 = vmatprep.mubr.msk.f32.mxu1 %vm4717_vm5, %v4716_v46  ;;  %v4273_v49 = vpack.c.bf16 %v1807_v44, %v1806_v43 }
 0x55e   :  { %v1575_v51 = vmul.f32 %v4507_v50, %v5102_v17  ;;  %4270 = vmatprep.subr.bf16.mxu1 %v4269_v45  ;;  %v4731_v50 = vmov 0.0|0.0  }
 0x560   :  { %4062 = vmatmul.mubr.msk.f32.vlgmr.msra.gmra.mrb[18].mxu1 %vm298_vm6, %v1575_v51 }
 0x561   :  { %4272 = vmatpush3.bf16.msra.mxu1 %v4269_v45 }
 0x562   :  { %4274 = vmatprep.subr.bf16.mxu1 %v4273_v49 }
 0x565   :  { %4276 = vmatpush3.bf16.msra.mxu1 %v4273_v49 }
 0x566   :  { %4285 = vmatprep.subr.bf16.mxu1 %v4731_v50 }
 0x5ea   :  { %v457_v52 = vpop.f32.mrb[4].mxu1 }
 0x5eb   :  { %461 = vst.msk [vmem:[#allocation2] sm:$0xff] %vm298_vm6, %v457_v52  ;;  %v3993_v53 = vpop.f32.mrb[5].mxu1 }
 0x5ee   :  { %v624_v54 = vpop.f32.mrb[6].mxu1 }
 0x5ef   :  { %629 = vrot.lane.b32.xlu0 %v624_v54, %s4712_s20  ;;  %v4003_v55 = vpop.f32.mrb[7].mxu1 }
 0x61f   :  { %v796_v56 = vpop.f32.mrb[8].mxu1 }
 0x620   :  { %801 = vrot.lane.b32.xlu1 %v796_v56, %s4729_s27  ;;  %v4013_v57 = vpop.f32.mrb[9].mxu1 }
 0x623   :  { %v968_v58 = vpop.f32.mrb[10].mxu1 }
 0x624   :  { %973 = vrot.lane.b32.xlu1 %v968_v58, %s4730_s28  ;;  %v4023_v59 = vpop.f32.mrb[11].mxu1 }
 0x627   :  { %v1139_v63 = vpop.f32.mrb[12].mxu1 }
 0x628   :  { %1143 = vst.msk [vmem:[#allocation2 + $0x8] sm:$0xff] %vm298_vm6, %v1139_v63  ;;  %v4033_v5 = vpop.f32.mrb[13].mxu1 }
 0x62b   :  { %v1306_v7 = vpop.f32.mrb[14].mxu1 }
 0x62c   :  { %1311 = vrot.lane.b32.xlu0 %v1306_v7, %s4712_s20  ;;  %v4043_v48 = vpop.f32.mrb[15].mxu1 }
 0x62f   :  { %v1477_v8 = vpop.f32.mrb[16].mxu1 }
 0x630   :  { %1482 = vrot.lane.b32.xlu0 %v1477_v8, %s4729_s27  ;;  %v4053_v9 = vpop.f32.mrb[17].mxu1  ;;  %v3796_v8 = vld [vmem:[%s5513_s15] ss:$0 sm:$0xff] }
 0x633   :  { %v1648_v10 = vpop.f32.mrb[18].mxu1 }
 0x634   :  { %1653 = vrot.lane.b32.xlu1 %v1648_v10, %s4730_s28  ;;  %v4063_v11 = vpop.f32.mrb[19].mxu1 }
 0x661   :  { %v630_v12 = vpop.permute.xlu0 %629 }
 0x662   :  { %633 = vst.msk [vmem:[#allocation2] sm:$0xff] %vm632_vm8, %v630_v12 }
 0x692   :  { %v802_v13 = vpop.permute.xlu1 %801 }
 0x693   :  { %805 = vst.msk [vmem:[#allocation2] sm:$0xff] %vm804_vm9, %v802_v13 }
 0x696   :  { %v974_v14 = vpop.permute.xlu1 %973 }
 0x697   :  { %977 = vst.msk [vmem:[#allocation2] sm:$0xff] %vm976_vm10, %v974_v14 }
 0x69e   :  { %v1312_v15 = vpop.permute.xlu0 %1311  ;;  %v1657_v16 = vld [vmem:[#allocation2] sm:$0xff] }
 0x69f   :  { %1314 = vst.msk [vmem:[#allocation2 + $0x8] sm:$0xff] %vm632_vm8, %v1312_v15  ;;  %4072 = vmatprep.mubr.msk.f32.mxu0 %vm151_vm0, %v1657_v16 }
 0x6a2   :  { %v1483_v17 = vpop.permute.xlu0 %1482 }
 0x6a3   :  { %1485 = vst.msk [vmem:[#allocation2 + $0x8] sm:$0xff] %vm804_vm9, %v1483_v17 }
 0x6a6   :  { %v1654_v18 = vpop.permute.xlu1 %1653 }
 0x6a7   :  { %1656 = vst.msk [vmem:[#allocation2 + $0x8] sm:$0xff] %vm976_vm10, %v1654_v18 }
 0x6ae   :  { %v1658_v19 = vld [vmem:[#allocation2 + $0x8] sm:$0xff] }
 0x6af   :  { %4073 = vmatmul.mubr.msk.f32.vlgmr.msra.gmra.mrb[14].mxu0 %vm151_vm0, %v1658_v19 }
 0x6b0   :  { %4280 = vmatpush3.bf16.msra.mxu0 %v4277_v35  ;;  %4094 = vmatprep.mubr.msk.f32.mxu0 %vm151_vm0, %v132_v39 }
 0x6b1   :  { %4282 = vmatprep.subr.bf16.mxu0 %v4281_v38 }
 0x6b4   :  { %4284 = vmatpush3.bf16.msra.mxu0 %v4281_v38 }
 0x6b5   :  { %4292 = vmatprep.subr.bf16.mxu0 %v4731_v50 }
 0x6b7   :  { %4095 = vmatmul.mubr.msk.f32.vlgmr.msra.gmra.mrb[16].mxu0 %vm151_vm0, %v133_v40 }
 0x782   :  { %v4074_v20 = vpop.f32.mrb[14].mxu0 }
 0x783   :  { %v5171_v21 = vadd.f32 %v4074_v20, %v4931_v1  ;;  %v1735_v22 = vpop.f32.mrb[15].mxu0  ;;  %v134_v20 = vld [vmem:[%s5528_s22 + $0x10] sm:$0xff] }
 0x784   :  { %v5174_v23 = vadd.f32 %v1735_v22, %v4929_v0  ;;  %v135_v22 = vld [vmem:[%s5528_s22 + $0x18] sm:$0xff]  ;;  %4097 = vmatprep.mubr.msk.f32.mxu0 %vm151_vm0, %v134_v20 }
 0x785   :  { %v1751_v24 = vsel %vm151_vm0, %v5171_v21, 0.0  ;;  %4098 = vmatmul.mubr.msk.f32.gmra.mrb[18].mxu0 %vm151_vm0, %v135_v22 }
 0x786   :  { %1752 = vadd.xlane.f32.xlu1 %v1751_v24  ;;  %v1748_v25 = vsel %vm151_vm0, %v5174_v23, 0.0  ;;  %4118 = vmatprep.mubr.msk.f32.mxu0 %vm4717_vm5, %v4716_v46 }
 0x787   :  { %1749 = vadd.xlane.f32.xlu0 %v1748_v25 }
 0x78a   :  { %v4096_v15 = vpop.f32.mrb[16].mxu0 }
 0x78b   :  { %v1971_v16 = vpop.f32.mrb[17].mxu0 }
 0x78c   :  { %v5215_v18 = vpack.i.bf16 %v4096_v15, %v1971_v16  ;;  %v4286_v19 = vpack.c.bf16 %v4096_v15, %v1971_v16 }
 0x813   :  { %v1753_v26 = vpop.xlane.xlu1 %1752 }
 0x814   :  { %v1755_v27 = vmul.f32 0.03125, %v1753_v26  ;;  %v1750_v28 = vpop.xlane.xlu0 %1749 }
 0x815   :  { %v1754_v47 = vmul.f32 0.03125, %v1750_v28 }
 0x816   :  { %v5181_v29 = vsub.f32 %v5171_v21, %v1755_v27 }
 0x817   :  { %v1756_v1 = vsub.f32 %v5174_v23, %v1754_v47 }
 0x818   :  { %v1759_v31 = vmul.f32 %v5181_v29, %v5181_v29  ;;  %v1775_v10 = vmul.f32 %v3795_v6, %v5181_v29 }
 0x819   :  { %v1758_v30 = vmul.f32 %v1756_v1, %v1756_v1  ;;  %v1774_v7 = vmul.f32 %v3795_v6, %v1756_v1 }
 0x81a   :  { %v1763_v32 = vsel %vm151_vm0, %v1759_v31, 0.0 }
 0x81b   :  { %v1760_v0 = vsel %vm151_vm0, %v1758_v30, 0.0 }
 0x81c   :  { %1761 = vadd.xlane.f32.xlu0 %v1760_v0 }
 0x820   :  { %1764 = vadd.xlane.f32.xlu0 %v1763_v32 }
 0x836   :  { %4399 = vrot.lane.b32.xlu0 %v5215_v18, %s4720_s23 }
 0x858   :  { %v5249_v29 = vpop.f32.mrb[18].mxu0 }
 0x859   :  { %v5251_v1 = vpop.f32.mrb[19].mxu0 }
 0x85a   :  { %v5264_v35 = vpack.i.bf16 %v5249_v29, %v5251_v1  ;;  %v4314_v36 = vpack.c.bf16 %v5249_v29, %v5251_v1 }
 0x8a9   :  { %v1762_v51 = vpop.xlane.xlu0 %1761 }
 0x8aa   :  { %v1766_v52 = vmul.f32 0.032258064, %v1762_v51 }
 0x8ac   :  { %4508 = vrsqrt.f32 %v1766_v52  ;;  %vm1778_vm11 = vcmp.eq.f32.partialorder %v1766_v52, inf  ;;  %v1781_v57 = vand.u32 2147483648, %v1766_v52  ;;  %vm1780_vm12 = vcmp.eq.f32.partialorder %v1766_v52, 0.0 }
 0x8ad   :  { %v1765_v53 = vpop.xlane.xlu0 %1764 }
 0x8ae   :  { %v1767_v54 = vmul.f32 0.032258064, %v1765_v53 }
 0x8b0   :  { %4510 = vrsqrt.f32 %v1767_v54  ;;  %vm1785_vm13 = vcmp.eq.f32.partialorder %v1767_v54, inf  ;;  %v1788_v63 = vand.u32 2147483648, %v1767_v54  ;;  %vm1787_vm14 = vcmp.eq.f32.partialorder %v1767_v54, 0.0 }
 0x8b1   :  { %v4400_v24 = vpop.permute.xlu0 %4399 }
 0x8b2   :  { %v4402_v25 = vunpack.i.h.bf16 %v4400_v24  ;;  %v4401_v26 = vunpack.i.l.bf16 %v4400_v24 }
 0x8b4   :  { %v4293_v27 = vpack.c.bf16 %v4402_v25, %v4401_v26 }
 0x8b6   :  { %v4509_v55 = vpop.eup %4508  ;;  %4295 = vmatpush3.bf16.xpose.msk.msra.mxu0 %vm5211_vm15, %v4293_v27 }
 0x8b7   :  { %v1777_v56 = vmul.f32 %v4509_v55, %v1766_v52  ;;  %4299 = vmatprep.subr.bf16.mxu0 %v4731_v50 }
 0x8b9   :  { %v1779_v58 = vsel %vm1778_vm11, %v1766_v52, %v1777_v56 }
 0x8ba   :  { %v4511_v59 = vpop.eup %4510  ;;  %v1782_v60 = vsel %vm1780_vm12, %v1781_v57, %v1779_v58 }
 0x8bb   :  { %v1784_v61 = vmul.f32 %v4511_v59, %v1767_v54  ;;  %v1790_v62 = vadd.f32 1e-06, %v1782_v60 }
 0x8bd   :  { %v1786_v2 = vsel %vm1785_vm13, %v1767_v54, %v1784_v61  ;;  %4512 = vrcp.f32 %v1790_v62 }
 0x8be   :  { %v1789_v4 = vsel %vm1787_vm14, %v1788_v63, %v1786_v2 }
 0x8bf   :  { %v1791_v5 = vadd.f32 1e-06, %v1789_v4 }
 0x8c1   :  { %4514 = vrcp.f32 %v1791_v5 }
 0x8c7   :  { %v4513_v48 = vpop.eup %4512 }
 0x8c8   :  { %v1793_v9 = vmul.f32 %v4513_v48, %v1774_v7 }
 0x8ca   :  { %v1802_v11 = vadd.f32 %v3796_v8, %v1793_v9 }
 0x8cb   :  { %v4515_v12 = vpop.eup %4514 }
 0x8cc   :  { %v1795_v13 = vmul.f32 %v4515_v12, %v1775_v10  ;;  %4083 = vmatprep.mubr.msk.f32.mxu1 %vm151_vm0, %v1802_v11 }
 0x8ce   :  { %v1803_v14 = vadd.f32 %v3796_v8, %v1795_v13 }
 0x8d0   :  { %4084 = vmatmul.mubr.msk.f32.vlgmr.msra.gmra.mrb[20].mxu1 %vm151_vm0, %v1803_v14 }
 0x8d1   :  { %4104 = vmatprep.mubr.msk.f32.mxu1 %vm4717_vm5, %v4716_v46  ;;  %4288 = vmatpush3.bf16.xpose.msk.msra.mxu1 %vm5211_vm15, %v4286_v19 }
 0x8d2   :  { %4289 = vmatprep.subr.bf16.mxu1 %v4731_v50 }
 0x9a3   :  { %v5235_v28 = vpop.f32.mrb[20].mxu1 }
 0x9a4   :  { %v5237_v47 = vpop.f32.mrb[21].mxu1 }
 0x9a5   :  { %2162 = vrot.lane.b32.xlu1 %v5237_v47, %s4720_s23  ;;  %4105 = vmatmul.mubr.msk.f32.vlgmr.msra.gmra.mrb[22].mxu1 %vm298_vm6, %v5237_v47 }
 0x9a6   :  { %4111 = vmatprep.mubr.msk.f32.mxu1 %vm4717_vm5, %v4716_v46 }
 0x9a9   :  { %4404 = vrot.lane.b32.xlu1 %v5215_v18, %s4721_s0 }
 0x9ad   :  { %2340 = vrot.lane.b32.xlu1 %v5237_v47, %s4721_s0 }
 0xa17   :  { %v2163_v30 = vpop.permute.xlu1 %2162 }
 0xa18   :  { %4119 = vmatmul.mubr.msk.f32.vlgmr.msra.gmra.mrb[20].mxu0 %vm298_vm6, %v2163_v30 }
 0xa19   :  { %4132 = vmatprep.mubr.msk.f32.mxu0 %vm4717_vm5, %v4716_v46 }
 0xa1b   :  { %v4405_v0 = vpop.permute.xlu1 %4404 }
 0xa1c   :  { %v4407_v31 = vunpack.i.h.bf16 %v4405_v0  ;;  %v4406_v32 = vunpack.i.l.bf16 %v4405_v0 }
 0xa1e   :  { %v4300_v33 = vpack.c.bf16 %v4407_v31, %v4406_v32 }
 0xa1f   :  { %v2341_v34 = vpop.permute.xlu1 %2340 }
 0xa20   :  { %4302 = vmatpush3.bf16.xpose.msk.msra.mxu0 %vm5211_vm15, %v4300_v33 }
 0xa21   :  { %4310 = vmatprep.subr.bf16.mxu0 %v4731_v50 }
 0xa27   :  { %4133 = vmatmul.mubr.msk.f32.vlgmr.msra.gmra.mrb[22].mxu0 %vm298_vm6, %v2341_v34 }
 0xa28   :  { %4153 = vmatprep.mubr.msk.f32.mxu0 %vm4717_vm5, %v4716_v46 }
 0xa78   :  { %v2065_v39 = vpop.f32.mrb[22].mxu1 }
 0xa79   :  { %v2069_v40 = vsel %vm5269_vm1, %v2065_v39, -1e+09  ;;  %v4106_v41 = vpop.f32.mrb[23].mxu1 }
 0xa7a   :  { %v2071_v42 = vsel %vm2070_vm2, %v2069_v40, -inf }
 0xa7b   :  { %2072 = vmax.xlane.f32.xlu0 %v2071_v42 }
 0xaeb   :  { %v2240_v43 = vpop.f32.mrb[20].mxu0 }
 0xaec   :  { %v2244_v44 = vsel %vm5269_vm1, %v2240_v43, -1e+09  ;;  %v4120_v45 = vpop.f32.mrb[21].mxu0 }
 0xaed   :  { %v2245_v49 = vsel %vm2070_vm2, %v2244_v44, -inf }
 0xaee   :  { %2246 = vmax.xlane.f32.xlu1 %v2245_v49 }
 0xafa   :  { %v2418_v51 = vpop.f32.mrb[22].mxu0 }
 0xafb   :  { %v2422_v52 = vsel %vm5269_vm1, %v2418_v51, -1e+09  ;;  %v4134_v53 = vpop.f32.mrb[23].mxu0 }
 0xafc   :  { %v2423_v54 = vsel %vm2070_vm2, %v2422_v52, -inf }
 0xafd   :  { %2424 = vmax.xlane.f32.xlu0 %v2423_v54 }
 0xaff   :  { %4414 = vrot.lane.b32.xlu1 %v5215_v18, %s4718_s12 }
 0xb03   :  { %4419 = vrot.lane.b32.xlu1 %v5215_v18, %s4722_s21 }
 0xb08   :  { %v2073_v55 = vpop.xlane.xlu0 %2072 }
 0xb09   :  { %v2074_v56 = vsub.f32 %v2069_v40, %v2073_v55 }
 0xb0b   :  { %v2075_v57 = vmul.f32 1.442695, %v2074_v56 }
 0xb0d   :  { %4516 = vpow2.f32 %v2075_v57 }
 0xb17   :  { %v4517_v58 = vpop.eup %4516 }
 0xb18   :  { %v2077_v59 = vsel %vm2070_vm2, %v4517_v58, 0.0 }
 0xb19   :  { %2078 = vadd.xlane.f32.xlu0 %v2077_v59 }
 0xb7b   :  { %v2247_v60 = vpop.xlane.xlu1 %2246 }
 0xb7c   :  { %v2248_v61 = vsub.f32 %v2244_v44, %v2247_v60 }
 0xb7e   :  { %v2249_v62 = vmul.f32 1.442695, %v2248_v61 }
 0xb7f   :  { %v4415_v10 = vpop.permute.xlu1 %4414 }
 0xb80   :  { %4518 = vpow2.f32 %v2249_v62  ;;  %v4417_v15 = vunpack.i.h.bf16 %v4415_v10  ;;  %v4416_v16 = vunpack.i.l.bf16 %v4415_v10 }
 0xb82   :  { %v4297_v25 = vpack.c.bf16 %v4417_v15, %v4416_v16 }
 0xb83   :  { %v4420_v20 = vpop.permute.xlu1 %4419 }
 0xb84   :  { %v4422_v26 = vunpack.i.h.bf16 %v4420_v20  ;;  %v4421_v27 = vunpack.i.l.bf16 %v4420_v20 }
 0xb86   :  { %v4304_v30 = vpack.c.bf16 %v4422_v26, %v4421_v27 }
 0xb8a   :  { %v4519_v63 = vpop.eup %4518  ;;  %v2425_v2 = vpop.xlane.xlu0 %2424 }
 0xb8b   :  { %v2426_v4 = vsub.f32 %v2422_v52, %v2425_v2  ;;  %v2251_v5 = vsel %vm2070_vm2, %v4519_v63, 0.0 }
 0xb8c   :  { %2252 = vadd.xlane.f32.xlu0 %v2251_v5 }
 0xb8d   :  { %v2427_v6 = vmul.f32 1.442695, %v2426_v4 }
 0xb8f   :  { %4520 = vpow2.f32 %v2427_v6 }
 0xb99   :  { %v4521_v7 = vpop.eup %4520 }
 0xb9a   :  { %v2429_v48 = vsel %vm2070_vm2, %v4521_v7, 0.0 }
 0xb9b   :  { %2430 = vadd.xlane.f32.xlu1 %v2429_v48 }
 0xba2   :  { %4409 = vrot.lane.b32.xlu0 %v5215_v18, %s4719_s13 }
 0xba6   :  { %2518 = vrot.lane.b32.xlu0 %v5237_v47, %s4723_s2  ;;  %v2079_v8 = vpop.xlane.xlu0 %2078 }
 0xba7   :  { %4522 = vrcp.f32 %v2079_v8 }
 0xbac   :  { %4424 = vrot.lane.b32.xlu1 %v5215_v18, %s4723_s2 }
 0xbb1   :  { %v4523_v14 = vpop.eup %4522 }
 0xbb2   :  { %v2081_v22 = vmul.f32 %v4523_v14, %v4517_v58 }
 0xc19   :  { %v2253_v9 = vpop.xlane.xlu0 %2252 }
 0xc1a   :  { %4524 = vrcp.f32 %v2253_v9 }
 0xc1d   :  { %v4410_v11 = vpop.permute.xlu0 %4409 }
 0xc1e   :  { %v4412_v12 = vunpack.i.h.bf16 %v4410_v11  ;;  %v4411_v13 = vunpack.i.l.bf16 %v4410_v11 }
 0xc20   :  { %v4290_v19 = vpack.c.bf16 %v4412_v12, %v4411_v13 }
 0xc21   :  { %v2519_v40 = vpop.permute.xlu0 %2518 }
 0xc22   :  { %4291 = vmatpush3.bf16.msra.mxu1 %v4290_v19 }
 0xc23   :  { %4296 = vmatprep.subr.bf16.mxu1 %v4731_v50 }
 0xc24   :  { %v4525_v24 = vpop.eup %4524 }
 0xc25   :  { %4112 = vmatmul.mubr.msk.f32.vlgmr.msra.gmra.mrb[24].mxu1 %vm2070_vm2, %v2081_v22  ;;  %v2255_v47 = vmul.f32 %v4525_v24, %v4519_v63 }
 0xc26   :  { %4298 = vmatpush3.bf16.msra.mxu1 %v4297_v25  ;;  %4125 = vmatprep.mubr.msk.f32.mxu1 %vm4717_vm5, %v4716_v46 }
 0xc27   :  { %4303 = vmatprep.subr.bf16.mxu1 %v4731_v50 }
 0xc28   :  { %v2431_v0 = vpop.xlane.xlu1 %2430 }
 0xc29   :  { %4526 = vrcp.f32 %v2431_v0  ;;  %4126 = vmatmul.mubr.msk.f32.vlgmr.msra.gmra.mrb[26].mxu1 %vm2070_vm2, %v2255_v47 }
 0xc2a   :  { %4305 = vmatpush3.bf16.msra.mxu1 %v4304_v30  ;;  %4139 = vmatprep.mubr.msk.f32.mxu1 %vm4717_vm5, %v4716_v46 }
 0xc2b   :  { %4306 = vmatprep.subr.bf16.mxu1 %v4731_v50 }
 0xc2c   :  { %v4425_v31 = vpop.permute.xlu1 %4424 }
 0xc2d   :  { %v4427_v32 = vunpack.i.h.bf16 %v4425_v31  ;;  %v4426_v33 = vunpack.i.l.bf16 %v4425_v31 }
 0xc2f   :  { %v4307_v39 = vpack.c.bf16 %v4427_v32, %v4426_v33 }
 0xc33   :  { %v4527_v34 = vpop.eup %4526 }
 0xc34   :  { %v2433_v37 = vmul.f32 %v4527_v34, %v4521_v7 }
 0xc36   :  { %4140 = vmatmul.mubr.msk.f32.vlgmr.msra.gmra.mrb[28].mxu1 %vm2070_vm2, %v2433_v37 }
 0xc37   :  { %4309 = vmatpush3.bf16.xpose.msk.msra.mxu1 %vm5211_vm15, %v4307_v39  ;;  %4146 = vmatprep.mubr.msk.f32.mxu1 %vm4717_vm5, %v4716_v46 }
 0xc38   :  { %4317 = vmatprep.subr.bf16.mxu1 %v4731_v50 }
 0xc3e   :  { %4147 = vmatmul.mubr.msk.f32.vlgmr.msra.gmra.mrb[30].mxu1 %vm298_vm6, %v2519_v40 }
 0xc3f   :  { %4167 = vmatprep.mubr.msk.f32.mxu1 %vm4717_vm5, %v4716_v46 }
 0xcf8   :  { %v2157_v41 = vpop.f32.mrb[24].mxu1 }
 0xcf9   :  { %2161 = vst.msk [vmem:[#allocation2] sm:$0xff] %vm298_vm6, %v2157_v41  ;;  %v4113_v42 = vpop.f32.mrb[25].mxu1 }
 0xcfc   :  { %v5314_v43 = vpop.f32.mrb[26].mxu1 }
 0xcfd   :  { %v4127_v44 = vpop.f32.mrb[27].mxu1 }
 0xd09   :  { %v5316_v45 = vpop.f32.mrb[28].mxu1 }
 0xd0a   :  { %v4141_v49 = vpop.f32.mrb[29].mxu1 }
 0xd11   :  { %v2596_v51 = vpop.f32.mrb[30].mxu1 }
 0xd12   :  { %v2600_v52 = vsel %vm5269_vm1, %v2596_v51, -1e+09  ;;  %v4148_v53 = vpop.f32.mrb[31].mxu1 }
 0xd13   :  { %v2601_v54 = vsel %vm2070_vm2, %v2600_v52, -inf }
 0xd14   :  { %2602 = vmax.xlane.f32.xlu1 %v2601_v54 }
 0xda1   :  { %v2603_v55 = vpop.xlane.xlu1 %2602 }
 0xda2   :  { %v2604_v56 = vsub.f32 %v2600_v52, %v2603_v55 }
 0xda4   :  { %v2605_v57 = vmul.f32 1.442695, %v2604_v56 }
 0xda6   :  { %4528 = vpow2.f32 %v2605_v57 }
 0xdb0   :  { %v4529_v58 = vpop.eup %4528 }
 0xdb1   :  { %v2607_v59 = vsel %vm2070_vm2, %v4529_v58, 0.0 }
 0xdb2   :  { %2608 = vadd.xlane.f32.xlu0 %v2607_v59 }
 0xdc8   :  { %4429 = vrot.lane.b32.xlu0 %v5215_v18, %s4724_s24 }
 0xdcc   :  { %4439 = vrot.lane.b32.xlu0 %v5264_v35, %s4720_s23 }
 0xdd0   :  { %2867 = vrot.lane.b32.xlu0 %v5235_v28, %s4720_s23  ;;  %s3764_s23 = sld [smem:[#allocation4 + $0x1]] }
 0xdd6   :  { %v147_v6 = vstv %s3764_s23  ;;  %s3750_s23 = sshll.u32 %s4732_s25, 4  ;;  %s3751_s23 = int_to_ptr.vmem [resolvable:$true] %s3750_s23 }
 0xdd7   :  { %vm5345_vm3 = vcmp.lt.s32.totalorder %v5038_v3, %v147_v6  ;;  %p4681_p2 = scmp.lt.s32.totalorder %s3751_s23, %s3751_s23 }
 0xe3f   :  { %v2609_v38 = vpop.xlane.xlu0 %2608 }
 0xe40   :  { %4530 = vrcp.f32 %v2609_v38 }
 0xe43   :  { %v4430_v60 = vpop.permute.xlu0 %4429 }
 0xe44   :  { %v4432_v61 = vunpack.i.h.bf16 %v4430_v60  ;;  %v4431_v62 = vunpack.i.l.bf16 %v4430_v60 }
 0xe46   :  { %v4311_v63 = vpack.c.bf16 %v4432_v61, %v4431_v62 }
 0xe47   :  { %v4440_v19 = vpop.permute.xlu0 %4439 }
 0xe48   :  { %4312 = vmatpush3.bf16.msra.mxu0 %v4311_v63  ;;  %v4442_v22 = vunpack.i.h.bf16 %v4440_v19  ;;  %v4441_v24 = vunpack.i.l.bf16 %v4440_v19 }
 0xe49   :  { %4313 = vmatprep.subr.bf16.mxu0 %v4731_v50 }
 0xe4a   :  { %v4531_v2 = vpop.eup %4530  ;;  %v4321_v26 = vpack.c.bf16 %v4442_v22, %v4441_v24 }
 0xe4b   :  { %v2611_v4 = vmul.f32 %v4531_v2, %v4529_v58  ;;  %v2868_v27 = vpop.permute.xlu0 %2867 }
 0xe4d   :  { %4154 = vmatmul.mubr.msk.f32.vlgmr.msra.gmra.mrb[24].mxu0 %vm2070_vm2, %v2611_v4 }
 0xe4e   :  { %4160 = vmatprep.mubr.msk.f32.mxu0 %vm4717_vm5, %v4716_v46 }
 0xe51   :  { %4316 = vmatpush3.bf16.xpose.msk.msra.mxu0 %vm5211_vm15, %v4314_v36 }
 0xe52   :  { %4324 = vmatprep.subr.bf16.mxu0 %v4731_v50 }
 0xe58   :  { %4161 = vmatmul.mubr.msk.f32.vlgmr.msra.gmra.mrb[26].mxu0 %vm298_vm6, %v5235_v28 }
 0xe59   :  { %4181 = vmatprep.mubr.msk.f32.mxu0 %vm4717_vm5, %v4716_v46 }
 0xf20   :  { %v5342_v18 = vpop.f32.mrb[24].mxu0 }
 0xf21   :  { %v4155_v5 = vpop.f32.mrb[25].mxu0 }
 0xf2b   :  { %v2771_v29 = vpop.f32.mrb[26].mxu0 }
 0xf2c   :  { %v2775_v1 = vsel %vm5345_vm3, %v2771_v29, -1e+09  ;;  %v4162_v36 = vpop.f32.mrb[27].mxu0 }
 0xf2d   :  { %v2776_v48 = vsel %vm2070_vm2, %v2775_v1, -inf }
 0xf2e   :  { %2777 = vmax.xlane.f32.xlu1 %v2776_v48 }
 0xfbb   :  { %v2778_v8 = vpop.xlane.xlu1 %2777 }
 0xfbc   :  { %v2779_v9 = vsub.f32 %v2775_v1, %v2778_v8 }
 0xfbe   :  { %v2780_v10 = vmul.f32 1.442695, %v2779_v9 }
 0xfc0   :  { %4532 = vpow2.f32 %v2780_v10 }
 0xfca   :  { %v4533_v11 = vpop.eup %4532 }
 0xfcb   :  { %v2782_v12 = vsel %vm2070_vm2, %v4533_v11, 0.0 }
 0xfcc   :  { %2783 = vadd.xlane.f32.xlu1 %v2782_v12 }
 0xfdd   :  { %4434 = vrot.lane.b32.xlu1 %v5264_v35, %s4719_s13 }
0x1059   :  { %v2784_v3 = vpop.xlane.xlu1 %2783 }
0x105a   :  { %4534 = vrcp.f32 %v2784_v3 }
0x105d   :  { %v4435_v13 = vpop.permute.xlu1 %4434 }
0x105e   :  { %v4437_v14 = vunpack.i.h.bf16 %v4435_v13  ;;  %v4436_v15 = vunpack.i.l.bf16 %v4435_v13 }
0x1060   :  { %v4318_v16 = vpack.c.bf16 %v4437_v14, %v4436_v15 }
0x1062   :  { %4319 = vmatpush3.bf16.msra.mxu1 %v4318_v16 }
0x1063   :  { %4320 = vmatprep.subr.bf16.mxu1 %v4731_v50 }
0x1064   :  { %v4535_v20 = vpop.eup %4534 }
0x1065   :  { %v2786_v25 = vmul.f32 %v4535_v20, %v4533_v11 }
0x1067   :  { %4168 = vmatmul.mubr.msk.f32.vlgmr.msra.gmra.mrb[32].mxu1 %vm2070_vm2, %v2786_v25 }
0x1068   :  { %4174 = vmatprep.mubr.msk.f32.mxu1 %vm4717_vm5, %v4716_v46 }
0x106b   :  { %4323 = vmatpush3.bf16.xpose.msk.msra.mxu1 %vm5211_vm15, %v4321_v26 }
0x106c   :  { %4331 = vmatprep.subr.bf16.mxu1 %v4731_v50 }
0x1072   :  { %4175 = vmatmul.mubr.msk.f32.vlgmr.msra.gmra.mrb[34].mxu1 %vm298_vm6, %v2868_v27 }
0x1073   :  { %4195 = vmatprep.mubr.msk.f32.mxu1 %vm4717_vm5, %v4716_v46 }
0x113a   :  { %v2862_v47 = vpop.f32.mrb[32].mxu1 }
0x113b   :  { %2866 = vst.msk [vmem:[#allocation2 + $0x8] sm:$0xff] %vm298_vm6, %v2862_v47  ;;  %v4169_v30 = vpop.f32.mrb[33].mxu1 }
0x1145   :  { %v2945_v0 = vpop.f32.mrb[34].mxu1 }
0x1146   :  { %v2949_v31 = vsel %vm5345_vm3, %v2945_v0, -1e+09  ;;  %v4176_v32 = vpop.f32.mrb[35].mxu1 }
0x1147   :  { %v2950_v33 = vsel %vm2070_vm2, %v2949_v31, -inf }
0x1148   :  { %2951 = vmax.xlane.f32.xlu1 %v2950_v33 }
0x1159   :  { %4449 = vrot.lane.b32.xlu1 %v5264_v35, %s4721_s0 }
0x115d   :  { %3045 = vrot.lane.b32.xlu1 %v5235_v28, %s4721_s0 }
0x11d5   :  { %v2952_v34 = vpop.xlane.xlu1 %2951 }
0x11d6   :  { %v2953_v37 = vsub.f32 %v2949_v31, %v2952_v34 }
0x11d8   :  { %v2954_v39 = vmul.f32 1.442695, %v2953_v37 }
0x11d9   :  { %v4450_v53 = vpop.permute.xlu1 %4449 }
0x11da   :  { %4536 = vpow2.f32 %v2954_v39  ;;  %v4452_v55 = vunpack.i.h.bf16 %v4450_v53  ;;  %v4451_v56 = vunpack.i.l.bf16 %v4450_v53  ;;  %v3403_v39 = vld [vmem:[#allocation11] sm:$0xff] }
0x11dc   :  { %v4328_v58 = vpack.c.bf16 %v4452_v55, %v4451_v56 }
0x11dd   :  { %v3046_v59 = vpop.permute.xlu1 %3045 }
0x11e4   :  { %v4537_v40 = vpop.eup %4536 }
0x11e5   :  { %v2956_v41 = vsel %vm2070_vm2, %v4537_v40, 0.0 }
0x11e6   :  { %2957 = vadd.xlane.f32.xlu0 %v2956_v41 }
0x11fc   :  { %4444 = vrot.lane.b32.xlu0 %v5264_v35, %s4718_s12 }
0x1273   :  { %v2958_v42 = vpop.xlane.xlu0 %2957 }
0x1274   :  { %4538 = vrcp.f32 %v2958_v42  ;;  %v3405_v42 = vld [vmem:[#allocation11 + $0x10] sm:$0xff] }
0x1277   :  { %v4445_v44 = vpop.permute.xlu0 %4444 }
0x1278   :  { %v4447_v49 = vunpack.i.h.bf16 %v4445_v44  ;;  %v4446_v51 = vunpack.i.l.bf16 %v4445_v44  ;;  %v3406_v44 = vld [vmem:[#allocation11 + $0x18] sm:$0xff] }
0x127a   :  { %v4325_v52 = vpack.c.bf16 %v4447_v49, %v4446_v51  ;;  %v4345_v49 = vpack.c.bf16 %v3406_v44, %v3405_v42  ;;  %v3648_v42 = vld [vmem:[%s5508_s10 + $0x30] sm:$0xff]  ;;  %v3649_v44 = vld [vmem:[%s5508_s10 + $0x38] sm:$0xff] }
0x127c   :  { %4326 = vmatpush3.bf16.msra.mxu0 %v4325_v52 }
0x127d   :  { %4327 = vmatprep.subr.bf16.mxu0 %v4731_v50 }
0x127e   :  { %v4539_v54 = vpop.eup %4538 }
0x127f   :  { %v2960_v57 = vmul.f32 %v4539_v54, %v4537_v40  ;;  %v3404_v40 = vld [vmem:[#allocation11 + $0x8] sm:$0xff] }
0x1280   :  { %v4341_v41 = vpack.c.bf16 %v3404_v40, %v3403_v39 }
0x1281   :  { %4182 = vmatmul.mubr.msk.f32.vlgmr.msra.gmra.mrb[28].mxu0 %vm2070_vm2, %v2960_v57 }
0x1282   :  { %4188 = vmatprep.mubr.msk.f32.mxu0 %vm4717_vm5, %v4716_v46 }
0x1285   :  { %4330 = vmatpush3.bf16.xpose.msk.msra.mxu0 %vm5211_vm15, %v4328_v58 }
0x1286   :  { %4338 = vmatprep.subr.bf16.mxu0 %v4731_v50 }
0x128c   :  { %4189 = vmatmul.mubr.msk.f32.vlgmr.msra.gmra.mrb[30].mxu0 %vm298_vm6, %v3046_v59 }
0x128d   :  { %4209 = vmatprep.mubr.msk.f32.mxu0 %vm4717_vm5, %v4716_v46 }
0x1354   :  { %v3036_v38 = vpop.f32.mrb[28].mxu0 }
0x1355   :  { %v4183_v60 = vpop.f32.mrb[29].mxu0 }
0x135f   :  { %v3123_v61 = vpop.f32.mrb[30].mxu0 }
0x1360   :  { %v3127_v62 = vsel %vm5345_vm3, %v3123_v61, -1e+09  ;;  %v4190_v63 = vpop.f32.mrb[31].mxu0 }
0x1361   :  { %v3128_v2 = vsel %vm2070_vm2, %v3127_v62, -inf }
0x1362   :  { %3129 = vmax.xlane.f32.xlu0 %v3128_v2 }
0x1378   :  { %4454 = vrot.lane.b32.xlu0 %v5264_v35, %s4722_s21 }
0x137c   :  { %3223 = vrot.lane.b32.xlu0 %v5235_v28, %s4723_s2 }
0x13ef   :  { %v3130_v4 = vpop.xlane.xlu0 %3129 }
0x13f0   :  { %v3131_v5 = vsub.f32 %v3127_v62, %v3130_v4 }
0x13f2   :  { %v3132_v6 = vmul.f32 1.442695, %v3131_v5 }
0x13f3   :  { %v4455_v29 = vpop.permute.xlu0 %4454 }
0x13f4   :  { %4540 = vpow2.f32 %v3132_v6  ;;  %v4457_v1 = vunpack.i.h.bf16 %v4455_v29  ;;  %v4456_v36 = vunpack.i.l.bf16 %v4455_v29  ;;  %v3548_v29 = vld [vmem:[#allocation13] sm:$0xff] }
0x13f6   :  { %v4332_v48 = vpack.c.bf16 %v4457_v1, %v4456_v36  ;;  %v3549_v1 = vld [vmem:[#allocation13 + $0x8] sm:$0xff]  ;;  %v3550_v36 = vld [vmem:[#allocation13 + $0x10] sm:$0xff] }
0x13f8   :  { %4333 = vmatpush3.bf16.msra.mxu1 %v4332_v48  ;;  %v4349_v48 = vpack.c.bf16 %v3549_v1, %v3548_v29 }
0x13f9   :  { %4334 = vmatprep.subr.bf16.mxu1 %v4731_v50  ;;  %v3224_v50 = vpop.permute.xlu0 %3223 }
0x13fe   :  { %v4541_v8 = vpop.eup %4540 }
0x13ff   :  { %v3134_v9 = vsel %vm2070_vm2, %v4541_v8, 0.0 }
0x1400   :  { %3135 = vadd.xlane.f32.xlu1 %v3134_v9 }
0x1411   :  { %4459 = vrot.lane.b32.xlu1 %v5264_v35, %s4723_s2 }
0x148d   :  { %v3136_v10 = vpop.xlane.xlu1 %3135 }
0x148e   :  { %4542 = vrcp.f32 %v3136_v10  ;;  %v3642_v10 = vld [vmem:[%s5508_s10] sm:$0xff] }
0x1491   :  { %v4460_v28 = vpop.permute.xlu1 %4459 }
0x1492   :  { %v4462_v11 = vunpack.i.h.bf16 %v4460_v28  ;;  %v4461_v12 = vunpack.i.l.bf16 %v4460_v28  ;;  %v3643_v28 = vld [vmem:[%s5508_s10 + $0x8] sm:$0xff] }
0x1494   :  { %v4335_v14 = vpack.c.bf16 %v4462_v11, %v4461_v12  ;;  %v3644_v11 = vld [vmem:[%s5508_s10 + $0x10] sm:$0xff]  ;;  %v4357_v12 = vpack.c.bf16 %v3643_v28, %v3642_v10 }
0x1498   :  { %v4543_v3 = vpop.eup %4542 }
0x1499   :  { %v3138_v13 = vmul.f32 %v4543_v3, %v4541_v8  ;;  %v3551_v8 = vld [vmem:[#allocation13 + $0x18] sm:$0xff] }
0x149a   :  { %v4353_v9 = vpack.c.bf16 %v3551_v8, %v3550_v36  ;;  %v3645_v3 = vld [vmem:[%s5508_s10 + $0x18] sm:$0xff] }
0x149b   :  { %4196 = vmatmul.mubr.msk.f32.vlgmr.msra.gmra.mrb[36].mxu1 %vm2070_vm2, %v3138_v13  ;;  %v4361_v13 = vpack.c.bf16 %v3645_v3, %v3644_v11 }
0x149c   :  { %4337 = vmatpush3.bf16.xpose.msk.msra.mxu1 %vm5211_vm15, %v4335_v14  ;;  %4202 = vmatprep.mubr.msk.f32.mxu1 %vm4717_vm5, %v4716_v46  ;;  %v3646_v14 = vld [vmem:[%s5508_s10 + $0x20] sm:$0xff] }
0x149d   :  { %4350 = vmatprep.subr.bf16.mxu1 %v4349_v48 }
0x14a3   :  { %4203 = vmatmul.mubr.msk.f32.vlgmr.msra.gmra.mrb[38].mxu1 %vm298_vm6, %v3224_v50  ;;  %v3647_v50 = vld [vmem:[%s5508_s10 + $0x28] sm:$0xff]  ;;  %s5535_s10 = sld [smem:[#allocation23_spill]] }
0x14a4   :  { %4352 = vmatpush3.bf16.msra.mxu1 %v4349_v48 }
0x14a5   :  { %4354 = vmatprep.subr.bf16.mxu1 %v4353_v9 }
0x14a8   :  { %4356 = vmatpush3.bf16.msra.mxu1 %v4353_v9 }
0x156e   :  { %v3214_v15 = vpop.f32.mrb[36].mxu1 }
0x156f   :  { %v4197_v16 = vpop.f32.mrb[37].mxu1 }
0x1576   :  { %v3301_v19 = vpop.f32.mrb[38].mxu1 }
0x1577   :  { %v3305_v20 = vsel %vm5345_vm3, %v3301_v19, -1e+09  ;;  %v4204_v22 = vpop.f32.mrb[39].mxu1 }
0x1578   :  { %v3306_v24 = vsel %vm2070_vm2, %v3305_v20, -inf }
0x1579   :  { %3307 = vmax.xlane.f32.xlu1 %v3306_v24 }
0x158a   :  { %2336 = vrot.lane.b32.xlu1 %v5314_v43, %s4712_s20 }
0x158e   :  { %2514 = vrot.lane.b32.xlu1 %v5316_v45, %s4729_s27 }
0x1592   :  { %2692 = vrot.lane.b32.xlu1 %v5342_v18, %s4730_s28 }
0x1606   :  { %v3308_v46 = vpop.xlane.xlu1 %3307 }
0x1607   :  { %v3309_v17 = vsub.f32 %v3305_v20, %v3308_v46 }
0x1609   :  { %v3310_v25 = vmul.f32 1.442695, %v3309_v17 }
0x160a   :  { %v2337_v26 = vpop.permute.xlu1 %2336 }
0x160b   :  { %4544 = vpow2.f32 %v3310_v25  ;;  %2339 = vst.msk [vmem:[#allocation2] sm:$0xff] %vm632_vm8, %v2337_v26 }
0x160e   :  { %v2515_v7 = vpop.permute.xlu1 %2514 }
0x160f   :  { %2517 = vst.msk [vmem:[#allocation2] sm:$0xff] %vm804_vm9, %v2515_v7 }
0x1612   :  { %v2693_v27 = vpop.permute.xlu1 %2692 }
0x1613   :  { %2695 = vst.msk [vmem:[#allocation2] sm:$0xff] %vm976_vm10, %v2693_v27 }
0x1615   :  { %v4545_v43 = vpop.eup %4544 }
0x1616   :  { %v3312_v47 = vsel %vm2070_vm2, %v4545_v43, 0.0 }
0x1617   :  { %3313 = vadd.xlane.f32.xlu0 %v3312_v47 }
0x162d   :  { %4464 = vrot.lane.b32.xlu0 %v5264_v35, %s4724_s24  ;;  %v3401_v35 = vld [vmem:[#allocation2] sm:$0xff] }
0x1631   :  { %3041 = vrot.lane.b32.xlu0 %v3036_v38, %s4712_s20 }
0x1635   :  { %3219 = vrot.lane.b32.xlu0 %v3214_v15, %s4729_s27  ;;  %v4365_v15 = vpack.c.bf16 %v3647_v50, %v3646_v14 }
0x16a4   :  { %v3314_v45 = vpop.xlane.xlu0 %3313 }
0x16a5   :  { %4546 = vrcp.f32 %v3314_v45 }
0x16a8   :  { %v4465_v18 = vpop.permute.xlu0 %4464 }
0x16a9   :  { %v4467_v30 = vunpack.i.h.bf16 %v4465_v18  ;;  %v4466_v0 = vunpack.i.l.bf16 %v4465_v18 }
0x16ab   :  { %v4339_v31 = vpack.c.bf16 %v4467_v30, %v4466_v0  ;;  %v3837_v0 = vld [vmem:[%s5514_s16] ss:$0 sm:$0xff] }
0x16ac   :  { %v3042_v32 = vpop.permute.xlu0 %3041 }
0x16ad   :  { %3044 = vst.msk [vmem:[#allocation2 + $0x8] sm:$0xff] %vm632_vm8, %v3042_v32  ;;  %4340 = vmatpush3.bf16.msra.mxu0 %v4339_v31  ;;  %vm3650_vm8 = vcmask 523264  }
0x16ae   :  { %4342 = vmatprep.subr.bf16.mxu0 %v4341_v41 }
0x16af   :  { %v4547_v33 = vpop.eup %4546 }
0x16b0   :  { %v3316_v34 = vmul.f32 %v4547_v33, %v4545_v43  ;;  %v3220_v37 = vpop.permute.xlu0 %3219  ;;  %v3838_v33 = vld [vmem:[%s5515_s17] ss:$0 sm:$0xff] }
0x16b1   :  { %3222 = vst.msk [vmem:[#allocation2 + $0x8] sm:$0xff] %vm804_vm9, %v3220_v37 }
0x16b2   :  { %4210 = vmatmul.mubr.msk.f32.vlgmr.msra.gmra.mrb[32].mxu0 %vm2070_vm2, %v3316_v34 }
0x16b3   :  { %4220 = vmatprep.mubr.msk.f32.mxu0 %vm151_vm0, %v3401_v35  ;;  %4344 = vmatpush3.bf16.msra.mxu0 %v4341_v41 }
0x16b4   :  { %4346 = vmatprep.subr.bf16.mxu0 %v4345_v49 }
0x16b7   :  { %4348 = vmatpush3.bf16.msra.mxu0 %v4345_v49  ;;  %v4369_v49 = vpack.c.bf16 %v3649_v44, %v3648_v42 }
0x16b8   :  { %4358 = vmatprep.subr.bf16.mxu0 %v4357_v12 }
0x1785   :  { %v3392_v51 = vpop.f32.mrb[32].mxu0 }
0x1786   :  { %3397 = vrot.lane.b32.xlu1 %v3392_v51, %s4730_s28  ;;  %v4211_v52 = vpop.f32.mrb[33].mxu0  ;;  %v3839_v51 = vld [vmem:[%s5507_s9] ss:$0 sm:$0xff]  ;;  %s4676_s9 = scalar_lea.vmem %s3751_s23, 256 }
0x1787   :  { %p4677_p1 = scmp.ne.s32.totalorder %s3751_s23, %s4676_s9  ;;  %p4682_p3 = scmp.lt.s32.totalorder %s4676_s9, %s4676_s9 }
0x1789   :  { %p4683_p4 = por %p4682_p3, %p4681_p2 }
0x178b   :  { %p4684_p5 = pnand %p4683_p4, %p4677_p1 }
0x17f8   :  { %v3398_v53 = vpop.permute.xlu1 %3397 }
0x17f9   :  { %3400 = vst.msk [vmem:[#allocation2 + $0x8] sm:$0xff] %vm976_vm10, %v3398_v53 }
0x1800   :  { %v3402_v54 = vld [vmem:[#allocation2 + $0x8] sm:$0xff] }
0x1801   :  { %4221 = vmatmul.mubr.msk.f32.vlgmr.msra.gmra.mrb[34].mxu0 %vm151_vm0, %v3402_v54 }
0x1802   :  { %4360 = vmatpush3.bf16.msra.mxu0 %v4357_v12 }
0x1803   :  { %4362 = vmatprep.subr.bf16.mxu0 %v4361_v13 }
0x1806   :  { %4364 = vmatpush3.bf16.msra.mxu0 %v4361_v13 }
0x1807   :  { %4366 = vmatprep.subr.bf16.mxu0 %v4365_v15 }
0x180a   :  { %4368 = vmatpush3.bf16.msra.mxu0 %v4365_v15 }
0x180b   :  { %4370 = vmatprep.subr.bf16.mxu0 %v4369_v49 }
0x180e   :  { %4372 = vmatpush3.bf16.msra.mxu0 %v4369_v49 }
0x18d4   :  { %v4222_v55 = vpop.f32.mrb[34].mxu0 }
0x18d5   :  { %v5428_v56 = vadd.f32 %v4222_v55, %v5171_v21  ;;  %v3479_v57 = vpop.f32.mrb[35].mxu0 }
0x18d6   :  { %v5431_v58 = vadd.f32 %v3479_v57, %v5174_v23 }
0x18d7   :  { %v3495_v59 = vsel %vm151_vm0, %v5428_v56, 0.0 }
0x18d8   :  { %3496 = vadd.xlane.f32.xlu1 %v3495_v59  ;;  %v3492_v38 = vsel %vm151_vm0, %v5431_v58, 0.0 }
0x18d9   :  { %3493 = vadd.xlane.f32.xlu0 %v3492_v38 }
0x1965   :  { %v3497_v60 = vpop.xlane.xlu1 %3496 }
0x1966   :  { %v3499_v61 = vmul.f32 0.03125, %v3497_v60  ;;  %v3494_v62 = vpop.xlane.xlu0 %3493  ;;  %v3844_v60 = vld [vmem:[%s5535_s10] ss:$0 sm:$0xff] }
0x1967   :  { %v3498_v63 = vmul.f32 0.03125, %v3494_v62 }
0x1968   :  { %v3501_v2 = vsub.f32 %v5428_v56, %v3499_v61 }
0x1969   :  { %v3500_v21 = vsub.f32 %v5431_v58, %v3498_v63 }
0x196a   :  { %v3503_v5 = vmul.f32 %v3501_v2, %v3501_v2  ;;  %v3519_v37 = vmul.f32 %v3837_v0, %v3501_v2 }
0x196b   :  { %v3502_v4 = vmul.f32 %v3500_v21, %v3500_v21  ;;  %v3518_v31 = vmul.f32 %v3837_v0, %v3500_v21 }
0x196c   :  { %v3507_v6 = vsel %vm151_vm0, %v3503_v5, 0.0 }
0x196d   :  { %v3504_v23 = vsel %vm151_vm0, %v3502_v4, 0.0 }
0x196e   :  { %3505 = vadd.xlane.f32.xlu0 %v3504_v23 }
0x1972   :  { %3508 = vadd.xlane.f32.xlu0 %v3507_v6 }
0x19fb   :  { %v3506_v16 = vpop.xlane.xlu0 %3505 }
0x19fc   :  { %v3510_v19 = vmul.f32 0.032258064, %v3506_v16 }
0x19fe   :  { %4548 = vrsqrt.f32 %v3510_v19  ;;  %vm3522_vm4 = vcmp.eq.f32.partialorder %v3510_v19, inf  ;;  %v3525_v17 = vand.u32 2147483648, %v3510_v19  ;;  %vm3524_vm5 = vcmp.eq.f32.partialorder %v3510_v19, 0.0 }
0x19ff   :  { %v3509_v20 = vpop.xlane.xlu0 %3508 }
0x1a00   :  { %v3511_v22 = vmul.f32 0.032258064, %v3509_v20 }
0x1a02   :  { %4550 = vrsqrt.f32 %v3511_v22  ;;  %vm3529_vm6 = vcmp.eq.f32.partialorder %v3511_v22, inf  ;;  %v3532_v47 = vand.u32 2147483648, %v3511_v22  ;;  %vm3531_vm7 = vcmp.eq.f32.partialorder %v3511_v22, 0.0 }
0x1a08   :  { %v4549_v24 = vpop.eup %4548 }
0x1a09   :  { %v3521_v46 = vmul.f32 %v4549_v24, %v3510_v19 }
0x1a0b   :  { %v3523_v25 = vsel %vm3522_vm4, %v3510_v19, %v3521_v46 }
0x1a0c   :  { %v4551_v26 = vpop.eup %4550  ;;  %v3526_v7 = vsel %vm3524_vm5, %v3525_v17, %v3523_v25 }
0x1a0d   :  { %v3528_v27 = vmul.f32 %v4551_v26, %v3511_v22  ;;  %v3534_v43 = vadd.f32 1e-06, %v3526_v7 }
0x1a0f   :  { %v3530_v45 = vsel %vm3529_vm6, %v3511_v22, %v3528_v27  ;;  %4552 = vrcp.f32 %v3534_v43 }
0x1a10   :  { %v3533_v18 = vsel %vm3531_vm7, %v3532_v47, %v3530_v45 }
0x1a11   :  { %v3535_v30 = vadd.f32 1e-06, %v3533_v18 }
0x1a13   :  { %4554 = vrcp.f32 %v3535_v30 }
0x1a19   :  { %v4553_v32 = vpop.eup %4552 }
0x1a1a   :  { %v3537_v34 = vmul.f32 %v4553_v32, %v3518_v31 }
0x1a1c   :  { %v3546_v35 = vadd.f32 %v3838_v33, %v3537_v34 }
0x1a1d   :  { %v4555_v39 = vpop.eup %4554 }
0x1a1e   :  { %v3539_v40 = vmul.f32 %v4555_v39, %v3519_v37  ;;  %4231 = vmatprep.mubr.msk.f32.mxu1 %vm151_vm0, %v3546_v35 }
0x1a20   :  { %v3547_v41 = vadd.f32 %v3838_v33, %v3539_v40 }
0x1a22   :  { %4232 = vmatmul.mubr.msk.f32.vlgmr.msra.gmra.mrb[40].mxu1 %vm151_vm0, %v3547_v41 }
0x1af5   :  { %v4233_v52 = vpop.f32.mrb[40].mxu1 }
0x1af6   :  { %v3637_v53 = vadd.f32 %v4233_v52, %v3839_v51  ;;  %v3631_v54 = vpop.f32.mrb[41].mxu1 }
0x1af7   :  { %v3632_v55 = vadd.f32 %v3839_v51, %v3631_v54 }
0x1af8   :  { %v3641_v59 = vmax.f32 %v3637_v53, 0.0 }
0x1af9   :  { %v3640_v57 = vmax.f32 %v3632_v55, 0.0 }
0x1afb   :  { %4250 = vmatprep.mubr.msk.f32.mxu0 %vm3650_vm8, %v3640_v57 }
0x1afc   :  { %4251 = vmatmul.mubr.msk.f32.vlgmr.msra.gmra.mrb[36].mxu0 %vm3650_vm8, %v3641_v59 }
0x1bcf   :  { %v4252_v38 = vpop.f32.mrb[36].mxu0 }
0x1bd0   :  { %v3733_v61 = vadd.f32 %v4252_v38, %v5428_v56  ;;  %v3723_v62 = vpop.f32.mrb[37].mxu0 }
0x1bd1   :  { %v3732_v63 = vadd.f32 %v3723_v62, %v5431_v58 }
0x1bd2   :  { %v3742_v2 = vadd.f32 %v3844_v60, %v3733_v61 }
0x1bd3   :  { %v3741_v21 = vadd.f32 %v3844_v60, %v3732_v63 }
0x1bd4   :  { %3744 = vst.msk [vmem:[#allocation14 + $0x8] sm:$0xff] %vm151_vm0, %v3742_v2 }
0x1bd5   :  { %3743 = vst.msk [vmem:[#allocation14] sm:$0xff] %vm151_vm0, %v3741_v21 }
0x1bd6   :  { %4687 = shalt.err (!%p4684_p5)
}
0x1bd7   :  { %s4688_s0 = scalar_lea.hbm %s5516_s18, 256 }
0x1bd8   :  { %p4689_p6 = scmp.ne.s32.totalorder %s5516_s18, %s4688_s0  ;;  %p4692_p7 = scmp.lt.u32.totalorder %s4688_s0, %s5516_s18 }
0x1bda   :  { %p4694_p8 = pnand %p4692_p7, %p4689_p6 }
0x1bdc   :  { %4697 = shalt.err (!%p4694_p8)
}
0x1bdd   :  { %3756 = dma.vmem_to_hbm [thread:$0]  %s3751_s23, 256, %s5516_s18, [#allocation7], %s4711_s1, %s4711_s1, %s4712_s20  }
0x1bde   :  { %4706 = dma.done.wait [#allocation7], 256  }
0x1bdf   :  { %4707 = vsyncadd [#allocation7], 4294967040 }
0x1be0   :  { %3760 = vsyncpa [#allocation6], 1 }
0x1be1   :  { %3761 = vsyncpa [#allocation9], 1 }
0x1be2   :  { %3762 = vsyncpa [#allocation12], 1 }
0x1be3   :  { %3763 = vsyncpa [#allocation7], 1 }

// kernel: tpu_custom_call.1
= control target key start
LH: loop header
LB: loop body
LE: loop exit
PB: predicated region body
PF: predicated region fallthrough
CT: control target
= control target key end

     0   :  { %s5498_s0 = inlined_call_operand.hbm [shape: s32[2], index: 0, kind: input, shape index: {}]   ;;  %s5499_s1 = inlined_call_operand.hbm [shape: f32[2,8,32], index: 1, kind: input, shape index: {}]   ;;  %s5500_s2 = inlined_call_operand.vmem [shape: f32[2,16,32], index: 2, kind: input, shape index: {}]   ;;  %s5501_s3 = inlined_call_operand.vmem [shape: f32[32,96], index: 3, kind: input, shape index: {}]   ;;  %s5502_s4 = inlined_call_operand.vmem [shape: f32[32,32], index: 4, kind: input, shape index: {}]   ;;  %s5503_s5 = inlined_call_operand.hbm [shape: f32[32,32], index: 5, kind: input, shape index: {}]   ;;  %s5504_s6 = inlined_call_operand.hbm [shape: f32[32,64], index: 6, kind: input, shape index: {}]   ;;  %s5505_s7 = inlined_call_operand.hbm [shape: f32[32,32], index: 7, kind: input, shape index: {}]   ;;  %s5506_s8 = inlined_call_operand.hbm [shape: f32[32,64], index: 8, kind: input, shape index: {}]   ;;  %s5507_s9 = inlined_call_operand.vmem [shape: f32[1,64], index: 9, kind: input, shape index: {}]   ;;  %s5508_s10 = inlined_call_operand.vmem [shape: f32[64,32], index: 10, kind: input, shape index: {}]   ;;  %s5509_s11 = inlined_call_operand.vmem [shape: f32[1,32], index: 11, kind: input, shape index: {}]   ;;  %s5510_s12 = inlined_call_operand.vmem [shape: f32[1,32], index: 12, kind: input, shape index: {}]   ;;  %s5511_s13 = inlined_call_operand.vmem [shape: f32[1,32], index: 13, kind: input, shape index: {}]   ;;  %s5512_s14 = inlined_call_operand.vmem [shape: f32[1,32], index: 14, kind: input, shape index: {}]   ;;  %s5513_s15 = inlined_call_operand.vmem [shape: f32[1,32], index: 15, kind: input, shape index: {}]   ;;  %s5514_s16 = inlined_call_operand.vmem [shape: f32[1,32], index: 16, kind: input, shape index: {}]   ;;  %s5515_s17 = inlined_call_operand.vmem [shape: f32[1,32], index: 17, kind: input, shape index: {}]   ;;  %s5516_s18 = inlined_call_operand.hbm [shape: f32[2,8,32], index: 18, kind: output, shape index: {}]  }
   0x1   :  { %5520 = sst [smem:[#allocation20_spill]] %s5498_s0 }
   0x2   :  { %5521 = sst [smem:[#allocation21_spill]] %s5499_s1  ;;  %s5524_s29 = sld [smem:[#allocation20_spill]] }
   0x3   :  { %5522 = sst [smem:[#allocation22_spill]] %s5500_s2 }
   0x4   :  { %5523 = sst [smem:[#allocation23_spill]] %s5509_s11 }
   0x8   :  { %s4556_s11 = scalar_lea.hbm %s5524_s29, 16 }
   0x9   :  { %p4557_p0 = scmp.ne.s32.totalorder %s5524_s29, %s4556_s11  ;;  %p4560_p1 = scmp.lt.u32.totalorder %s4556_s11, %s5524_s29 }
   0xb   :  { %p4562_p2 = pnand %p4560_p1, %p4557_p0 }
   0xd   :  { %4565 = shalt.err (!%p4562_p2)  }
   0xe   :  { %s4708_s20 = smov [#allocation4]  }
   0xf   :  { %24 = dma.hbm_to_smem %s5524_s29, 16, %s4708_s20, [#allocation3] }
  0x10   :  { %4698 = dma.done.wait [#allocation3], 16 }
  0x11   :  { %4699 = vsyncadd [#allocation3], 4294967280 }
  0x12   :  { %26 = sfence }
  0x13   :  { %27 = vsyncpa [#allocation6], 0 }
  0x14   :  { %28 = vsyncpa [#allocation9], 0 }
  0x15   :  { %29 = vsyncpa [#allocation12], 0 }
  0x16   :  { %30 = vsyncpa [#allocation7], 0  ;;  %s4709_s2 = smov [#allocation8]   ;;  %s4710_s24 = smov [#allocation11]  }
  0x17   :  { %s54_s23 = sshll.u32 %s4709_s2, 4  ;;  %s78_s25 = sshll.u32 %s4710_s24, 4  ;;  %s55_s23 = int_to_ptr.vmem [resolvable:$true] %s54_s23  ;;  %s4840_s25 = int_to_ptr.vmem [resolvable:$true] %s78_s25 }
  0x18   :  { %s4566_s27 = scalar_lea.hbm %s5503_s5, 512 }
  0x19   :  { %p4567_p3 = scmp.ne.s32.totalorder %s5503_s5, %s4566_s27  ;;  %p4570_p4 = scmp.lt.u32.totalorder %s4566_s27, %s5503_s5 }
  0x1b   :  { %p4572_p5 = pnand %p4570_p4, %p4567_p3 }
  0x1d   :  { %4575 = shalt.err (!%p4572_p5)
}
  0x1e   :  { %s4576_s19 = scalar_lea.vmem %s55_s23, 512  ;;  %p4581_p7 = scmp.lt.s32.totalorder %s55_s23, %s55_s23 }
  0x1f   :  { %p4577_p6 = scmp.ne.s32.totalorder %s55_s23, %s4576_s19  ;;  %p4582_p8 = scmp.lt.s32.totalorder %s4576_s19, %s4576_s19 }
  0x21   :  { %p4583_p9 = por %p4582_p8, %p4581_p7 }
  0x23   :  { %p4584_p10 = pnand %p4583_p9, %p4577_p6 }
  0x25   :  { %4587 = shalt.err (!%p4584_p10)
}
  0x26   :  { %s4711_s1 = smov 128   ;;  %s4712_s20 = smov 8  }
  0x27   :  { %60 = dma.hbm_to_vmem [thread:$0]  %s5503_s5, 512, %s55_s23, [#allocation9], %s4711_s1, %s4711_s1, %s4712_s20  }
  0x28   :  { %s4588_s11 = scalar_lea.hbm %s5505_s7, 512 }
  0x29   :  { %p4589_p11 = scmp.ne.s32.totalorder %s5505_s7, %s4588_s11  ;;  %p4592_p12 = scmp.lt.u32.totalorder %s4588_s11, %s5505_s7 }
  0x2b   :  { %p4594_p13 = pnand %p4592_p12, %p4589_p11 }
  0x2d   :  { %4597 = shalt.err (!%p4594_p13)
}
  0x2e   :  { %s4598_s30 = scalar_lea.vmem %s4840_s25, 512  ;;  %p4603_p1 = scmp.lt.s32.totalorder %s4840_s25, %s4840_s25 }
  0x2f   :  { %p4599_p0 = scmp.ne.s32.totalorder %s4840_s25, %s4598_s30  ;;  %p4604_p2 = scmp.lt.s32.totalorder %s4598_s30, %s4598_s30 }
  0x31   :  { %p4605_p3 = por %p4604_p2, %p4603_p1 }
  0x33   :  { %p4606_p4 = pnand %p4605_p3, %p4599_p0 }
  0x35   :  { %4609 = shalt.err (!%p4606_p4)
}
  0x36   :  { %84 = dma.hbm_to_vmem [thread:$0]  %s5505_s7, 512, %s4840_s25, [#allocation12], %s4711_s1, %s4711_s1, %s4712_s20  }
  0x37   :  { %s4713_s0 = smov [#allocation5]   ;;  %s4714_s21 = smov [#allocation10]  }
  0x38   :  { %s36_s19 = sshll.u32 %s4713_s0, 4  ;;  %s66_s22 = sshll.u32 %s4714_s21, 4  ;;  %s37_s19 = int_to_ptr.vmem [resolvable:$true] %s36_s19  ;;  %s4877_s22 = int_to_ptr.vmem [resolvable:$true] %s66_s22 }
  0x39   :  { %s5525_s11 = sld [smem:[#allocation21_spill]] }
  0x3f   :  { %s4610_s26 = scalar_lea.hbm %s5525_s11, 256 }
  0x40   :  { %p4611_p5 = scmp.ne.s32.totalorder %s5525_s11, %s4610_s26  ;;  %p4614_p6 = scmp.lt.u32.totalorder %s4610_s26, %s5525_s11 }
  0x42   :  { %p4616_p7 = pnand %p4614_p6, %p4611_p5 }
  0x44   :  { %4619 = shalt.err (!%p4616_p7)
}
  0x45   :  { %s4620_s7 = scalar_lea.vmem %s37_s19, 256  ;;  %p4625_p9 = scmp.lt.s32.totalorder %s37_s19, %s37_s19 }
  0x46   :  { %p4621_p8 = scmp.ne.s32.totalorder %s37_s19, %s4620_s7  ;;  %p4626_p10 = scmp.lt.s32.totalorder %s4620_s7, %s4620_s7 }
  0x48   :  { %p4627_p11 = por %p4626_p10, %p4625_p9 }
  0x4a   :  { %p4628_p12 = pnand %p4627_p11, %p4621_p8 }
  0x4c   :  { %4631 = shalt.err (!%p4628_p12)
}
  0x4d   :  { %42 = dma.hbm_to_vmem [thread:$0]  %s5525_s11, 256, %s37_s19, [#allocation6], %s4711_s1, %s4711_s1, %s4712_s20  }
  0x4e   :  { %s4632_s21 = scalar_lea.hbm %s5504_s6, 512 }
  0x4f   :  { %p4633_p13 = scmp.ne.s32.totalorder %s5504_s6, %s4632_s21  ;;  %p4636_p0 = scmp.lt.u32.totalorder %s4632_s21, %s5504_s6 }
  0x51   :  { %p4638_p1 = pnand %p4636_p0, %p4633_p13 }
  0x53   :  { %4641 = shalt.err (!%p4638_p1)
}
  0x54   :  { %s4642_s28 = scalar_lea.vmem %s4877_s22, 512  ;;  %p4647_p3 = scmp.lt.s32.totalorder %s4877_s22, %s4877_s22 }
  0x55   :  { %p4643_p2 = scmp.ne.s32.totalorder %s4877_s22, %s4642_s28  ;;  %p4648_p4 = scmp.lt.s32.totalorder %s4642_s28, %s4642_s28 }
  0x57   :  { %p4649_p5 = por %p4648_p4, %p4647_p3 }
  0x59   :  { %p4650_p6 = pnand %p4649_p5, %p4643_p2 }
  0x5b   :  { %4653 = shalt.err (!%p4650_p6)
}
  0x5c   :  { %72 = dma.hbm_to_vmem [thread:$0]  %s5504_s6, 512, %s4877_s22, [#allocation9], %s4711_s1, %s4711_s1, %s4712_s20  }
  0x5d   :  { %s4715_s29 = smov [#allocation13]   ;;  %s4654_s5 = scalar_lea.hbm %s5506_s8, 512 }
  0x5e   :  { %s90_s30 = sshll.u32 %s4715_s29, 4  ;;  %p4655_p7 = scmp.ne.s32.totalorder %s5506_s8, %s4654_s5  ;;  %s91_s30 = int_to_ptr.vmem [resolvable:$true] %s90_s30 }
  0x5f   :  { %p4658_p8 = scmp.lt.u32.totalorder %s4654_s5, %s5506_s8 }
  0x61   :  { %p4660_p9 = pnand %p4658_p8, %p4655_p7 }
  0x63   :  { %4663 = shalt.err (!%p4660_p9)
}
  0x64   :  { %s4664_s24 = scalar_lea.vmem %s91_s30, 512  ;;  %p4669_p11 = scmp.lt.s32.totalorder %s91_s30, %s91_s30 }
  0x65   :  { %p4665_p10 = scmp.ne.s32.totalorder %s91_s30, %s4664_s24  ;;  %p4670_p12 = scmp.lt.s32.totalorder %s4664_s24, %s4664_s24 }
  0x67   :  { %p4671_p13 = por %p4670_p12, %p4669_p11 }
  0x69   :  { %p4672_p0 = pnand %p4671_p13, %p4665_p10 }
  0x6b   :  { %4675 = shalt.err (!%p4672_p0)
}
  0x6c   :  { %96 = dma.hbm_to_vmem [thread:$0]  %s5506_s8, 512, %s91_s30, [#allocation12], %s4711_s1, %s4711_s1, %s4712_s20  }
  0x6d   :  { %4700 = dma.done.wait [#allocation6], 256  }
  0x6e   :  { %4701 = vsyncadd [#allocation6], 4294967040 }
  0x6f   :  { %4702 = dma.done.wait [#allocation9], 1024  }
  0x70   :  { %4703 = vsyncadd [#allocation9], 4294966272 }
  0x71   :  { %4704 = dma.done.wait [#allocation12], 1024  }
  0x72   :  { %4705 = vsyncadd [#allocation12], 4294966272  ;;  %vm151_vm0 = vcmask 261120   ;;  %v4929_v0 = vld [vmem:[#allocation5] sm:$0xff]  ;;  %v4931_v1 = vld [vmem:[#allocation5 + $0x8] sm:$0xff]  ;;  %v4716_v46 = vmov 0.0   ;;  %v136_v63 = vlaneseq }
  0x73   :  { %v152_v2 = vsel %vm151_vm0, %v4929_v0, 0.0  ;;  %v155_v3 = vsel %vm151_vm0, %v4931_v1, 0.0  ;;  %v210_v14 = vld [vmem:[%s5501_s3] sm:$0xff]  ;;  %v211_v15 = vld [vmem:[%s5501_s3 + $0x8] sm:$0xff]  ;;  %v212_v16 = vld [vmem:[%s5501_s3 + $0x10] sm:$0xff]  ;;  %3994 = vmatprep.subr.mxu0 %v4716_v46  ;;  %vm4717_vm5 = vmmov 0  }
  0x74   :  { %153 = vadd.xlane.f32.xlu0 %v152_v2  ;;  %v4253_v17 = vpack.c.bf16 %v211_v15, %v210_v14  ;;  %v213_v18 = vld [vmem:[%s5501_s3 + $0x18] sm:$0xff]  ;;  %v3765_v36 = vld [vmem:[%s5510_s12] ss:$0 sm:$0xff]  ;;  %3996 = vmatprep.mubr.msk.f32.mxu0 %vm4717_vm5, %v4716_v46  ;;  %s4718_s12 = smov 88   ;;  %s4720_s23 = smov 120   ;;  %vm298_vm6 = vcmask 64512  }
  0x75   :  { %v4257_v19 = vpack.c.bf16 %v213_v18, %v212_v16  ;;  %v3766_v39 = vld [vmem:[%s5511_s13] ss:$0 sm:$0xff]  ;;  %s4719_s13 = smov 96   ;;  %s4721_s0 = smov 112   ;;  %v137_v2 = vshrl.u32 %v136_v63, 7  ;;  %vm632_vm8 = vcmask 130112   ;;  %vm5211_vm15 = vmpackc.low %vm298_vm6, %vm298_vm6 }
  0x76   :  { %4254 = vmatprep.subr.bf16.mxu1 %v4253_v17  ;;  %s4722_s21 = smov 80   ;;  %s4723_s2 = smov 104   ;;  %vm804_vm9 = vcmask 195712   ;;  %vm976_vm10 = vcmask 261312  }
  0x77   :  { %4256 = vmatpush3.bf16.msra.mxu1 %v4253_v17  ;;  %s4724_s24 = smov 72   ;;  %s4725_s6 = smov 64  }
  0x78   :  { %156 = vadd.xlane.f32.xlu0 %v155_v3  ;;  %4258 = vmatprep.subr.bf16.mxu1 %v4257_v19  ;;  %v5038_v3 = vand.u32 127, %v136_v63  ;;  %s4726_s22 = smov 48   ;;  %s4727_s8 = smov 40  }
  0x79   :  { %s4728_s26 = smov 56   ;;  %s4729_s27 = smov 16  }
  0x7a   :  { %vm5041_vm7 = vcmp.ge.s32.totalorder %v137_v2, %v5038_v3  ;;  %s4730_s28 = smov 24   ;;  %s142_s25 = sld [smem:[#allocation4]] }
  0x7b   :  { %4260 = vmatpush3.bf16.msra.mxu1 %v4257_v19 }
  0x7c   :  { %3984 = vmatprep.subr.mxu1 %v4716_v46 }
 0x101   :  { %v154_v4 = vpop.xlane.xlu0 %153 }
 0x102   :  { %v159_v5 = vmul.f32 0.03125, %v154_v4 }
 0x104   :  { %v161_v6 = vsub.f32 %v4929_v0, %v159_v5 }
 0x105   :  { %v157_v7 = vpop.xlane.xlu0 %156 }
 0x106   :  { %v160_v8 = vmul.f32 0.03125, %v157_v7  ;;  %v163_v9 = vmul.f32 %v161_v6, %v161_v6  ;;  %v180_v37 = vmul.f32 %v3765_v36, %v161_v6 }
 0x108   :  { %v162_v10 = vsub.f32 %v4931_v1, %v160_v8  ;;  %v165_v11 = vsel %vm151_vm0, %v163_v9, 0.0 }
 0x109   :  { %166 = vadd.xlane.f32.xlu1 %v165_v11 }
 0x10a   :  { %v164_v12 = vmul.f32 %v162_v10, %v162_v10  ;;  %v181_v41 = vmul.f32 %v3765_v36, %v162_v10 }
 0x10c   :  { %v168_v13 = vsel %vm151_vm0, %v164_v12, 0.0 }
 0x10d   :  { %169 = vadd.xlane.f32.xlu1 %v168_v13 }
 0x196   :  { %v167_v20 = vpop.xlane.xlu1 %166 }
 0x197   :  { %v172_v21 = vmul.f32 0.032258064, %v167_v20 }
 0x199   :  { %4468 = vrsqrt.f32 %v172_v21  ;;  %vm184_vm1 = vcmp.eq.f32.partialorder %v172_v21, inf  ;;  %v187_v26 = vand.u32 2147483648, %v172_v21  ;;  %vm186_vm2 = vcmp.eq.f32.partialorder %v172_v21, 0.0 }
 0x19a   :  { %v170_v22 = vpop.xlane.xlu1 %169 }
 0x19b   :  { %v173_v23 = vmul.f32 0.032258064, %v170_v22 }
 0x19d   :  { %4470 = vrsqrt.f32 %v173_v23  ;;  %vm191_vm3 = vcmp.eq.f32.partialorder %v173_v23, inf  ;;  %v194_v32 = vand.u32 2147483648, %v173_v23  ;;  %vm193_vm4 = vcmp.eq.f32.partialorder %v173_v23, 0.0 }
 0x1a3   :  { %v4469_v24 = vpop.eup %4468 }
 0x1a4   :  { %v183_v25 = vmul.f32 %v4469_v24, %v172_v21 }
 0x1a6   :  { %v185_v27 = vsel %vm184_vm1, %v172_v21, %v183_v25 }
 0x1a7   :  { %v4471_v28 = vpop.eup %4470  ;;  %v188_v29 = vsel %vm186_vm2, %v187_v26, %v185_v27  ;;  %vm2070_vm2 = vcmask 130048  }
 0x1a8   :  { %v190_v30 = vmul.f32 %v4471_v28, %v173_v23  ;;  %v196_v31 = vadd.f32 1e-06, %v188_v29 }
 0x1aa   :  { %v192_v33 = vsel %vm191_vm3, %v173_v23, %v190_v30  ;;  %4472 = vrcp.f32 %v196_v31 }
 0x1ab   :  { %v195_v34 = vsel %vm193_vm4, %v194_v32, %v192_v33 }
 0x1ac   :  { %v197_v35 = vadd.f32 1e-06, %v195_v34 }
 0x1ae   :  { %4474 = vrcp.f32 %v197_v35 }
 0x1b4   :  { %v4473_v38 = vpop.eup %4472 }
 0x1b5   :  { %v199_v40 = vmul.f32 %v4473_v38, %v180_v37 }
 0x1b7   :  { %v208_v42 = vadd.f32 %v3766_v39, %v199_v40 }
 0x1b8   :  { %v4475_v43 = vpop.eup %4474 }
 0x1b9   :  { %v201_v44 = vmul.f32 %v4475_v43, %v181_v41  ;;  %3981 = vmatprep.mubr.msk.f32.mxu1 %vm151_vm0, %v208_v42 }
 0x1bb   :  { %v209_v45 = vadd.f32 %v3766_v39, %v201_v44 }
 0x1bd   :  { %3982 = vmatmul.mubr.msk.f32.vlgmr.msra.gmra.mrb[0].mxu1 %vm151_vm0, %v209_v45 }
 0x1be   :  { %3986 = vmatprep.mubr.msk.f32.mxu1 %vm4717_vm5, %v4716_v46 }
 0x290   :  { %v4967_v47 = vpop.f32.mrb[0].mxu1 }
 0x291   :  { %v4969_v48 = vpop.f32.mrb[1].mxu1 }
 0x292   :  { %464 = vrot.lane.b32.xlu1 %v4969_v48, %s4718_s12  ;;  %296 = vrot.lane.b32.xlu0 %v4969_v48, %s4719_s13 }
 0x296   :  { %462 = vrot.lane.b32.xlu1 %v4969_v48, %s4720_s23  ;;  %634 = vrot.lane.b32.xlu0 %v4969_v48, %s4721_s0 }
 0x29a   :  { %636 = vrot.lane.b32.xlu1 %v4969_v48, %s4722_s21  ;;  %806 = vrot.lane.b32.xlu0 %v4969_v48, %s4723_s2 }
 0x29e   :  { %808 = vrot.lane.b32.xlu1 %v4969_v48, %s4724_s24  ;;  %1146 = vrot.lane.b32.xlu0 %v4967_v47, %s4718_s12 }
 0x2a2   :  { %979 = vrot.lane.b32.xlu1 %v4967_v47, %s4719_s13  ;;  %1317 = vrot.lane.b32.xlu0 %v4967_v47, %s4722_s21 }
 0x2a6   :  { %1144 = vrot.lane.b32.xlu1 %v4967_v47, %s4720_s23  ;;  %1488 = vrot.lane.b32.xlu0 %v4967_v47, %s4724_s24 }
 0x2aa   :  { %1315 = vrot.lane.b32.xlu1 %v4967_v47, %s4721_s0 }
 0x2ae   :  { %1486 = vrot.lane.b32.xlu1 %v4967_v47, %s4723_s2 }
 0x304   :  { %v465_v49 = vpop.permute.xlu1 %464  ;;  %v297_v50 = vpop.permute.xlu0 %296 }
 0x305   :  { %3985 = vmatpush3.xpose.msk.msra.mxu1 %vm298_vm6, %v297_v50  ;;  %3995 = vmatpush3.xpose.msk.msra.mxu0 %vm298_vm6, %v465_v49 }
 0x306   :  { %4004 = vmatprep.subr.mxu0 %v4716_v46  ;;  %3989 = vmatprep.subr.mxu1 %v4716_v46 }
 0x308   :  { %v463_v51 = vpop.permute.xlu1 %462  ;;  %3987 = vmatmul.mubr.msk.f32.vlgmr.msra.gmra.mrb[2].mxu1 %vm298_vm6, %v4969_v48  ;;  %v635_v52 = vpop.permute.xlu0 %634 }
 0x309   :  { %3997 = vmatmul.mubr.msk.f32.vlgmr.msra.gmra.mrb[0].mxu0 %vm298_vm6, %v463_v51  ;;  %3991 = vmatprep.mubr.msk.f32.mxu1 %vm4717_vm5, %v4716_v46 }
 0x30a   :  { %4006 = vmatprep.mubr.msk.f32.mxu0 %vm4717_vm5, %v4716_v46 }
 0x30c   :  { %v637_v53 = vpop.permute.xlu1 %636  ;;  %v807_v54 = vpop.permute.xlu0 %806 }
 0x30d   :  { %4005 = vmatpush3.xpose.msk.msra.mxu0 %vm298_vm6, %v637_v53 }
 0x30e   :  { %4014 = vmatprep.subr.mxu0 %v4716_v46 }
 0x310   :  { %v809_v55 = vpop.permute.xlu1 %808  ;;  %4007 = vmatmul.mubr.msk.f32.vlgmr.msra.gmra.mrb[2].mxu0 %vm298_vm6, %v635_v52  ;;  %v1147_v56 = vpop.permute.xlu0 %1146 }
 0x311   :  { %4015 = vmatpush3.xpose.msk.msra.mxu0 %vm298_vm6, %v809_v55  ;;  %4016 = vmatprep.mubr.msk.f32.mxu0 %vm4717_vm5, %v4716_v46 }
 0x312   :  { %4024 = vmatprep.subr.mxu0 %v4716_v46 }
 0x314   :  { %v980_v57 = vpop.permute.xlu1 %979  ;;  %4017 = vmatmul.mubr.msk.f32.vlgmr.msra.gmra.mrb[4].mxu0 %vm298_vm6, %v807_v54  ;;  %v1318_v59 = vpop.permute.xlu0 %1317 }
 0x315   :  { %4025 = vmatpush3.xpose.msk.msra.mxu0 %vm298_vm6, %v980_v57  ;;  %4026 = vmatprep.mubr.msk.f32.mxu0 %vm4717_vm5, %v4716_v46 }
 0x316   :  { %4034 = vmatprep.subr.mxu0 %v4716_v46 }
 0x318   :  { %v1145_v58 = vpop.permute.xlu1 %1144  ;;  %4027 = vmatmul.mubr.msk.f32.vlgmr.msra.gmra.mrb[6].mxu0 %vm298_vm6, %v4967_v47  ;;  %v1489_v61 = vpop.permute.xlu0 %1488 }
 0x319   :  { %4035 = vmatpush3.xpose.msk.msra.mxu0 %vm298_vm6, %v1147_v56  ;;  %4036 = vmatprep.mubr.msk.f32.mxu0 %vm4717_vm5, %v4716_v46 }
 0x31a   :  { %4044 = vmatprep.subr.mxu0 %v4716_v46 }
 0x31c   :  { %4037 = vmatmul.mubr.msk.f32.vlgmr.msra.gmra.mrb[8].mxu0 %vm298_vm6, %v1145_v58  ;;  %v1316_v60 = vpop.permute.xlu1 %1315 }
 0x31d   :  { %4045 = vmatpush3.xpose.msk.msra.mxu0 %vm298_vm6, %v1318_v59  ;;  %4046 = vmatprep.mubr.msk.f32.mxu0 %vm4717_vm5, %v4716_v46 }
 0x31e   :  { %4054 = vmatprep.subr.mxu0 %v4716_v46 }
 0x320   :  { %4047 = vmatmul.mubr.msk.f32.vlgmr.msra.gmra.mrb[10].mxu0 %vm298_vm6, %v1316_v60  ;;  %v1487_v62 = vpop.permute.xlu1 %1486 }
 0x321   :  { %4055 = vmatpush3.xpose.msk.msra.mxu0 %vm298_vm6, %v1489_v61  ;;  %4056 = vmatprep.mubr.msk.f32.mxu0 %vm4717_vm5, %v4716_v46 }
 0x324   :  { %4057 = vmatmul.mubr.msk.f32.vlgmr.msra.gmra.mrb[12].mxu0 %vm298_vm6, %v1487_v62 }
 0x3db   :  { %v369_v5 = vpop.f32.mrb[2].mxu1 }
 0x3dc   :  { %v373_v6 = vsel %vm5041_vm7, %v369_v5, -1e+09  ;;  %v3988_v7 = vpop.f32.mrb[3].mxu1  ;;  %v536_v8 = vpop.f32.mrb[0].mxu0 }
 0x3dd   :  { %v540_v9 = vsel %vm5041_vm7, %v536_v8, -1e+09  ;;  %v3998_v10 = vpop.f32.mrb[1].mxu0  ;;  %v374_v11 = vsel %vm298_vm6, %v373_v6, -inf }
 0x3de   :  { %375 = vmax.xlane.f32.xlu0 %v374_v11  ;;  %v541_v12 = vsel %vm298_vm6, %v540_v9, -inf }
 0x3df   :  { %542 = vmax.xlane.f32.xlu1 %v541_v12 }
 0x3e3   :  { %v708_v13 = vpop.f32.mrb[2].mxu0 }
 0x3e4   :  { %v5053_v14 = vsel %vm5041_vm7, %v708_v13, -1e+09  ;;  %v4008_v15 = vpop.f32.mrb[3].mxu0 }
 0x3e5   :  { %v713_v16 = vsel %vm298_vm6, %v5053_v14, -inf }
 0x3e6   :  { %714 = vmax.xlane.f32.xlu0 %v713_v16 }
 0x3e7   :  { %v880_v17 = vpop.f32.mrb[4].mxu0 }
 0x3e8   :  { %v884_v18 = vsel %vm5041_vm7, %v880_v17, -1e+09  ;;  %v4018_v19 = vpop.f32.mrb[5].mxu0 }
 0x3e9   :  { %v885_v20 = vsel %vm298_vm6, %v884_v18, -inf }
 0x3ea   :  { %886 = vmax.xlane.f32.xlu0 %v885_v20 }
 0x3eb   :  { %v1051_v21 = vpop.f32.mrb[6].mxu0 }
 0x3ec   :  { %v1055_v22 = vsel %vm5041_vm7, %v1051_v21, -1e+09  ;;  %v4028_v23 = vpop.f32.mrb[7].mxu0 }
 0x3ed   :  { %v1056_v24 = vsel %vm298_vm6, %v1055_v22, -inf }
 0x3ee   :  { %1057 = vmax.xlane.f32.xlu0 %v1056_v24 }
 0x3ef   :  { %v1218_v25 = vpop.f32.mrb[8].mxu0 }
 0x3f0   :  { %v1222_v26 = vsel %vm5041_vm7, %v1218_v25, -1e+09  ;;  %v4038_v27 = vpop.f32.mrb[9].mxu0 }
 0x3f1   :  { %v1223_v28 = vsel %vm298_vm6, %v1222_v26, -inf }
 0x3f2   :  { %1224 = vmax.xlane.f32.xlu1 %v1223_v28 }
 0x3f3   :  { %v1389_v29 = vpop.f32.mrb[10].mxu0 }
 0x3f4   :  { %v1393_v30 = vsel %vm5041_vm7, %v1389_v29, -1e+09  ;;  %v4048_v31 = vpop.f32.mrb[11].mxu0 }
 0x3f5   :  { %v1394_v32 = vsel %vm298_vm6, %v1393_v30, -inf }
 0x3f6   :  { %1395 = vmax.xlane.f32.xlu0 %v1394_v32 }
 0x3f7   :  { %v1560_v33 = vpop.f32.mrb[12].mxu0 }
 0x3f8   :  { %v5071_v34 = vsel %vm5041_vm7, %v1560_v33, -1e+09  ;;  %v4058_v35 = vpop.f32.mrb[13].mxu0 }
 0x3f9   :  { %v1565_v36 = vsel %vm298_vm6, %v5071_v34, -inf }
 0x403   :  { %385 = vrot.lane.b32.xlu1 %v4969_v48, %s4725_s6 }
 0x427   :  { %1566 = vmax.xlane.f32.xlu1 %v1565_v36 }
 0x438   :  { %724 = vrot.lane.b32.xlu1 %v4969_v48, %s4726_s22 }
 0x43c   :  { %896 = vrot.lane.b32.xlu1 %v4969_v48, %s4727_s8 }
 0x440   :  { %1067 = vrot.lane.b32.xlu1 %v4967_v47, %s4725_s6 }
 0x46b   :  { %v376_v37 = vpop.xlane.xlu0 %375 }
 0x46c   :  { %v377_v38 = vsub.f32 %v373_v6, %v376_v37  ;;  %v543_v39 = vpop.xlane.xlu1 %542 }
 0x46d   :  { %v544_v40 = vsub.f32 %v540_v9, %v543_v39 }
 0x46e   :  { %v378_v41 = vmul.f32 1.442695, %v377_v38 }
 0x46f   :  { %v545_v42 = vmul.f32 1.442695, %v544_v40 }
 0x470   :  { %4476 = vpow2.f32 %v378_v41 }
 0x471   :  { %4478 = vpow2.f32 %v545_v42 }
 0x473   :  { %v715_v43 = vpop.xlane.xlu0 %714 }
 0x474   :  { %v716_v58 = vsub.f32 %v5053_v14, %v715_v43 }
 0x476   :  { %v717_v60 = vmul.f32 1.442695, %v716_v58 }
 0x477   :  { %v887_v44 = vpop.xlane.xlu0 %886 }
 0x478   :  { %v888_v45 = vsub.f32 %v884_v18, %v887_v44 }
 0x47a   :  { %v4477_v49 = vpop.eup %4476  ;;  %v889_v50 = vmul.f32 1.442695, %v888_v45 }
 0x47b   :  { %v5081_v51 = vpop.eup %4478  ;;  %v380_v52 = vsel %vm298_vm6, %v4477_v49, 0.0  ;;  %v1058_v59 = vpop.xlane.xlu0 %1057 }
 0x47c   :  { %4480 = vpow2.f32 %v889_v50  ;;  %381 = vadd.xlane.f32.xlu0 %v380_v52  ;;  %v547_v53 = vsel %vm298_vm6, %v5081_v51, 0.0  ;;  %v1059_v61 = vsub.f32 %v1055_v22, %v1058_v59 }
 0x47d   :  { %548 = vadd.xlane.f32.xlu1 %v547_v53  ;;  %4482 = vpow2.f32 %v717_v60  ;;  %v1659_v60 = vld [vmem:[%s5502_s4] sm:$0xff] }
 0x47e   :  { %v1060_v63 = vmul.f32 1.442695, %v1059_v61  ;;  %v1660_v61 = vld [vmem:[%s5502_s4 + $0x8] sm:$0xff] }
 0x47f   :  { %v1225_v54 = vpop.xlane.xlu1 %1224 }
 0x480   :  { %4484 = vpow2.f32 %v1060_v63  ;;  %v1226_v4 = vsub.f32 %v1222_v26, %v1225_v54 }
 0x482   :  { %v1227_v6 = vmul.f32 1.442695, %v1226_v4  ;;  %v1662_v4 = vld [vmem:[%s5502_s4 + $0x18] sm:$0xff] }
 0x483   :  { %v386_v55 = vpop.permute.xlu1 %385  ;;  %v1396_v62 = vpop.xlane.xlu0 %1395 }
 0x484   :  { %3990 = vmatpush3.msra.mxu1 %v386_v55  ;;  %v1397_v2 = vsub.f32 %v1393_v30, %v1396_v62  ;;  %v4261_v62 = vpack.c.bf16 %v1660_v61, %v1659_v60 }
 0x485   :  { %3999 = vmatprep.subr.mxu1 %v4716_v46 }
 0x486   :  { %v5087_v56 = vpop.eup %4480  ;;  %v1398_v5 = vmul.f32 1.442695, %v1397_v2  ;;  %v1661_v2 = vld [vmem:[%s5502_s4 + $0x10] sm:$0xff]  ;;  %4262 = vmatprep.subr.bf16.mxu0 %v4261_v62 }
 0x487   :  { %v891_v57 = vsel %vm298_vm6, %v5087_v56, 0.0  ;;  %v4483_v7 = vpop.eup %4482  ;;  %4264 = vmatpush3.bf16.msra.mxu0 %v4261_v62 }
 0x488   :  { %892 = vadd.xlane.f32.xlu1 %v891_v57  ;;  %4486 = vpow2.f32 %v1398_v5 }
 0x489   :  { %4488 = vpow2.f32 %v1227_v6  ;;  %v4265_v6 = vpack.c.bf16 %v1662_v4, %v1661_v2 }
 0x48a   :  { %v4485_v8 = vpop.eup %4484 }
 0x48b   :  { %v1062_v10 = vsel %vm298_vm6, %v4485_v8, 0.0  ;;  %4266 = vmatprep.subr.bf16.mxu0 %v4265_v6 }
 0x48c   :  { %4268 = vmatpush3.bf16.msra.mxu0 %v4265_v6  ;;  %v3795_v6 = vld [vmem:[%s5512_s14] ss:$0 sm:$0xff] }
 0x492   :  { %552 = vrot.lane.b32.xlu0 %v4969_v48, %s4728_s26  ;;  %v719_v48 = vsel %vm298_vm6, %v4483_v7, 0.0  ;;  %v5096_v11 = vpop.eup %4486 }
 0x493   :  { %v1400_v14 = vsel %vm298_vm6, %v5096_v11, 0.0  ;;  %v4489_v15 = vpop.eup %4488 }
 0x494   :  { %v1229_v16 = vsel %vm298_vm6, %v4489_v15, 0.0 }
 0x499   :  { %1234 = vrot.lane.b32.xlu1 %v4967_v47, %s4728_s26 }
 0x4b1   :  { %720 = vadd.xlane.f32.xlu0 %v719_v48 }
 0x4b4   :  { %v1567_v9 = vpop.xlane.xlu1 %1566 }
 0x4b5   :  { %v1568_v12 = vsub.f32 %v5071_v34, %v1567_v9  ;;  %1063 = vadd.xlane.f32.xlu0 %v1062_v10 }
 0x4b7   :  { %v1569_v13 = vmul.f32 1.442695, %v1568_v12 }
 0x4b8   :  { %v725_v19 = vpop.permute.xlu1 %724 }
 0x4b9   :  { %4490 = vpow2.f32 %v1569_v13  ;;  %1401 = vadd.xlane.f32.xlu0 %v1400_v14 }
 0x4bc   :  { %v897_v20 = vpop.permute.xlu1 %896 }
 0x4bd   :  { %1230 = vadd.xlane.f32.xlu1 %v1229_v16 }
 0x4c0   :  { %v1068_v21 = vpop.permute.xlu1 %1067 }
 0x4c3   :  { %v5102_v17 = vpop.eup %4490 }
 0x4c4   :  { %v1571_v18 = vsel %vm298_vm6, %v5102_v17, 0.0 }
 0x4c5   :  { %1572 = vadd.xlane.f32.xlu0 %v1571_v18 }
 0x4ce   :  { %1576 = vrot.lane.b32.xlu1 %v4967_v47, %s4727_s8 }
 0x4db   :  { %1405 = vrot.lane.b32.xlu0 %v4967_v47, %s4726_s22  ;;  %s5528_s22 = sld [smem:[#allocation22_spill]] }
 0x509   :  { %v382_v22 = vpop.xlane.xlu0 %381 }
 0x50a   :  { %4492 = vrcp.f32 %v382_v22  ;;  %v549_v23 = vpop.xlane.xlu1 %548 }
 0x50b   :  { %4494 = vrcp.f32 %v549_v23 }
 0x50d   :  { %v553_v27 = vpop.permute.xlu0 %552 }
 0x514   :  { %v4493_v24 = vpop.eup %4492 }
 0x515   :  { %v384_v25 = vmul.f32 %v4493_v24, %v4477_v49  ;;  %v4495_v26 = vpop.eup %4494  ;;  %v893_v47 = vpop.xlane.xlu1 %892 }
 0x516   :  { %v551_v28 = vmul.f32 %v4495_v26, %v5081_v51 }
 0x517   :  { %3992 = vmatmul.mubr.msk.f32.vlgmr.msra.gmra.mrb[4].mxu1 %vm298_vm6, %v384_v25 }
 0x518   :  { %4000 = vmatpush3.msra.mxu1 %v553_v27  ;;  %4001 = vmatprep.mubr.msk.f32.mxu1 %vm4717_vm5, %v4716_v46 }
 0x519   :  { %4009 = vmatprep.subr.mxu1 %v4716_v46  ;;  %v1235_v31 = vpop.permute.xlu1 %1234 }
 0x51b   :  { %4002 = vmatmul.mubr.msk.f32.vlgmr.msra.gmra.mrb[6].mxu1 %vm298_vm6, %v551_v28 }
 0x51c   :  { %4010 = vmatpush3.msra.mxu1 %v725_v19  ;;  %4011 = vmatprep.mubr.msk.f32.mxu1 %vm4717_vm5, %v4716_v46 }
 0x51d   :  { %4019 = vmatprep.subr.mxu1 %v4716_v46 }
 0x53e   :  { %v721_v29 = vpop.xlane.xlu0 %720 }
 0x53f   :  { %4496 = vrcp.f32 %v721_v29 }
 0x540   :  { %4498 = vrcp.f32 %v893_v47 }
 0x542   :  { %v1064_v30 = vpop.xlane.xlu0 %1063 }
 0x543   :  { %4500 = vrcp.f32 %v1064_v30 }
 0x546   :  { %v1402_v34 = vpop.xlane.xlu0 %1401 }
 0x549   :  { %v4497_v32 = vpop.eup %4496 }
 0x54a   :  { %v723_v33 = vmul.f32 %v4497_v32, %v4483_v7  ;;  %v1231_v35 = vpop.xlane.xlu1 %1230  ;;  %v4499_v36 = vpop.eup %4498 }
 0x54b   :  { %4502 = vrcp.f32 %v1231_v35  ;;  %v895_v37 = vmul.f32 %v4499_v36, %v5087_v56  ;;  %v1891_v36 = vld [vmem:[#allocation10 + $0x10] sm:$0xff] }
 0x54c   :  { %4012 = vmatmul.mubr.msk.f32.vlgmr.msra.gmra.mrb[8].mxu1 %vm298_vm6, %v723_v33  ;;  %4504 = vrcp.f32 %v1402_v34  ;;  %v1889_v33 = vld [vmem:[#allocation10] sm:$0xff]  ;;  %v1890_v34 = vld [vmem:[#allocation10 + $0x8] sm:$0xff] }
 0x54d   :  { %4020 = vmatpush3.msra.mxu1 %v897_v20  ;;  %4021 = vmatprep.mubr.msk.f32.mxu1 %vm4717_vm5, %v4716_v46  ;;  %v4501_v38 = vpop.eup %4500  ;;  %v4277_v35 = vpack.c.bf16 %v1890_v34, %v1889_v33 }
 0x54e   :  { %4029 = vmatprep.subr.mxu1 %v4716_v46  ;;  %v1066_v39 = vmul.f32 %v4501_v38, %v4485_v8  ;;  %v1577_v49 = vpop.permute.xlu1 %1576 }
 0x54f   :  { %4278 = vmatprep.subr.bf16.mxu0 %v4277_v35 }
 0x550   :  { %4022 = vmatmul.mubr.msk.f32.vlgmr.msra.gmra.mrb[10].mxu1 %vm298_vm6, %v895_v37  ;;  %v1892_v37 = vld [vmem:[#allocation10 + $0x18] sm:$0xff] }
 0x551   :  { %4030 = vmatpush3.msra.mxu1 %v1068_v21  ;;  %4031 = vmatprep.mubr.msk.f32.mxu1 %vm4717_vm5, %v4716_v46  ;;  %v4281_v38 = vpack.c.bf16 %v1892_v37, %v1891_v36  ;;  %v143_v37 = vstv %s142_s25  ;;  %s4732_s25 = smov [#allocation14]  }
 0x552   :  { %v1573_v40 = vpop.xlane.xlu0 %1572  ;;  %4039 = vmatprep.subr.mxu1 %v4716_v46  ;;  %vm5269_vm1 = vcmp.lt.s32.totalorder %v5038_v3, %v143_v37 }
 0x553   :  { %4506 = vrcp.f32 %v1573_v40  ;;  %v133_v40 = vld [vmem:[%s5528_s22 + $0x8] sm:$0xff] }
 0x554   :  { %4032 = vmatmul.mubr.msk.f32.vlgmr.msra.gmra.mrb[12].mxu1 %vm298_vm6, %v1066_v39  ;;  %v132_v39 = vld [vmem:[%s5528_s22] sm:$0xff] }
 0x555   :  { %v4503_v41 = vpop.eup %4502  ;;  %4040 = vmatpush3.msra.mxu1 %v1235_v31  ;;  %4041 = vmatprep.mubr.msk.f32.mxu1 %vm4717_vm5, %v4716_v46 }
 0x556   :  { %v1233_v42 = vmul.f32 %v4503_v41, %v4489_v15  ;;  %v1406_v43 = vpop.permute.xlu0 %1405  ;;  %4049 = vmatprep.subr.mxu1 %v4716_v46  ;;  %v4505_v44 = vpop.eup %4504  ;;  %v1804_v41 = vld [vmem:[#allocation8] sm:$0xff] }
 0x557   :  { %v1404_v45 = vmul.f32 %v4505_v44, %v5096_v11  ;;  %v1807_v44 = vld [vmem:[#allocation8 + $0x18] sm:$0xff] }
 0x558   :  { %4042 = vmatmul.mubr.msk.f32.vlgmr.msra.gmra.mrb[14].mxu1 %vm298_vm6, %v1233_v42  ;;  %v1805_v42 = vld [vmem:[#allocation8 + $0x8] sm:$0xff] }
 0x559   :  { %4050 = vmatpush3.msra.mxu1 %v1406_v43  ;;  %4051 = vmatprep.mubr.msk.f32.mxu1 %vm4717_vm5, %v4716_v46  ;;  %v1806_v43 = vld [vmem:[#allocation8 + $0x10] sm:$0xff] }
 0x55a   :  { %4059 = vmatprep.subr.mxu1 %v4716_v46 }
 0x55c   :  { %4052 = vmatmul.mubr.msk.f32.vlgmr.msra.gmra.mrb[16].mxu1 %vm298_vm6, %v1404_v45  ;;  %v4269_v45 = vpack.c.bf16 %v1805_v42, %v1804_v41 }
 0x55d   :  { %v4507_v50 = vpop.eup %4506  ;;  %4060 = vmatpush3.msra.mxu1 %v1577_v49  ;;  %4061 = vmatprep.mubr.msk.f32.mxu1 %vm4717_vm5, %v4716_v46  ;;  %v4273_v49 = vpack.c.bf16 %v1807_v44, %v1806_v43 }
 0x55e   :  { %v1575_v51 = vmul.f32 %v4507_v50, %v5102_v17  ;;  %4270 = vmatprep.subr.bf16.mxu1 %v4269_v45  ;;  %v4731_v50 = vmov 0.0|0.0  }
 0x560   :  { %4062 = vmatmul.mubr.msk.f32.vlgmr.msra.gmra.mrb[18].mxu1 %vm298_vm6, %v1575_v51 }
 0x561   :  { %4272 = vmatpush3.bf16.msra.mxu1 %v4269_v45 }
 0x562   :  { %4274 = vmatprep.subr.bf16.mxu1 %v4273_v49 }
 0x565   :  { %4276 = vmatpush3.bf16.msra.mxu1 %v4273_v49 }
 0x566   :  { %4285 = vmatprep.subr.bf16.mxu1 %v4731_v50 }
 0x5ea   :  { %v457_v52 = vpop.f32.mrb[4].mxu1 }
 0x5eb   :  { %461 = vst.msk [vmem:[#allocation2] sm:$0xff] %vm298_vm6, %v457_v52  ;;  %v3993_v53 = vpop.f32.mrb[5].mxu1 }
 0x5ee   :  { %v624_v54 = vpop.f32.mrb[6].mxu1 }
 0x5ef   :  { %629 = vrot.lane.b32.xlu0 %v624_v54, %s4712_s20  ;;  %v4003_v55 = vpop.f32.mrb[7].mxu1 }
 0x61f   :  { %v796_v56 = vpop.f32.mrb[8].mxu1 }
 0x620   :  { %801 = vrot.lane.b32.xlu1 %v796_v56, %s4729_s27  ;;  %v4013_v57 = vpop.f32.mrb[9].mxu1 }
 0x623   :  { %v968_v58 = vpop.f32.mrb[10].mxu1 }
 0x624   :  { %973 = vrot.lane.b32.xlu1 %v968_v58, %s4730_s28  ;;  %v4023_v59 = vpop.f32.mrb[11].mxu1 }
 0x627   :  { %v1139_v63 = vpop.f32.mrb[12].mxu1 }
 0x628   :  { %1143 = vst.msk [vmem:[#allocation2 + $0x8] sm:$0xff] %vm298_vm6, %v1139_v63  ;;  %v4033_v5 = vpop.f32.mrb[13].mxu1 }
 0x62b   :  { %v1306_v7 = vpop.f32.mrb[14].mxu1 }
 0x62c   :  { %1311 = vrot.lane.b32.xlu0 %v1306_v7, %s4712_s20  ;;  %v4043_v48 = vpop.f32.mrb[15].mxu1 }
 0x62f   :  { %v1477_v8 = vpop.f32.mrb[16].mxu1 }
 0x630   :  { %1482 = vrot.lane.b32.xlu0 %v1477_v8, %s4729_s27  ;;  %v4053_v9 = vpop.f32.mrb[17].mxu1  ;;  %v3796_v8 = vld [vmem:[%s5513_s15] ss:$0 sm:$0xff] }
 0x633   :  { %v1648_v10 = vpop.f32.mrb[18].mxu1 }
 0x634   :  { %1653 = vrot.lane.b32.xlu1 %v1648_v10, %s4730_s28  ;;  %v4063_v11 = vpop.f32.mrb[19].mxu1 }
 0x661   :  { %v630_v12 = vpop.permute.xlu0 %629 }
 0x662   :  { %633 = vst.msk [vmem:[#allocation2] sm:$0xff] %vm632_vm8, %v630_v12 }
 0x692   :  { %v802_v13 = vpop.permute.xlu1 %801 }
 0x693   :  { %805 = vst.msk [vmem:[#allocation2] sm:$0xff] %vm804_vm9, %v802_v13 }
 0x696   :  { %v974_v14 = vpop.permute.xlu1 %973 }
 0x697   :  { %977 = vst.msk [vmem:[#allocation2] sm:$0xff] %vm976_vm10, %v974_v14 }
 0x69e   :  { %v1312_v15 = vpop.permute.xlu0 %1311  ;;  %v1657_v16 = vld [vmem:[#allocation2] sm:$0xff] }
 0x69f   :  { %1314 = vst.msk [vmem:[#allocation2 + $0x8] sm:$0xff] %vm632_vm8, %v1312_v15  ;;  %4072 = vmatprep.mubr.msk.f32.mxu0 %vm151_vm0, %v1657_v16 }
 0x6a2   :  { %v1483_v17 = vpop.permute.xlu0 %1482 }
 0x6a3   :  { %1485 = vst.msk [vmem:[#allocation2 + $0x8] sm:$0xff] %vm804_vm9, %v1483_v17 }
 0x6a6   :  { %v1654_v18 = vpop.permute.xlu1 %1653 }
 0x6a7   :  { %1656 = vst.msk [vmem:[#allocation2 + $0x8] sm:$0xff] %vm976_vm10, %v1654_v18 }
 0x6ae   :  { %v1658_v19 = vld [vmem:[#allocation2 + $0x8] sm:$0xff] }
 0x6af   :  { %4073 = vmatmul.mubr.msk.f32.vlgmr.msra.gmra.mrb[14].mxu0 %vm151_vm0, %v1658_v19 }
 0x6b0   :  { %4280 = vmatpush3.bf16.msra.mxu0 %v4277_v35  ;;  %4094 = vmatprep.mubr.msk.f32.mxu0 %vm151_vm0, %v132_v39 }
 0x6b1   :  { %4282 = vmatprep.subr.bf16.mxu0 %v4281_v38 }
 0x6b4   :  { %4284 = vmatpush3.bf16.msra.mxu0 %v4281_v38 }
 0x6b5   :  { %4292 = vmatprep.subr.bf16.mxu0 %v4731_v50 }
 0x6b7   :  { %4095 = vmatmul.mubr.msk.f32.vlgmr.msra.gmra.mrb[16].mxu0 %vm151_vm0, %v133_v40 }
 0x782   :  { %v4074_v20 = vpop.f32.mrb[14].mxu0 }
 0x783   :  { %v5171_v21 = vadd.f32 %v4074_v20, %v4931_v1  ;;  %v1735_v22 = vpop.f32.mrb[15].mxu0  ;;  %v134_v20 = vld [vmem:[%s5528_s22 + $0x10] sm:$0xff] }
 0x784   :  { %v5174_v23 = vadd.f32 %v1735_v22, %v4929_v0  ;;  %v135_v22 = vld [vmem:[%s5528_s22 + $0x18] sm:$0xff]  ;;  %4097 = vmatprep.mubr.msk.f32.mxu0 %vm151_vm0, %v134_v20 }
 0x785   :  { %v1751_v24 = vsel %vm151_vm0, %v5171_v21, 0.0  ;;  %4098 = vmatmul.mubr.msk.f32.gmra.mrb[18].mxu0 %vm151_vm0, %v135_v22 }
 0x786   :  { %1752 = vadd.xlane.f32.xlu1 %v1751_v24  ;;  %v1748_v25 = vsel %vm151_vm0, %v5174_v23, 0.0  ;;  %4118 = vmatprep.mubr.msk.f32.mxu0 %vm4717_vm5, %v4716_v46 }
 0x787   :  { %1749 = vadd.xlane.f32.xlu0 %v1748_v25 }
 0x78a   :  { %v4096_v15 = vpop.f32.mrb[16].mxu0 }
 0x78b   :  { %v1971_v16 = vpop.f32.mrb[17].mxu0 }
 0x78c   :  { %v5215_v18 = vpack.i.bf16 %v4096_v15, %v1971_v16  ;;  %v4286_v19 = vpack.c.bf16 %v4096_v15, %v1971_v16 }
 0x813   :  { %v1753_v26 = vpop.xlane.xlu1 %1752 }
 0x814   :  { %v1755_v27 = vmul.f32 0.03125, %v1753_v26  ;;  %v1750_v28 = vpop.xlane.xlu0 %1749 }
 0x815   :  { %v1754_v47 = vmul.f32 0.03125, %v1750_v28 }
 0x816   :  { %v5181_v29 = vsub.f32 %v5171_v21, %v1755_v27 }
 0x817   :  { %v1756_v1 = vsub.f32 %v5174_v23, %v1754_v47 }
 0x818   :  { %v1759_v31 = vmul.f32 %v5181_v29, %v5181_v29  ;;  %v1775_v10 = vmul.f32 %v3795_v6, %v5181_v29 }
 0x819   :  { %v1758_v30 = vmul.f32 %v1756_v1, %v1756_v1  ;;  %v1774_v7 = vmul.f32 %v3795_v6, %v1756_v1 }
 0x81a   :  { %v1763_v32 = vsel %vm151_vm0, %v1759_v31, 0.0 }
 0x81b   :  { %v1760_v0 = vsel %vm151_vm0, %v1758_v30, 0.0 }
 0x81c   :  { %1761 = vadd.xlane.f32.xlu0 %v1760_v0 }
 0x820   :  { %1764 = vadd.xlane.f32.xlu0 %v1763_v32 }
 0x836   :  { %4399 = vrot.lane.b32.xlu0 %v5215_v18, %s4720_s23 }
 0x858   :  { %v5249_v29 = vpop.f32.mrb[18].mxu0 }
 0x859   :  { %v5251_v1 = vpop.f32.mrb[19].mxu0 }
 0x85a   :  { %v5264_v35 = vpack.i.bf16 %v5249_v29, %v5251_v1  ;;  %v4314_v36 = vpack.c.bf16 %v5249_v29, %v5251_v1 }
 0x8a9   :  { %v1762_v51 = vpop.xlane.xlu0 %1761 }
 0x8aa   :  { %v1766_v52 = vmul.f32 0.032258064, %v1762_v51 }
 0x8ac   :  { %4508 = vrsqrt.f32 %v1766_v52  ;;  %vm1778_vm11 = vcmp.eq.f32.partialorder %v1766_v52, inf  ;;  %v1781_v57 = vand.u32 2147483648, %v1766_v52  ;;  %vm1780_vm12 = vcmp.eq.f32.partialorder %v1766_v52, 0.0 }
 0x8ad   :  { %v1765_v53 = vpop.xlane.xlu0 %1764 }
 0x8ae   :  { %v1767_v54 = vmul.f32 0.032258064, %v1765_v53 }
 0x8b0   :  { %4510 = vrsqrt.f32 %v1767_v54  ;;  %vm1785_vm13 = vcmp.eq.f32.partialorder %v1767_v54, inf  ;;  %v1788_v63 = vand.u32 2147483648, %v1767_v54  ;;  %vm1787_vm14 = vcmp.eq.f32.partialorder %v1767_v54, 0.0 }
 0x8b1   :  { %v4400_v24 = vpop.permute.xlu0 %4399 }
 0x8b2   :  { %v4402_v25 = vunpack.i.h.bf16 %v4400_v24  ;;  %v4401_v26 = vunpack.i.l.bf16 %v4400_v24 }
 0x8b4   :  { %v4293_v27 = vpack.c.bf16 %v4402_v25, %v4401_v26 }
 0x8b6   :  { %v4509_v55 = vpop.eup %4508  ;;  %4295 = vmatpush3.bf16.xpose.msk.msra.mxu0 %vm5211_vm15, %v4293_v27 }
 0x8b7   :  { %v1777_v56 = vmul.f32 %v4509_v55, %v1766_v52  ;;  %4299 = vmatprep.subr.bf16.mxu0 %v4731_v50 }
 0x8b9   :  { %v1779_v58 = vsel %vm1778_vm11, %v1766_v52, %v1777_v56 }
 0x8ba   :  { %v4511_v59 = vpop.eup %4510  ;;  %v1782_v60 = vsel %vm1780_vm12, %v1781_v57, %v1779_v58 }
 0x8bb   :  { %v1784_v61 = vmul.f32 %v4511_v59, %v1767_v54  ;;  %v1790_v62 = vadd.f32 1e-06, %v1782_v60 }
 0x8bd   :  { %v1786_v2 = vsel %vm1785_vm13, %v1767_v54, %v1784_v61  ;;  %4512 = vrcp.f32 %v1790_v62 }
 0x8be   :  { %v1789_v4 = vsel %vm1787_vm14, %v1788_v63, %v1786_v2 }
 0x8bf   :  { %v1791_v5 = vadd.f32 1e-06, %v1789_v4 }
 0x8c1   :  { %4514 = vrcp.f32 %v1791_v5 }
 0x8c7   :  { %v4513_v48 = vpop.eup %4512 }
 0x8c8   :  { %v1793_v9 = vmul.f32 %v4513_v48, %v1774_v7 }
 0x8ca   :  { %v1802_v11 = vadd.f32 %v3796_v8, %v1793_v9 }
 0x8cb   :  { %v4515_v12 = vpop.eup %4514 }
 0x8cc   :  { %v1795_v13 = vmul.f32 %v4515_v12, %v1775_v10  ;;  %4083 = vmatprep.mubr.msk.f32.mxu1 %vm151_vm0, %v1802_v11 }
 0x8ce   :  { %v1803_v14 = vadd.f32 %v3796_v8, %v1795_v13 }
 0x8d0   :  { %4084 = vmatmul.mubr.msk.f32.vlgmr.msra.gmra.mrb[20].mxu1 %vm151_vm0, %v1803_v14 }
 0x8d1   :  { %4104 = vmatprep.mubr.msk.f32.mxu1 %vm4717_vm5, %v4716_v46  ;;  %4288 = vmatpush3.bf16.xpose.msk.msra.mxu1 %vm5211_vm15, %v4286_v19 }
 0x8d2   :  { %4289 = vmatprep.subr.bf16.mxu1 %v4731_v50 }
 0x9a3   :  { %v5235_v28 = vpop.f32.mrb[20].mxu1 }
 0x9a4   :  { %v5237_v47 = vpop.f32.mrb[21].mxu1 }
 0x9a5   :  { %2162 = vrot.lane.b32.xlu1 %v5237_v47, %s4720_s23  ;;  %4105 = vmatmul.mubr.msk.f32.vlgmr.msra.gmra.mrb[22].mxu1 %vm298_vm6, %v5237_v47 }
 0x9a6   :  { %4111 = vmatprep.mubr.msk.f32.mxu1 %vm4717_vm5, %v4716_v46 }
 0x9a9   :  { %4404 = vrot.lane.b32.xlu1 %v5215_v18, %s4721_s0 }
 0x9ad   :  { %2340 = vrot.lane.b32.xlu1 %v5237_v47, %s4721_s0 }
 0xa17   :  { %v2163_v30 = vpop.permute.xlu1 %2162 }
 0xa18   :  { %4119 = vmatmul.mubr.msk.f32.vlgmr.msra.gmra.mrb[20].mxu0 %vm298_vm6, %v2163_v30 }
 0xa19   :  { %4132 = vmatprep.mubr.msk.f32.mxu0 %vm4717_vm5, %v4716_v46 }
 0xa1b   :  { %v4405_v0 = vpop.permute.xlu1 %4404 }
 0xa1c   :  { %v4407_v31 = vunpack.i.h.bf16 %v4405_v0  ;;  %v4406_v32 = vunpack.i.l.bf16 %v4405_v0 }
 0xa1e   :  { %v4300_v33 = vpack.c.bf16 %v4407_v31, %v4406_v32 }
 0xa1f   :  { %v2341_v34 = vpop.permute.xlu1 %2340 }
 0xa20   :  { %4302 = vmatpush3.bf16.xpose.msk.msra.mxu0 %vm5211_vm15, %v4300_v33 }
 0xa21   :  { %4310 = vmatprep.subr.bf16.mxu0 %v4731_v50 }
 0xa27   :  { %4133 = vmatmul.mubr.msk.f32.vlgmr.msra.gmra.mrb[22].mxu0 %vm298_vm6, %v2341_v34 }
 0xa28   :  { %4153 = vmatprep.mubr.msk.f32.mxu0 %vm4717_vm5, %v4716_v46 }
 0xa78   :  { %v2065_v39 = vpop.f32.mrb[22].mxu1 }
 0xa79   :  { %v2069_v40 = vsel %vm5269_vm1, %v2065_v39, -1e+09  ;;  %v4106_v41 = vpop.f32.mrb[23].mxu1 }
 0xa7a   :  { %v2071_v42 = vsel %vm2070_vm2, %v2069_v40, -inf }
 0xa7b   :  { %2072 = vmax.xlane.f32.xlu0 %v2071_v42 }
 0xaeb   :  { %v2240_v43 = vpop.f32.mrb[20].mxu0 }
 0xaec   :  { %v2244_v44 = vsel %vm5269_vm1, %v2240_v43, -1e+09  ;;  %v4120_v45 = vpop.f32.mrb[21].mxu0 }
 0xaed   :  { %v2245_v49 = vsel %vm2070_vm2, %v2244_v44, -inf }
 0xaee   :  { %2246 = vmax.xlane.f32.xlu1 %v2245_v49 }
 0xafa   :  { %v2418_v51 = vpop.f32.mrb[22].mxu0 }
 0xafb   :  { %v2422_v52 = vsel %vm5269_vm1, %v2418_v51, -1e+09  ;;  %v4134_v53 = vpop.f32.mrb[23].mxu0 }
 0xafc   :  { %v2423_v54 = vsel %vm2070_vm2, %v2422_v52, -inf }
 0xafd   :  { %2424 = vmax.xlane.f32.xlu0 %v2423_v54 }
 0xaff   :  { %4414 = vrot.lane.b32.xlu1 %v5215_v18, %s4718_s12 }
 0xb03   :  { %4419 = vrot.lane.b32.xlu1 %v5215_v18, %s4722_s21 }
 0xb08   :  { %v2073_v55 = vpop.xlane.xlu0 %2072 }
 0xb09   :  { %v2074_v56 = vsub.f32 %v2069_v40, %v2073_v55 }
 0xb0b   :  { %v2075_v57 = vmul.f32 1.442695, %v2074_v56 }
 0xb0d   :  { %4516 = vpow2.f32 %v2075_v57 }
 0xb17   :  { %v4517_v58 = vpop.eup %4516 }
 0xb18   :  { %v2077_v59 = vsel %vm2070_vm2, %v4517_v58, 0.0 }
 0xb19   :  { %2078 = vadd.xlane.f32.xlu0 %v2077_v59 }
 0xb7b   :  { %v2247_v60 = vpop.xlane.xlu1 %2246 }
 0xb7c   :  { %v2248_v61 = vsub.f32 %v2244_v44, %v2247_v60 }
 0xb7e   :  { %v2249_v62 = vmul.f32 1.442695, %v2248_v61 }
 0xb7f   :  { %v4415_v10 = vpop.permute.xlu1 %4414 }
 0xb80   :  { %4518 = vpow2.f32 %v2249_v62  ;;  %v4417_v15 = vunpack.i.h.bf16 %v4415_v10  ;;  %v4416_v16 = vunpack.i.l.bf16 %v4415_v10 }
 0xb82   :  { %v4297_v25 = vpack.c.bf16 %v4417_v15, %v4416_v16 }
 0xb83   :  { %v4420_v20 = vpop.permute.xlu1 %4419 }
 0xb84   :  { %v4422_v26 = vunpack.i.h.bf16 %v4420_v20  ;;  %v4421_v27 = vunpack.i.l.bf16 %v4420_v20 }
 0xb86   :  { %v4304_v30 = vpack.c.bf16 %v4422_v26, %v4421_v27 }
 0xb8a   :  { %v4519_v63 = vpop.eup %4518  ;;  %v2425_v2 = vpop.xlane.xlu0 %2424 }
 0xb8b   :  { %v2426_v4 = vsub.f32 %v2422_v52, %v2425_v2  ;;  %v2251_v5 = vsel %vm2070_vm2, %v4519_v63, 0.0 }
 0xb8c   :  { %2252 = vadd.xlane.f32.xlu0 %v2251_v5 }
 0xb8d   :  { %v2427_v6 = vmul.f32 1.442695, %v2426_v4 }
 0xb8f   :  { %4520 = vpow2.f32 %v2427_v6 }
 0xb99   :  { %v4521_v7 = vpop.eup %4520 }
 0xb9a   :  { %v2429_v48 = vsel %vm2070_vm2, %v4521_v7, 0.0 }
 0xb9b   :  { %2430 = vadd.xlane.f32.xlu1 %v2429_v48 }
 0xba2   :  { %4409 = vrot.lane.b32.xlu0 %v5215_v18, %s4719_s13 }
 0xba6   :  { %2518 = vrot.lane.b32.xlu0 %v5237_v47, %s4723_s2  ;;  %v2079_v8 = vpop.xlane.xlu0 %2078 }
 0xba7   :  { %4522 = vrcp.f32 %v2079_v8 }
 0xbac   :  { %4424 = vrot.lane.b32.xlu1 %v5215_v18, %s4723_s2 }
 0xbb1   :  { %v4523_v14 = vpop.eup %4522 }
 0xbb2   :  { %v2081_v22 = vmul.f32 %v4523_v14, %v4517_v58 }
 0xc19   :  { %v2253_v9 = vpop.xlane.xlu0 %2252 }
 0xc1a   :  { %4524 = vrcp.f32 %v2253_v9 }
 0xc1d   :  { %v4410_v11 = vpop.permute.xlu0 %4409 }
 0xc1e   :  { %v4412_v12 = vunpack.i.h.bf16 %v4410_v11  ;;  %v4411_v13 = vunpack.i.l.bf16 %v4410_v11 }
 0xc20   :  { %v4290_v19 = vpack.c.bf16 %v4412_v12, %v4411_v13 }
 0xc21   :  { %v2519_v40 = vpop.permute.xlu0 %2518 }
 0xc22   :  { %4291 = vmatpush3.bf16.msra.mxu1 %v4290_v19 }
 0xc23   :  { %4296 = vmatprep.subr.bf16.mxu1 %v4731_v50 }
 0xc24   :  { %v4525_v24 = vpop.eup %4524 }
 0xc25   :  { %4112 = vmatmul.mubr.msk.f32.vlgmr.msra.gmra.mrb[24].mxu1 %vm2070_vm2, %v2081_v22  ;;  %v2255_v47 = vmul.f32 %v4525_v24, %v4519_v63 }
 0xc26   :  { %4298 = vmatpush3.bf16.msra.mxu1 %v4297_v25  ;;  %4125 = vmatprep.mubr.msk.f32.mxu1 %vm4717_vm5, %v4716_v46 }
 0xc27   :  { %4303 = vmatprep.subr.bf16.mxu1 %v4731_v50 }
 0xc28   :  { %v2431_v0 = vpop.xlane.xlu1 %2430 }
 0xc29   :  { %4526 = vrcp.f32 %v2431_v0  ;;  %4126 = vmatmul.mubr.msk.f32.vlgmr.msra.gmra.mrb[26].mxu1 %vm2070_vm2, %v2255_v47 }
 0xc2a   :  { %4305 = vmatpush3.bf16.msra.mxu1 %v4304_v30  ;;  %4139 = vmatprep.mubr.msk.f32.mxu1 %vm4717_vm5, %v4716_v46 }
 0xc2b   :  { %4306 = vmatprep.subr.bf16.mxu1 %v4731_v50 }
 0xc2c   :  { %v4425_v31 = vpop.permute.xlu1 %4424 }
 0xc2d   :  { %v4427_v32 = vunpack.i.h.bf16 %v4425_v31  ;;  %v4426_v33 = vunpack.i.l.bf16 %v4425_v31 }
 0xc2f   :  { %v4307_v39 = vpack.c.bf16 %v4427_v32, %v4426_v33 }
 0xc33   :  { %v4527_v34 = vpop.eup %4526 }
 0xc34   :  { %v2433_v37 = vmul.f32 %v4527_v34, %v4521_v7 }
 0xc36   :  { %4140 = vmatmul.mubr.msk.f32.vlgmr.msra.gmra.mrb[28].mxu1 %vm2070_vm2, %v2433_v37 }
 0xc37   :  { %4309 = vmatpush3.bf16.xpose.msk.msra.mxu1 %vm5211_vm15, %v4307_v39  ;;  %4146 = vmatprep.mubr.msk.f32.mxu1 %vm4717_vm5, %v4716_v46 }
 0xc38   :  { %4317 = vmatprep.subr.bf16.mxu1 %v4731_v50 }
 0xc3e   :  { %4147 = vmatmul.mubr.msk.f32.vlgmr.msra.gmra.mrb[30].mxu1 %vm298_vm6, %v2519_v40 }
 0xc3f   :  { %4167 = vmatprep.mubr.msk.f32.mxu1 %vm4717_vm5, %v4716_v46 }
 0xcf8   :  { %v2157_v41 = vpop.f32.mrb[24].mxu1 }
 0xcf9   :  { %2161 = vst.msk [vmem:[#allocation2] sm:$0xff] %vm298_vm6, %v2157_v41  ;;  %v4113_v42 = vpop.f32.mrb[25].mxu1 }
 0xcfc   :  { %v5314_v43 = vpop.f32.mrb[26].mxu1 }
 0xcfd   :  { %v4127_v44 = vpop.f32.mrb[27].mxu1 }
 0xd09   :  { %v5316_v45 = vpop.f32.mrb[28].mxu1 }
 0xd0a   :  { %v4141_v49 = vpop.f32.mrb[29].mxu1 }
 0xd11   :  { %v2596_v51 = vpop.f32.mrb[30].mxu1 }
 0xd12   :  { %v2600_v52 = vsel %vm5269_vm1, %v2596_v51, -1e+09  ;;  %v4148_v53 = vpop.f32.mrb[31].mxu1 }
 0xd13   :  { %v2601_v54 = vsel %vm2070_vm2, %v2600_v52, -inf }
 0xd14   :  { %2602 = vmax.xlane.f32.xlu1 %v2601_v54 }
 0xda1   :  { %v2603_v55 = vpop.xlane.xlu1 %2602 }
 0xda2   :  { %v2604_v56 = vsub.f32 %v2600_v52, %v2603_v55 }
 0xda4   :  { %v2605_v57 = vmul.f32 1.442695, %v2604_v56 }
 0xda6   :  { %4528 = vpow2.f32 %v2605_v57 }
 0xdb0   :  { %v4529_v58 = vpop.eup %4528 }
 0xdb1   :  { %v2607_v59 = vsel %vm2070_vm2, %v4529_v58, 0.0 }
 0xdb2   :  { %2608 = vadd.xlane.f32.xlu0 %v2607_v59 }
 0xdc8   :  { %4429 = vrot.lane.b32.xlu0 %v5215_v18, %s4724_s24 }
 0xdcc   :  { %4439 = vrot.lane.b32.xlu0 %v5264_v35, %s4720_s23 }
 0xdd0   :  { %2867 = vrot.lane.b32.xlu0 %v5235_v28, %s4720_s23  ;;  %s3764_s23 = sld [smem:[#allocation4 + $0x1]] }
 0xdd6   :  { %v147_v6 = vstv %s3764_s23  ;;  %s3750_s23 = sshll.u32 %s4732_s25, 4  ;;  %s3751_s23 = int_to_ptr.vmem [resolvable:$true] %s3750_s23 }
 0xdd7   :  { %vm5345_vm3 = vcmp.lt.s32.totalorder %v5038_v3, %v147_v6  ;;  %p4681_p2 = scmp.lt.s32.totalorder %s3751_s23, %s3751_s23 }
 0xe3f   :  { %v2609_v38 = vpop.xlane.xlu0 %2608 }
 0xe40   :  { %4530 = vrcp.f32 %v2609_v38 }
 0xe43   :  { %v4430_v60 = vpop.permute.xlu0 %4429 }
 0xe44   :  { %v4432_v61 = vunpack.i.h.bf16 %v4430_v60  ;;  %v4431_v62 = vunpack.i.l.bf16 %v4430_v60 }
 0xe46   :  { %v4311_v63 = vpack.c.bf16 %v4432_v61, %v4431_v62 }
 0xe47   :  { %v4440_v19 = vpop.permute.xlu0 %4439 }
 0xe48   :  { %4312 = vmatpush3.bf16.msra.mxu0 %v4311_v63  ;;  %v4442_v22 = vunpack.i.h.bf16 %v4440_v19  ;;  %v4441_v24 = vunpack.i.l.bf16 %v4440_v19 }
 0xe49   :  { %4313 = vmatprep.subr.bf16.mxu0 %v4731_v50 }
 0xe4a   :  { %v4531_v2 = vpop.eup %4530  ;;  %v4321_v26 = vpack.c.bf16 %v4442_v22, %v4441_v24 }
 0xe4b   :  { %v2611_v4 = vmul.f32 %v4531_v2, %v4529_v58  ;;  %v2868_v27 = vpop.permute.xlu0 %2867 }
 0xe4d   :  { %4154 = vmatmul.mubr.msk.f32.vlgmr.msra.gmra.mrb[24].mxu0 %vm2070_vm2, %v2611_v4 }
 0xe4e   :  { %4160 = vmatprep.mubr.msk.f32.mxu0 %vm4717_vm5, %v4716_v46 }
 0xe51   :  { %4316 = vmatpush3.bf16.xpose.msk.msra.mxu0 %vm5211_vm15, %v4314_v36 }
 0xe52   :  { %4324 = vmatprep.subr.bf16.mxu0 %v4731_v50 }
 0xe58   :  { %4161 = vmatmul.mubr.msk.f32.vlgmr.msra.gmra.mrb[26].mxu0 %vm298_vm6, %v5235_v28 }
 0xe59   :  { %4181 = vmatprep.mubr.msk.f32.mxu0 %vm4717_vm5, %v4716_v46 }
 0xf20   :  { %v5342_v18 = vpop.f32.mrb[24].mxu0 }
 0xf21   :  { %v4155_v5 = vpop.f32.mrb[25].mxu0 }
 0xf2b   :  { %v2771_v29 = vpop.f32.mrb[26].mxu0 }
 0xf2c   :  { %v2775_v1 = vsel %vm5345_vm3, %v2771_v29, -1e+09  ;;  %v4162_v36 = vpop.f32.mrb[27].mxu0 }
 0xf2d   :  { %v2776_v48 = vsel %vm2070_vm2, %v2775_v1, -inf }
 0xf2e   :  { %2777 = vmax.xlane.f32.xlu1 %v2776_v48 }
 0xfbb   :  { %v2778_v8 = vpop.xlane.xlu1 %2777 }
 0xfbc   :  { %v2779_v9 = vsub.f32 %v2775_v1, %v2778_v8 }
 0xfbe   :  { %v2780_v10 = vmul.f32 1.442695, %v2779_v9 }
 0xfc0   :  { %4532 = vpow2.f32 %v2780_v10 }
 0xfca   :  { %v4533_v11 = vpop.eup %4532 }
 0xfcb   :  { %v2782_v12 = vsel %vm2070_vm2, %v4533_v11, 0.0 }
 0xfcc   :  { %2783 = vadd.xlane.f32.xlu1 %v2782_v12 }
 0xfdd   :  { %4434 = vrot.lane.b32.xlu1 %v5264_v35, %s4719_s13 }
0x1059   :  { %v2784_v3 = vpop.xlane.xlu1 %2783 }
0x105a   :  { %4534 = vrcp.f32 %v2784_v3 }
0x105d   :  { %v4435_v13 = vpop.permute.xlu1 %4434 }
0x105e   :  { %v4437_v14 = vunpack.i.h.bf16 %v4435_v13  ;;  %v4436_v15 = vunpack.i.l.bf16 %v4435_v13 }
0x1060   :  { %v4318_v16 = vpack.c.bf16 %v4437_v14, %v4436_v15 }
0x1062   :  { %4319 = vmatpush3.bf16.msra.mxu1 %v4318_v16 }
0x1063   :  { %4320 = vmatprep.subr.bf16.mxu1 %v4731_v50 }
0x1064   :  { %v4535_v20 = vpop.eup %4534 }
0x1065   :  { %v2786_v25 = vmul.f32 %v4535_v20, %v4533_v11 }
0x1067   :  { %4168 = vmatmul.mubr.msk.f32.vlgmr.msra.gmra.mrb[32].mxu1 %vm2070_vm2, %v2786_v25 }
0x1068   :  { %4174 = vmatprep.mubr.msk.f32.mxu1 %vm4717_vm5, %v4716_v46 }
0x106b   :  { %4323 = vmatpush3.bf16.xpose.msk.msra.mxu1 %vm5211_vm15, %v4321_v26 }
0x106c   :  { %4331 = vmatprep.subr.bf16.mxu1 %v4731_v50 }
0x1072   :  { %4175 = vmatmul.mubr.msk.f32.vlgmr.msra.gmra.mrb[34].mxu1 %vm298_vm6, %v2868_v27 }
0x1073   :  { %4195 = vmatprep.mubr.msk.f32.mxu1 %vm4717_vm5, %v4716_v46 }
0x113a   :  { %v2862_v47 = vpop.f32.mrb[32].mxu1 }
0x113b   :  { %2866 = vst.msk [vmem:[#allocation2 + $0x8] sm:$0xff] %vm298_vm6, %v2862_v47  ;;  %v4169_v30 = vpop.f32.mrb[33].mxu1 }
0x1145   :  { %v2945_v0 = vpop.f32.mrb[34].mxu1 }
0x1146   :  { %v2949_v31 = vsel %vm5345_vm3, %v2945_v0, -1e+09  ;;  %v4176_v32 = vpop.f32.mrb[35].mxu1 }
0x1147   :  { %v2950_v33 = vsel %vm2070_vm2, %v2949_v31, -inf }
0x1148   :  { %2951 = vmax.xlane.f32.xlu1 %v2950_v33 }
0x1159   :  { %4449 = vrot.lane.b32.xlu1 %v5264_v35, %s4721_s0 }
0x115d   :  { %3045 = vrot.lane.b32.xlu1 %v5235_v28, %s4721_s0 }
0x11d5   :  { %v2952_v34 = vpop.xlane.xlu1 %2951 }
0x11d6   :  { %v2953_v37 = vsub.f32 %v2949_v31, %v2952_v34 }
0x11d8   :  { %v2954_v39 = vmul.f32 1.442695, %v2953_v37 }
0x11d9   :  { %v4450_v53 = vpop.permute.xlu1 %4449 }
0x11da   :  { %4536 = vpow2.f32 %v2954_v39  ;;  %v4452_v55 = vunpack.i.h.bf16 %v4450_v53  ;;  %v4451_v56 = vunpack.i.l.bf16 %v4450_v53  ;;  %v3403_v39 = vld [vmem:[#allocation11] sm:$0xff] }
0x11dc   :  { %v4328_v58 = vpack.c.bf16 %v4452_v55, %v4451_v56 }
0x11dd   :  { %v3046_v59 = vpop.permute.xlu1 %3045 }
0x11e4   :  { %v4537_v40 = vpop.eup %4536 }
0x11e5   :  { %v2956_v41 = vsel %vm2070_vm2, %v4537_v40, 0.0 }
0x11e6   :  { %2957 = vadd.xlane.f32.xlu0 %v2956_v41 }
0x11fc   :  { %4444 = vrot.lane.b32.xlu0 %v5264_v35, %s4718_s12 }
0x1273   :  { %v2958_v42 = vpop.xlane.xlu0 %2957 }
0x1274   :  { %4538 = vrcp.f32 %v2958_v42  ;;  %v3405_v42 = vld [vmem:[#allocation11 + $0x10] sm:$0xff] }
0x1277   :  { %v4445_v44 = vpop.permute.xlu0 %4444 }
0x1278   :  { %v4447_v49 = vunpack.i.h.bf16 %v4445_v44  ;;  %v4446_v51 = vunpack.i.l.bf16 %v4445_v44  ;;  %v3406_v44 = vld [vmem:[#allocation11 + $0x18] sm:$0xff] }
0x127a   :  { %v4325_v52 = vpack.c.bf16 %v4447_v49, %v4446_v51  ;;  %v4345_v49 = vpack.c.bf16 %v3406_v44, %v3405_v42  ;;  %v3648_v42 = vld [vmem:[%s5508_s10 + $0x30] sm:$0xff]  ;;  %v3649_v44 = vld [vmem:[%s5508_s10 + $0x38] sm:$0xff] }
0x127c   :  { %4326 = vmatpush3.bf16.msra.mxu0 %v4325_v52 }
0x127d   :  { %4327 = vmatprep.subr.bf16.mxu0 %v4731_v50 }
0x127e   :  { %v4539_v54 = vpop.eup %4538 }
0x127f   :  { %v2960_v57 = vmul.f32 %v4539_v54, %v4537_v40  ;;  %v3404_v40 = vld [vmem:[#allocation11 + $0x8] sm:$0xff] }
0x1280   :  { %v4341_v41 = vpack.c.bf16 %v3404_v40, %v3403_v39 }
0x1281   :  { %4182 = vmatmul.mubr.msk.f32.vlgmr.msra.gmra.mrb[28].mxu0 %vm2070_vm2, %v2960_v57 }
0x1282   :  { %4188 = vmatprep.mubr.msk.f32.mxu0 %vm4717_vm5, %v4716_v46 }
0x1285   :  { %4330 = vmatpush3.bf16.xpose.msk.msra.mxu0 %vm5211_vm15, %v4328_v58 }
0x1286   :  { %4338 = vmatprep.subr.bf16.mxu0 %v4731_v50 }
0x128c   :  { %4189 = vmatmul.mubr.msk.f32.vlgmr.msra.gmra.mrb[30].mxu0 %vm298_vm6, %v3046_v59 }
0x128d   :  { %4209 = vmatprep.mubr.msk.f32.mxu0 %vm4717_vm5, %v4716_v46 }
0x1354   :  { %v3036_v38 = vpop.f32.mrb[28].mxu0 }
0x1355   :  { %v4183_v60 = vpop.f32.mrb[29].mxu0 }
0x135f   :  { %v3123_v61 = vpop.f32.mrb[30].mxu0 }
0x1360   :  { %v3127_v62 = vsel %vm5345_vm3, %v3123_v61, -1e+09  ;;  %v4190_v63 = vpop.f32.mrb[31].mxu0 }
0x1361   :  { %v3128_v2 = vsel %vm2070_vm2, %v3127_v62, -inf }
0x1362   :  { %3129 = vmax.xlane.f32.xlu0 %v3128_v2 }
0x1378   :  { %4454 = vrot.lane.b32.xlu0 %v5264_v35, %s4722_s21 }
0x137c   :  { %3223 = vrot.lane.b32.xlu0 %v5235_v28, %s4723_s2 }
0x13ef   :  { %v3130_v4 = vpop.xlane.xlu0 %3129 }
0x13f0   :  { %v3131_v5 = vsub.f32 %v3127_v62, %v3130_v4 }
0x13f2   :  { %v3132_v6 = vmul.f32 1.442695, %v3131_v5 }
0x13f3   :  { %v4455_v29 = vpop.permute.xlu0 %4454 }
0x13f4   :  { %4540 = vpow2.f32 %v3132_v6  ;;  %v4457_v1 = vunpack.i.h.bf16 %v4455_v29  ;;  %v4456_v36 = vunpack.i.l.bf16 %v4455_v29  ;;  %v3548_v29 = vld [vmem:[#allocation13] sm:$0xff] }
0x13f6   :  { %v4332_v48 = vpack.c.bf16 %v4457_v1, %v4456_v36  ;;  %v3549_v1 = vld [vmem:[#allocation13 + $0x8] sm:$0xff]  ;;  %v3550_v36 = vld [vmem:[#allocation13 + $0x10] sm:$0xff] }
0x13f8   :  { %4333 = vmatpush3.bf16.msra.mxu1 %v4332_v48  ;;  %v4349_v48 = vpack.c.bf16 %v3549_v1, %v3548_v29 }
0x13f9   :  { %4334 = vmatprep.subr.bf16.mxu1 %v4731_v50  ;;  %v3224_v50 = vpop.permute.xlu0 %3223 }
0x13fe   :  { %v4541_v8 = vpop.eup %4540 }
0x13ff   :  { %v3134_v9 = vsel %vm2070_vm2, %v4541_v8, 0.0 }
0x1400   :  { %3135 = vadd.xlane.f32.xlu1 %v3134_v9 }
0x1411   :  { %4459 = vrot.lane.b32.xlu1 %v5264_v35, %s4723_s2 }
0x148d   :  { %v3136_v10 = vpop.xlane.xlu1 %3135 }
0x148e   :  { %4542 = vrcp.f32 %v3136_v10  ;;  %v3642_v10 = vld [vmem:[%s5508_s10] sm:$0xff] }
0x1491   :  { %v4460_v28 = vpop.permute.xlu1 %4459 }
0x1492   :  { %v4462_v11 = vunpack.i.h.bf16 %v4460_v28  ;;  %v4461_v12 = vunpack.i.l.bf16 %v4460_v28  ;;  %v3643_v28 = vld [vmem:[%s5508_s10 + $0x8] sm:$0xff] }
0x1494   :  { %v4335_v14 = vpack.c.bf16 %v4462_v11, %v4461_v12  ;;  %v3644_v11 = vld [vmem:[%s5508_s10 + $0x10] sm:$0xff]  ;;  %v4357_v12 = vpack.c.bf16 %v3643_v28, %v3642_v10 }
0x1498   :  { %v4543_v3 = vpop.eup %4542 }
0x1499   :  { %v3138_v13 = vmul.f32 %v4543_v3, %v4541_v8  ;;  %v3551_v8 = vld [vmem:[#allocation13 + $0x18] sm:$0xff] }
0x149a   :  { %v4353_v9 = vpack.c.bf16 %v3551_v8, %v3550_v36  ;;  %v3645_v3 = vld [vmem:[%s5508_s10 + $0x18] sm:$0xff] }
0x149b   :  { %4196 = vmatmul.mubr.msk.f32.vlgmr.msra.gmra.mrb[36].mxu1 %vm2070_vm2, %v3138_v13  ;;  %v4361_v13 = vpack.c.bf16 %v3645_v3, %v3644_v11 }
0x149c   :  { %4337 = vmatpush3.bf16.xpose.msk.msra.mxu1 %vm5211_vm15, %v4335_v14  ;;  %4202 = vmatprep.mubr.msk.f32.mxu1 %vm4717_vm5, %v4716_v46  ;;  %v3646_v14 = vld [vmem:[%s5508_s10 + $0x20] sm:$0xff] }
0x149d   :  { %4350 = vmatprep.subr.bf16.mxu1 %v4349_v48 }
0x14a3   :  { %4203 = vmatmul.mubr.msk.f32.vlgmr.msra.gmra.mrb[38].mxu1 %vm298_vm6, %v3224_v50  ;;  %v3647_v50 = vld [vmem:[%s5508_s10 + $0x28] sm:$0xff]  ;;  %s5535_s10 = sld [smem:[#allocation23_spill]] }
0x14a4   :  { %4352 = vmatpush3.bf16.msra.mxu1 %v4349_v48 }
0x14a5   :  { %4354 = vmatprep.subr.bf16.mxu1 %v4353_v9 }
0x14a8   :  { %4356 = vmatpush3.bf16.msra.mxu1 %v4353_v9 }
0x156e   :  { %v3214_v15 = vpop.f32.mrb[36].mxu1 }
0x156f   :  { %v4197_v16 = vpop.f32.mrb[37].mxu1 }
0x1576   :  { %v3301_v19 = vpop.f32.mrb[38].mxu1 }
0x1577   :  { %v3305_v20 = vsel %vm5345_vm3, %v3301_v19, -1e+09  ;;  %v4204_v22 = vpop.f32.mrb[39].mxu1 }
0x1578   :  { %v3306_v24 = vsel %vm2070_vm2, %v3305_v20, -inf }
0x1579   :  { %3307 = vmax.xlane.f32.xlu1 %v3306_v24 }
0x158a   :  { %2336 = vrot.lane.b32.xlu1 %v5314_v43, %s4712_s20 }
0x158e   :  { %2514 = vrot.lane.b32.xlu1 %v5316_v45, %s4729_s27 }
0x1592   :  { %2692 = vrot.lane.b32.xlu1 %v5342_v18, %s4730_s28 }
0x1606   :  { %v3308_v46 = vpop.xlane.xlu1 %3307 }
0x1607   :  { %v3309_v17 = vsub.f32 %v3305_v20, %v3308_v46 }
0x1609   :  { %v3310_v25 = vmul.f32 1.442695, %v3309_v17 }
0x160a   :  { %v2337_v26 = vpop.permute.xlu1 %2336 }
0x160b   :  { %4544 = vpow2.f32 %v3310_v25  ;;  %2339 = vst.msk [vmem:[#allocation2] sm:$0xff] %vm632_vm8, %v2337_v26 }
0x160e   :  { %v2515_v7 = vpop.permute.xlu1 %2514 }
0x160f   :  { %2517 = vst.msk [vmem:[#allocation2] sm:$0xff] %vm804_vm9, %v2515_v7 }
0x1612   :  { %v2693_v27 = vpop.permute.xlu1 %2692 }
0x1613   :  { %2695 = vst.msk [vmem:[#allocation2] sm:$0xff] %vm976_vm10, %v2693_v27 }
0x1615   :  { %v4545_v43 = vpop.eup %4544 }
0x1616   :  { %v3312_v47 = vsel %vm2070_vm2, %v4545_v43, 0.0 }
0x1617   :  { %3313 = vadd.xlane.f32.xlu0 %v3312_v47 }
0x162d   :  { %4464 = vrot.lane.b32.xlu0 %v5264_v35, %s4724_s24  ;;  %v3401_v35 = vld [vmem:[#allocation2] sm:$0xff] }
0x1631   :  { %3041 = vrot.lane.b32.xlu0 %v3036_v38, %s4712_s20 }
0x1635   :  { %3219 = vrot.lane.b32.xlu0 %v3214_v15, %s4729_s27  ;;  %v4365_v15 = vpack.c.bf16 %v3647_v50, %v3646_v14 }
0x16a4   :  { %v3314_v45 = vpop.xlane.xlu0 %3313 }
0x16a5   :  { %4546 = vrcp.f32 %v3314_v45 }
0x16a8   :  { %v4465_v18 = vpop.permute.xlu0 %4464 }
0x16a9   :  { %v4467_v30 = vunpack.i.h.bf16 %v4465_v18  ;;  %v4466_v0 = vunpack.i.l.bf16 %v4465_v18 }
0x16ab   :  { %v4339_v31 = vpack.c.bf16 %v4467_v30, %v4466_v0  ;;  %v3837_v0 = vld [vmem:[%s5514_s16] ss:$0 sm:$0xff] }
0x16ac   :  { %v3042_v32 = vpop.permute.xlu0 %3041 }
0x16ad   :  { %3044 = vst.msk [vmem:[#allocation2 + $0x8] sm:$0xff] %vm632_vm8, %v3042_v32  ;;  %4340 = vmatpush3.bf16.msra.mxu0 %v4339_v31  ;;  %vm3650_vm8 = vcmask 523264  }
0x16ae   :  { %4342 = vmatprep.subr.bf16.mxu0 %v4341_v41 }
0x16af   :  { %v4547_v33 = vpop.eup %4546 }
0x16b0   :  { %v3316_v34 = vmul.f32 %v4547_v33, %v4545_v43  ;;  %v3220_v37 = vpop.permute.xlu0 %3219  ;;  %v3838_v33 = vld [vmem:[%s5515_s17] ss:$0 sm:$0xff] }
0x16b1   :  { %3222 = vst.msk [vmem:[#allocation2 + $0x8] sm:$0xff] %vm804_vm9, %v3220_v37 }
0x16b2   :  { %4210 = vmatmul.mubr.msk.f32.vlgmr.msra.gmra.mrb[32].mxu0 %vm2070_vm2, %v3316_v34 }
0x16b3   :  { %4220 = vmatprep.mubr.msk.f32.mxu0 %vm151_vm0, %v3401_v35  ;;  %4344 = vmatpush3.bf16.msra.mxu0 %v4341_v41 }
0x16b4   :  { %4346 = vmatprep.subr.bf16.mxu0 %v4345_v49 }
0x16b7   :  { %4348 = vmatpush3.bf16.msra.mxu0 %v4345_v49  ;;  %v4369_v49 = vpack.c.bf16 %v3649_v44, %v3648_v42 }
0x16b8   :  { %4358 = vmatprep.subr.bf16.mxu0 %v4357_v12 }
0x1785   :  { %v3392_v51 = vpop.f32.mrb[32].mxu0 }
0x1786   :  { %3397 = vrot.lane.b32.xlu1 %v3392_v51, %s4730_s28  ;;  %v4211_v52 = vpop.f32.mrb[33].mxu0  ;;  %v3839_v51 = vld [vmem:[%s5507_s9] ss:$0 sm:$0xff]  ;;  %s4676_s9 = scalar_lea.vmem %s3751_s23, 256 }
0x1787   :  { %p4677_p1 = scmp.ne.s32.totalorder %s3751_s23, %s4676_s9  ;;  %p4682_p3 = scmp.lt.s32.totalorder %s4676_s9, %s4676_s9 }
0x1789   :  { %p4683_p4 = por %p4682_p3, %p4681_p2 }
0x178b   :  { %p4684_p5 = pnand %p4683_p4, %p4677_p1 }
0x17f8   :  { %v3398_v53 = vpop.permute.xlu1 %3397 }
0x17f9   :  { %3400 = vst.msk [vmem:[#allocation2 + $0x8] sm:$0xff] %vm976_vm10, %v3398_v53 }
0x1800   :  { %v3402_v54 = vld [vmem:[#allocation2 + $0x8] sm:$0xff] }
0x1801   :  { %4221 = vmatmul.mubr.msk.f32.vlgmr.msra.gmra.mrb[34].mxu0 %vm151_vm0, %v3402_v54 }
0x1802   :  { %4360 = vmatpush3.bf16.msra.mxu0 %v4357_v12 }
0x1803   :  { %4362 = vmatprep.subr.bf16.mxu0 %v4361_v13 }
0x1806   :  { %4364 = vmatpush3.bf16.msra.mxu0 %v4361_v13 }
0x1807   :  { %4366 = vmatprep.subr.bf16.mxu0 %v4365_v15 }
0x180a   :  { %4368 = vmatpush3.bf16.msra.mxu0 %v4365_v15 }
0x180b   :  { %4370 = vmatprep.subr.bf16.mxu0 %v4369_v49 }
0x180e   :  { %4372 = vmatpush3.bf16.msra.mxu0 %v4369_v49 }
0x18d4   :  { %v4222_v55 = vpop.f32.mrb[34].mxu0 }
0x18d5   :  { %v5428_v56 = vadd.f32 %v4222_v55, %v5171_v21  ;;  %v3479_v57 = vpop.f32.mrb[35].mxu0 }
0x18d6   :  { %v5431_v58 = vadd.f32 %v3479_v57, %v5174_v23 }
0x18d7   :  { %v3495_v59 = vsel %vm151_vm0, %v5428_v56, 0.0 }
0x18d8   :  { %3496 = vadd.xlane.f32.xlu1 %v3495_v59  ;;  %v3492_v38 = vsel %vm151_vm0, %v5431_v58, 0.0 }
0x18d9   :  { %3493 = vadd.xlane.f32.xlu0 %v3492_v38 }
0x1965   :  { %v3497_v60 = vpop.xlane.xlu1 %3496 }
0x1966   :  { %v3499_v61 = vmul.f32 0.03125, %v3497_v60  ;;  %v3494_v62 = vpop.xlane.xlu0 %3493  ;;  %v3844_v60 = vld [vmem:[%s5535_s10] ss:$0 sm:$0xff] }
0x1967   :  { %v3498_v63 = vmul.f32 0.03125, %v3494_v62 }
0x1968   :  { %v3501_v2 = vsub.f32 %v5428_v56, %v3499_v61 }
0x1969   :  { %v3500_v21 = vsub.f32 %v5431_v58, %v3498_v63 }
0x196a   :  { %v3503_v5 = vmul.f32 %v3501_v2, %v3501_v2  ;;  %v3519_v37 = vmul.f32 %v3837_v0, %v3501_v2 }
0x196b   :  { %v3502_v4 = vmul.f32 %v3500_v21, %v3500_v21  ;;  %v3518_v31 = vmul.f32 %v3837_v0, %v3500_v21 }
0x196c   :  { %v3507_v6 = vsel %vm151_vm0, %v3503_v5, 0.0 }
0x196d   :  { %v3504_v23 = vsel %vm151_vm0, %v3502_v4, 0.0 }
0x196e   :  { %3505 = vadd.xlane.f32.xlu0 %v3504_v23 }
0x1972   :  { %3508 = vadd.xlane.f32.xlu0 %v3507_v6 }
0x19fb   :  { %v3506_v16 = vpop.xlane.xlu0 %3505 }
0x19fc   :  { %v3510_v19 = vmul.f32 0.032258064, %v3506_v16 }
0x19fe   :  { %4548 = vrsqrt.f32 %v3510_v19  ;;  %vm3522_vm4 = vcmp.eq.f32.partialorder %v3510_v19, inf  ;;  %v3525_v17 = vand.u32 2147483648, %v3510_v19  ;;  %vm3524_vm5 = vcmp.eq.f32.partialorder %v3510_v19, 0.0 }
0x19ff   :  { %v3509_v20 = vpop.xlane.xlu0 %3508 }
0x1a00   :  { %v3511_v22 = vmul.f32 0.032258064, %v3509_v20 }
0x1a02   :  { %4550 = vrsqrt.f32 %v3511_v22  ;;  %vm3529_vm6 = vcmp.eq.f32.partialorder %v3511_v22, inf  ;;  %v3532_v47 = vand.u32 2147483648, %v3511_v22  ;;  %vm3531_vm7 = vcmp.eq.f32.partialorder %v3511_v22, 0.0 }
0x1a08   :  { %v4549_v24 = vpop.eup %4548 }
0x1a09   :  { %v3521_v46 = vmul.f32 %v4549_v24, %v3510_v19 }
0x1a0b   :  { %v3523_v25 = vsel %vm3522_vm4, %v3510_v19, %v3521_v46 }
0x1a0c   :  { %v4551_v26 = vpop.eup %4550  ;;  %v3526_v7 = vsel %vm3524_vm5, %v3525_v17, %v3523_v25 }
0x1a0d   :  { %v3528_v27 = vmul.f32 %v4551_v26, %v3511_v22  ;;  %v3534_v43 = vadd.f32 1e-06, %v3526_v7 }
0x1a0f   :  { %v3530_v45 = vsel %vm3529_vm6, %v3511_v22, %v3528_v27  ;;  %4552 = vrcp.f32 %v3534_v43 }
0x1a10   :  { %v3533_v18 = vsel %vm3531_vm7, %v3532_v47, %v3530_v45 }
0x1a11   :  { %v3535_v30 = vadd.f32 1e-06, %v3533_v18 }
0x1a13   :  { %4554 = vrcp.f32 %v3535_v30 }
0x1a19   :  { %v4553_v32 = vpop.eup %4552 }
0x1a1a   :  { %v3537_v34 = vmul.f32 %v4553_v32, %v3518_v31 }
0x1a1c   :  { %v3546_v35 = vadd.f32 %v3838_v33, %v3537_v34 }
0x1a1d   :  { %v4555_v39 = vpop.eup %4554 }
0x1a1e   :  { %v3539_v40 = vmul.f32 %v4555_v39, %v3519_v37  ;;  %4231 = vmatprep.mubr.msk.f32.mxu1 %vm151_vm0, %v3546_v35 }
0x1a20   :  { %v3547_v41 = vadd.f32 %v3838_v33, %v3539_v40 }
0x1a22   :  { %4232 = vmatmul.mubr.msk.f32.vlgmr.msra.gmra.mrb[40].mxu1 %vm151_vm0, %v3547_v41 }
0x1af5   :  { %v4233_v52 = vpop.f32.mrb[40].mxu1 }
0x1af6   :  { %v3637_v53 = vadd.f32 %v4233_v52, %v3839_v51  ;;  %v3631_v54 = vpop.f32.mrb[41].mxu1 }
0x1af7   :  { %v3632_v55 = vadd.f32 %v3839_v51, %v3631_v54 }
0x1af8   :  { %v3641_v59 = vmax.f32 %v3637_v53, 0.0 }
0x1af9   :  { %v3640_v57 = vmax.f32 %v3632_v55, 0.0 }
0x1afb   :  { %4250 = vmatprep.mubr.msk.f32.mxu0 %vm3650_vm8, %v3640_v57 }
0x1afc   :  { %4251 = vmatmul.mubr.msk.f32.vlgmr.msra.gmra.mrb[36].mxu0 %vm3650_vm8, %v3641_v59 }
0x1bcf   :  { %v4252_v38 = vpop.f32.mrb[36].mxu0 }
0x1bd0   :  { %v3733_v61 = vadd.f32 %v4252_v38, %v5428_v56  ;;  %v3723_v62 = vpop.f32.mrb[37].mxu0 }
0x1bd1   :  { %v3732_v63 = vadd.f32 %v3723_v62, %v5431_v58 }
0x1bd2   :  { %v3742_v2 = vadd.f32 %v3844_v60, %v3733_v61 }
0x1bd3   :  { %v3741_v21 = vadd.f32 %v3844_v60, %v3732_v63 }
0x1bd4   :  { %3744 = vst.msk [vmem:[#allocation14 + $0x8] sm:$0xff] %vm151_vm0, %v3742_v2 }
0x1bd5   :  { %3743 = vst.msk [vmem:[#allocation14] sm:$0xff] %vm151_vm0, %v3741_v21 }
0x1bd6   :  { %4687 = shalt.err (!%p4684_p5)
}
0x1bd7   :  { %s4688_s0 = scalar_lea.hbm %s5516_s18, 256 }
0x1bd8   :  { %p4689_p6 = scmp.ne.s32.totalorder %s5516_s18, %s4688_s0  ;;  %p4692_p7 = scmp.lt.u32.totalorder %s4688_s0, %s5516_s18 }
0x1bda   :  { %p4694_p8 = pnand %p4692_p7, %p4689_p6 }
0x1bdc   :  { %4697 = shalt.err (!%p4694_p8)
}
0x1bdd   :  { %3756 = dma.vmem_to_hbm [thread:$0]  %s3751_s23, 256, %s5516_s18, [#allocation7], %s4711_s1, %s4711_s1, %s4712_s20  }
0x1bde   :  { %4706 = dma.done.wait [#allocation7], 256  }
0x1bdf   :  { %4707 = vsyncadd [#allocation7], 4294967040 }
0x1be0   :  { %3760 = vsyncpa [#allocation6], 1 }
0x1be1   :  { %3761 = vsyncpa [#allocation9], 1 }
0x1be2   :  { %3762 = vsyncpa [#allocation12], 1 }
0x1be3   :  { %3763 = vsyncpa [#allocation7], 1 }

</bundles_post_ra>
